<compile_context>
chip_gen: v7x
topology: tpu7x:2x2x1
jax: 0.10.0
libtpu: 0.0.40
codegen_flags: <defaults>
</compile_context>

<pallas_src>
import functools

import numpy as np
import jax
import jax.numpy as jnp
from jax.experimental import pallas as pl
from jax.experimental.pallas import tpu as pltpu


# ----------------------------------------------------------------------------
# Encoder geometry (documented input: [4 @ 16 x 16] RGB-D patches).
# ----------------------------------------------------------------------------
C0, HIN, WIN = 4, 16, 16
HO1 = WO1 = 8            # conv1: 3x3, stride 2, pad 1
C1 = 16
HO2 = WO2 = 4            # conv2: 3x3, stride 2, pad 1
C2 = 32
S2 = HO2 * WO2           # 16 spatial positions after conv2
DIN3 = S2 * C2           # 512 flattened features
DOUT = 64                # embedding dim

LANE = 128               # all packed K / channel dims padded to one lane group
K1 = 9 * C0              # 36 im2col columns for conv1


# ----------------------------------------------------------------------------
# Fused kernel: conv1 + conv2 (via selection matmul) + linear head.
# All operands live in VMEM for the whole call; only the [nbp,128] embedding
# tile is stored back to HBM (lane-dense, sublane-aligned).
# ----------------------------------------------------------------------------
def _fused_encoder_kernel(p1_ref, w1_ref, b1_ref, g_ref, w2_ref, b2_ref,
                          w3_ref, b3_ref, out_ref, *, nbp, m2p):
    f32 = jnp.float32

    # conv1 (im2col matmul) + bias + ReLU              -> [NB*64, 128]
    h1 = jnp.dot(p1_ref[...], w1_ref[...], preferred_element_type=f32)
    h1 = jnp.maximum(h1 + b1_ref[...], 0.0)

    # Gather all 9 shifted conv2 taps with one 0/1 selection matmul.
    # Rows are ordered (tap k, spatial s, padded-batch bp); out-of-bounds
    # (zero-padding) taps are all-zero rows of G, i.e. correct pad semantics.
    taps = jnp.dot(g_ref[...], h1, preferred_element_type=f32)    # [9*m2p, 128]

    # conv2: accumulate the 9 tap matmuls + bias + ReLU -> [m2p, 128]
    acc2 = jnp.dot(taps[0:m2p, :], w2_ref[0], preferred_element_type=f32)
    for k in range(1, 9):
        acc2 = acc2 + jnp.dot(taps[k * m2p:(k + 1) * m2p, :], w2_ref[k],
                              preferred_element_type=f32)
    h2 = jnp.maximum(acc2 + b2_ref[...], 0.0)

    # Linear head: the (4x4 spatial x 32ch) flatten is folded into 16
    # accumulated matmuls over aligned row groups of h2 (rows ordered (s, bp)).
    acc3 = jnp.dot(h2[0:nbp, :], w3_ref[0], preferred_element_type=f32)
    for s in range(1, S2):
        acc3 = acc3 + jnp.dot(h2[s * nbp:(s + 1) * nbp, :], w3_ref[s],
                              preferred_element_type=f32)

    out_ref[...] = (acc3 + b3_ref[...]).astype(out_ref.dtype)


def _fused_forward(p1, w1p, b1p, gcat, w2c, b2p, w3c, b3p, *, nbp):
    m1 = p1.shape[0]          # NB * 64
    m2p = S2 * nbp
    mg = 9 * m2p
    assert gcat.shape == (mg, m1)

    flops = 2 * (m1 * LANE * LANE            # conv1
                 + mg * m1 * LANE            # tap gather
                 + 9 * m2p * LANE * LANE     # conv2
                 + S2 * nbp * LANE * LANE)   # head
    bytes_accessed = 4 * (p1.size + w1p.size + b1p.size + gcat.size
                          + w2c.size + b2p.size + w3c.size + b3p.size
                          + nbp * LANE)

    kernel = functools.partial(_fused_encoder_kernel, nbp=nbp, m2p=m2p)
    return pl.pallas_call(
        kernel,
        out_shape=jax.ShapeDtypeStruct((nbp, LANE), jnp.float32),
        in_specs=[
            pl.BlockSpec((m1, LANE), lambda: (0, 0), memory_space=pltpu.VMEM),
            pl.BlockSpec((LANE, LANE), lambda: (0, 0), memory_space=pltpu.VMEM),
            pl.BlockSpec((1, LANE), lambda: (0, 0), memory_space=pltpu.VMEM),
            pl.BlockSpec((mg, m1), lambda: (0, 0), memory_space=pltpu.VMEM),
            pl.BlockSpec((9, LANE, LANE), lambda: (0, 0, 0),
                         memory_space=pltpu.VMEM),
            pl.BlockSpec((1, LANE), lambda: (0, 0), memory_space=pltpu.VMEM),
            pl.BlockSpec((S2, LANE, LANE), lambda: (0, 0, 0),
                         memory_space=pltpu.VMEM),
            pl.BlockSpec((1, LANE), lambda: (0, 0), memory_space=pltpu.VMEM),
        ],
        out_specs=pl.BlockSpec((nbp, LANE), lambda: (0, 0),
                               memory_space=pltpu.VMEM),
        cost_estimate=pl.CostEstimate(flops=flops, transcendentals=0,
                                      bytes_accessed=bytes_accessed),
    )(p1, w1p, b1p, gcat, w2c, b2p, w3c, b3p)


# ----------------------------------------------------------------------------
# Host-side glue (runs once per call on the CONCATENATED [3B,...] input).
# ----------------------------------------------------------------------------
def _im2col_conv1(x_nhwc):
    """[NB,16,16,4] -> [NB*64, 128] patch matrix, K zero-padded 36 -> 128."""
    nb = x_nhwc.shape[0]
    xp = jnp.pad(x_nhwc, ((0, 0), (1, 1), (1, 1), (0, 0)))
    cols = []
    for i in range(3):
        for j in range(3):
            cols.append(xp[:, i:i + 2 * HO1:2, j:j + 2 * WO1:2, :])
    p = jnp.concatenate(cols, axis=-1).reshape(nb * HO1 * WO1, K1)
    return jnp.pad(p, ((0, 0), (0, LANE - K1)))


def _build_gather_matrix(nb, nbp):
    """0/1 matrix mapping h1 rows (n,h1,w1) -> conv2 tap rows (k,s,bp)."""
    m1 = nb * HO1 * WO1
    g = np.zeros((9 * S2 * nbp, m1), np.float32)
    for k in range(9):
        kh, kw = divmod(k, 3)
        for s in range(S2):
            ho, wo = divmod(s, WO2)
            hi = 2 * ho + kh - 1
            wi = 2 * wo + kw - 1
            if 0 <= hi < HO1 and 0 <= wi < WO1:
                for b in range(nb):
                    g[(k * S2 + s) * nbp + b,
                      b * HO1 * WO1 + hi * WO1 + wi] = 1.0
    return jnp.asarray(g)


def init_encoder_params(key):
    ks = jax.random.split(key, 6)
    return {
        "w1": jax.random.normal(ks[0], (3, 3, C0, C1), jnp.float32) * 0.1,
        "b1": jax.random.normal(ks[1], (C1,), jnp.float32) * 0.1,
        "w2": jax.random.normal(ks[2], (3, 3, C1, C2), jnp.float32) * 0.05,
        "b2": jax.random.normal(ks[3], (C2,), jnp.float32) * 0.1,
        "w3": jax.random.normal(ks[4], (DIN3, DOUT), jnp.float32) * 0.05,
        "b3": jax.random.normal(ks[5], (DOUT,), jnp.float32) * 0.1,
    }


def pack_params(params, nb):
    """Zero-pad / reorder weights into lane-dense (multiple-of-128) layouts."""
    nbp = ((nb + 7) // 8) * 8
    w1p = jnp.zeros((LANE, LANE), jnp.float32).at[:K1, :C1].set(
        params["w1"].reshape(K1, C1))
    b1p = jnp.zeros((1, LANE), jnp.float32).at[0, :C1].set(params["b1"])
    w2c = jnp.zeros((9, LANE, LANE), jnp.float32).at[:, :C1, :C2].set(
        params["w2"].reshape(9, C1, C2))
    b2p = jnp.zeros((1, LANE), jnp.float32).at[0, :C2].set(params["b2"])
    w3c = jnp.zeros((S2, LANE, LANE), jnp.float32).at[:, :C2, :DOUT].set(
        params["w3"].reshape(S2, C2, DOUT))
    b3p = jnp.zeros((1, LANE), jnp.float32).at[0, :DOUT].set(params["b3"])
    return {"w1p": w1p, "b1p": b1p, "w2c": w2c, "b2p": b2p,
            "w3c": w3c, "b3p": b3p, "gcat": _build_gather_matrix(nb, nbp)}


def _encode_batched(x_nchw, packed):
    nb = x_nchw.shape[0]
    assert x_nchw.shape[1:] == (C0, HIN, WIN)
    gcat = packed["gcat"]
    nbp = gcat.shape[0] // (9 * S2)
    assert gcat.shape == (9 * S2 * nbp, nb * HO1 * WO1) and nb <= nbp
    x = jnp.transpose(x_nchw.astype(jnp.float32), (0, 2, 3, 1))   # NCHW -> NHWC
    p1 = _im2col_conv1(x)                                         # [nb*64, 128]
    z_pad = _fused_forward(p1, packed["w1p"], packed["b1p"], gcat,
                           packed["w2c"], packed["b2p"],
                           packed["w3c"], packed["b3p"], nbp=nbp)
    return z_pad[:nb, :DOUT]


@jax.jit
def rgbd_triplet_forward(patch_anchor, patch_pos, patch_neg, packed):
    """Shared-weight encoder applied to the batched triplet (one kernel call)."""
    b = patch_anchor.shape[0]
    x = jnp.concatenate([patch_anchor, patch_pos, patch_neg], axis=0)
    z = _encode_batched(x, packed)
    return z[:b], z[b:2 * b], z[2 * b:]


# ----------------------------------------------------------------------------
# Plain-XLA reference of the same encoder (for numerical verification).
# ----------------------------------------------------------------------------
def encoder_reference(x_nchw, params):
    x = jnp.transpose(x_nchw.astype(jnp.float32), (0, 2, 3, 1))
    h1 = jax.lax.conv_general_dilated(
        x, params["w1"], window_strides=(2, 2), padding=((1, 1), (1, 1)),
        dimension_numbers=("NHWC", "HWIO", "NHWC"),
        precision=jax.lax.Precision.HIGHEST)
    h1 = jnp.maximum(h1 + params["b1"], 0.0)
    h2 = jax.lax.conv_general_dilated(
        h1, params["w2"], window_strides=(2, 2), padding=((1, 1), (1, 1)),
        dimension_numbers=("NHWC", "HWIO", "NHWC"),
        precision=jax.lax.Precision.HIGHEST)
    h2 = jnp.maximum(h2 + params["b2"], 0.0)
    flat = h2.reshape(h2.shape[0], -1)                            # NHWC flatten
    return jnp.dot(flat, params["w3"],
                   precision=jax.lax.Precision.HIGHEST) + params["b3"]


if __name__ == "__main__":
    key = jax.random.PRNGKey(0)
    k_params, ka, kp, kn = jax.random.split(key, 4)
    params = init_encoder_params(k_params)

    B = 2
    shape = (B, C0, HIN, WIN)   # NCHW, [4 @ 16 x 16] RGB-D patches
    patch_anchor = jax.random.normal(ka, shape, jnp.float32)
    patch_pos = jax.random.normal(kp, shape, jnp.float32)
    patch_neg = jax.random.normal(kn, shape, jnp.float32)

    packed = pack_params(params, nb=3 * B)

    za, zp, zn = rgbd_triplet_forward(patch_anchor, patch_pos, patch_neg, packed)
    jax.block_until_ready((za, zp, zn))

    assert za.shape == (B, DOUT) and zp.shape == (B, DOUT) and zn.shape == (B, DOUT)
    assert za.dtype == jnp.float32

    # Verify the fused kernel against the plain-XLA reference encoder.
    ref = encoder_reference(
        jnp.concatenate([patch_anchor, patch_pos, patch_neg], axis=0), params)
    got = jnp.concatenate([za, zp, zn], axis=0)
    err = float(jnp.max(jnp.abs(got - ref)))
    assert err < 5e-2, f"kernel/reference mismatch: max abs err {err}"

    print("KERNEL_OK")
</pallas_src>

<mosaic_0001>
module attributes {stable_mosaic.version = 11 : i64} {
  func.func @_fused_encoder_kernel(%arg0: memref<384x128xf32, #tpu.memory_space<vmem>>, %arg1: memref<128x128xf32, #tpu.memory_space<vmem>>, %arg2: memref<1x128xf32, #tpu.memory_space<vmem>>, %arg3: memref<1152x384xf32, #tpu.memory_space<vmem>>, %arg4: memref<9x128x128xf32, #tpu.memory_space<vmem>>, %arg5: memref<1x128xf32, #tpu.memory_space<vmem>>, %arg6: memref<16x128x128xf32, #tpu.memory_space<vmem>>, %arg7: memref<1x128xf32, #tpu.memory_space<vmem>>, %arg8: memref<8x128xf32, #tpu.memory_space<vmem>>) attributes {dimension_semantics = [], scalar_prefetch = 0 : i64, scratch_operands = 0 : i64, tpu.core_type = #tpu.core_type<tc>} {
    %c0 = arith.constant 0 : index
    %c0_0 = arith.constant 0 : index
    %0 = vector.load %arg0[%c0, %c0_0] : memref<384x128xf32, #tpu.memory_space<vmem>>, vector<384x128xf32>
    %c0_1 = arith.constant 0 : index
    %c0_2 = arith.constant 0 : index
    %1 = vector.load %arg1[%c0_1, %c0_2] : memref<128x128xf32, #tpu.memory_space<vmem>>, vector<128x128xf32>
    %cst = arith.constant dense<0.000000e+00> : vector<384x128xf32>
    %2 = tpu.matmul %0, %1, %cst {dimension_numbers = #tpu.dot_dimension_numbers<[1], [0], [0], [1], [0, 0, 1, 1], [], []>} : vector<384x128xf32>, vector<128x128xf32>, vector<384x128xf32> -> vector<384x128xf32>
    %c0_3 = arith.constant 0 : index
    %c0_4 = arith.constant 0 : index
    %3 = vector.load %arg2[%c0_3, %c0_4] : memref<1x128xf32, #tpu.memory_space<vmem>>, vector<1x128xf32>
    %4 = vector.broadcast %3 : vector<1x128xf32> to vector<384x128xf32>
    %5 = arith.addf %2, %4 : vector<384x128xf32>
    %cst_5 = arith.constant 0.000000e+00 : f32
    %6 = vector.broadcast %cst_5 : f32 to vector<384x128xf32>
    %7 = arith.maximumf %5, %6 : vector<384x128xf32>
    %c0_6 = arith.constant 0 : index
    %c0_7 = arith.constant 0 : index
    %8 = vector.load %arg3[%c0_6, %c0_7] : memref<1152x384xf32, #tpu.memory_space<vmem>>, vector<1152x384xf32>
    %cst_8 = arith.constant dense<0.000000e+00> : vector<1152x128xf32>
    %9 = tpu.matmul %8, %7, %cst_8 {dimension_numbers = #tpu.dot_dimension_numbers<[1], [0], [0], [1], [0, 0, 1, 1], [], []>} : vector<1152x384xf32>, vector<384x128xf32>, vector<1152x128xf32> -> vector<1152x128xf32>
    %10 = vector.extract_strided_slice %9 {offsets = [0, 0], sizes = [128, 128], strides = [1, 1]} : vector<1152x128xf32> to vector<128x128xf32>
    %c0_9 = arith.constant 0 : index
    %c0_10 = arith.constant 0 : index
    %c0_11 = arith.constant 0 : index
    %11 = vector.load %arg4[%c0_9, %c0_10, %c0_11] : memref<9x128x128xf32, #tpu.memory_space<vmem>>, vector<1x128x128xf32>
    %12 = vector.shape_cast %11 : vector<1x128x128xf32> to vector<128x128xf32>
    %cst_12 = arith.constant dense<0.000000e+00> : vector<128x128xf32>
    %13 = tpu.matmul %10, %12, %cst_12 {dimension_numbers = #tpu.dot_dimension_numbers<[1], [0], [0], [1], [0, 0, 1, 1], [], []>} : vector<128x128xf32>, vector<128x128xf32>, vector<128x128xf32> -> vector<128x128xf32>
    %14 = vector.extract_strided_slice %9 {offsets = [128, 0], sizes = [128, 128], strides = [1, 1]} : vector<1152x128xf32> to vector<128x128xf32>
    %c1 = arith.constant 1 : index
    %c0_13 = arith.constant 0 : index
    %c0_14 = arith.constant 0 : index
    %15 = vector.load %arg4[%c1, %c0_13, %c0_14] : memref<9x128x128xf32, #tpu.memory_space<vmem>>, vector<1x128x128xf32>
    %16 = vector.shape_cast %15 : vector<1x128x128xf32> to vector<128x128xf32>
    %cst_15 = arith.constant dense<0.000000e+00> : vector<128x128xf32>
    %17 = tpu.matmul %14, %16, %cst_15 {dimension_numbers = #tpu.dot_dimension_numbers<[1], [0], [0], [1], [0, 0, 1, 1], [], []>} : vector<128x128xf32>, vector<128x128xf32>, vector<128x128xf32> -> vector<128x128xf32>
    %18 = arith.addf %13, %17 : vector<128x128xf32>
    %19 = vector.extract_strided_slice %9 {offsets = [256, 0], sizes = [128, 128], strides = [1, 1]} : vector<1152x128xf32> to vector<128x128xf32>
    %c2 = arith.constant 2 : index
    %c0_16 = arith.constant 0 : index
    %c0_17 = arith.constant 0 : index
    %20 = vector.load %arg4[%c2, %c0_16, %c0_17] : memref<9x128x128xf32, #tpu.memory_space<vmem>>, vector<1x128x128xf32>
    %21 = vector.shape_cast %20 : vector<1x128x128xf32> to vector<128x128xf32>
    %cst_18 = arith.constant dense<0.000000e+00> : vector<128x128xf32>
    %22 = tpu.matmul %19, %21, %cst_18 {dimension_numbers = #tpu.dot_dimension_numbers<[1], [0], [0], [1], [0, 0, 1, 1], [], []>} : vector<128x128xf32>, vector<128x128xf32>, vector<128x128xf32> -> vector<128x128xf32>
    %23 = arith.addf %18, %22 : vector<128x128xf32>
    %24 = vector.extract_strided_slice %9 {offsets = [384, 0], sizes = [128, 128], strides = [1, 1]} : vector<1152x128xf32> to vector<128x128xf32>
    %c3 = arith.constant 3 : index
    %c0_19 = arith.constant 0 : index
    %c0_20 = arith.constant 0 : index
    %25 = vector.load %arg4[%c3, %c0_19, %c0_20] : memref<9x128x128xf32, #tpu.memory_space<vmem>>, vector<1x128x128xf32>
    %26 = vector.shape_cast %25 : vector<1x128x128xf32> to vector<128x128xf32>
    %cst_21 = arith.constant dense<0.000000e+00> : vector<128x128xf32>
    %27 = tpu.matmul %24, %26, %cst_21 {dimension_numbers = #tpu.dot_dimension_numbers<[1], [0], [0], [1], [0, 0, 1, 1], [], []>} : vector<128x128xf32>, vector<128x128xf32>, vector<128x128xf32> -> vector<128x128xf32>
    %28 = arith.addf %23, %27 : vector<128x128xf32>
    %29 = vector.extract_strided_slice %9 {offsets = [512, 0], sizes = [128, 128], strides = [1, 1]} : vector<1152x128xf32> to vector<128x128xf32>
    %c4 = arith.constant 4 : index
    %c0_22 = arith.constant 0 : index
    %c0_23 = arith.constant 0 : index
    %30 = vector.load %arg4[%c4, %c0_22, %c0_23] : memref<9x128x128xf32, #tpu.memory_space<vmem>>, vector<1x128x128xf32>
    %31 = vector.shape_cast %30 : vector<1x128x128xf32> to vector<128x128xf32>
    %cst_24 = arith.constant dense<0.000000e+00> : vector<128x128xf32>
    %32 = tpu.matmul %29, %31, %cst_24 {dimension_numbers = #tpu.dot_dimension_numbers<[1], [0], [0], [1], [0, 0, 1, 1], [], []>} : vector<128x128xf32>, vector<128x128xf32>, vector<128x128xf32> -> vector<128x128xf32>
    %33 = arith.addf %28, %32 : vector<128x128xf32>
    %34 = vector.extract_strided_slice %9 {offsets = [640, 0], sizes = [128, 128], strides = [1, 1]} : vector<1152x128xf32> to vector<128x128xf32>
    %c5 = arith.constant 5 : index
    %c0_25 = arith.constant 0 : index
    %c0_26 = arith.constant 0 : index
    %35 = vector.load %arg4[%c5, %c0_25, %c0_26] : memref<9x128x128xf32, #tpu.memory_space<vmem>>, vector<1x128x128xf32>
    %36 = vector.shape_cast %35 : vector<1x128x128xf32> to vector<128x128xf32>
    %cst_27 = arith.constant dense<0.000000e+00> : vector<128x128xf32>
    %37 = tpu.matmul %34, %36, %cst_27 {dimension_numbers = #tpu.dot_dimension_numbers<[1], [0], [0], [1], [0, 0, 1, 1], [], []>} : vector<128x128xf32>, vector<128x128xf32>, vector<128x128xf32> -> vector<128x128xf32>
    %38 = arith.addf %33, %37 : vector<128x128xf32>
    %39 = vector.extract_strided_slice %9 {offsets = [768, 0], sizes = [128, 128], strides = [1, 1]} : vector<1152x128xf32> to vector<128x128xf32>
    %c6 = arith.constant 6 : index
    %c0_28 = arith.constant 0 : index
    %c0_29 = arith.constant 0 : index
    %40 = vector.load %arg4[%c6, %c0_28, %c0_29] : memref<9x128x128xf32, #tpu.memory_space<vmem>>, vector<1x128x128xf32>
    %41 = vector.shape_cast %40 : vector<1x128x128xf32> to vector<128x128xf32>
    %cst_30 = arith.constant dense<0.000000e+00> : vector<128x128xf32>
    %42 = tpu.matmul %39, %41, %cst_30 {dimension_numbers = #tpu.dot_dimension_numbers<[1], [0], [0], [1], [0, 0, 1, 1], [], []>} : vector<128x128xf32>, vector<128x128xf32>, vector<128x128xf32> -> vector<128x128xf32>
    %43 = arith.addf %38, %42 : vector<128x128xf32>
    %44 = vector.extract_strided_slice %9 {offsets = [896, 0], sizes = [128, 128], strides = [1, 1]} : vector<1152x128xf32> to vector<128x128xf32>
    %c7 = arith.constant 7 : index
    %c0_31 = arith.constant 0 : index
    %c0_32 = arith.constant 0 : index
    %45 = vector.load %arg4[%c7, %c0_31, %c0_32] : memref<9x128x128xf32, #tpu.memory_space<vmem>>, vector<1x128x128xf32>
    %46 = vector.shape_cast %45 : vector<1x128x128xf32> to vector<128x128xf32>
    %cst_33 = arith.constant dense<0.000000e+00> : vector<128x128xf32>
    %47 = tpu.matmul %44, %46, %cst_33 {dimension_numbers = #tpu.dot_dimension_numbers<[1], [0], [0], [1], [0, 0, 1, 1], [], []>} : vector<128x128xf32>, vector<128x128xf32>, vector<128x128xf32> -> vector<128x128xf32>
    %48 = arith.addf %43, %47 : vector<128x128xf32>
    %49 = vector.extract_strided_slice %9 {offsets = [1024, 0], sizes = [128, 128], strides = [1, 1]} : vector<1152x128xf32> to vector<128x128xf32>
    %c8 = arith.constant 8 : index
    %c0_34 = arith.constant 0 : index
    %c0_35 = arith.constant 0 : index
    %50 = vector.load %arg4[%c8, %c0_34, %c0_35] : memref<9x128x128xf32, #tpu.memory_space<vmem>>, vector<1x128x128xf32>
    %51 = vector.shape_cast %50 : vector<1x128x128xf32> to vector<128x128xf32>
    %cst_36 = arith.constant dense<0.000000e+00> : vector<128x128xf32>
    %52 = tpu.matmul %49, %51, %cst_36 {dimension_numbers = #tpu.dot_dimension_numbers<[1], [0], [0], [1], [0, 0, 1, 1], [], []>} : vector<128x128xf32>, vector<128x128xf32>, vector<128x128xf32> -> vector<128x128xf32>
    %53 = arith.addf %48, %52 : vector<128x128xf32>
    %c0_37 = arith.constant 0 : index
    %c0_38 = arith.constant 0 : index
    %54 = vector.load %arg5[%c0_37, %c0_38] : memref<1x128xf32, #tpu.memory_space<vmem>>, vector<1x128xf32>
    %55 = vector.broadcast %54 : vector<1x128xf32> to vector<128x128xf32>
    %56 = arith.addf %53, %55 : vector<128x128xf32>
    %cst_39 = arith.constant 0.000000e+00 : f32
    %57 = vector.broadcast %cst_39 : f32 to vector<128x128xf32>
    %58 = arith.maximumf %56, %57 : vector<128x128xf32>
    %59 = vector.extract_strided_slice %58 {offsets = [0, 0], sizes = [8, 128], strides = [1, 1]} : vector<128x128xf32> to vector<8x128xf32>
    %c0_40 = arith.constant 0 : index
    %c0_41 = arith.constant 0 : index
    %c0_42 = arith.constant 0 : index
    %60 = vector.load %arg6[%c0_40, %c0_41, %c0_42] : memref<16x128x128xf32, #tpu.memory_space<vmem>>, vector<1x128x128xf32>
    %61 = vector.shape_cast %60 : vector<1x128x128xf32> to vector<128x128xf32>
    %cst_43 = arith.constant dense<0.000000e+00> : vector<8x128xf32>
    %62 = tpu.matmul %59, %61, %cst_43 {dimension_numbers = #tpu.dot_dimension_numbers<[1], [0], [0], [1], [0, 0, 1, 1], [], []>} : vector<8x128xf32>, vector<128x128xf32>, vector<8x128xf32> -> vector<8x128xf32>
    %63 = vector.extract_strided_slice %58 {offsets = [8, 0], sizes = [8, 128], strides = [1, 1]} : vector<128x128xf32> to vector<8x128xf32>
    %c1_44 = arith.constant 1 : index
    %c0_45 = arith.constant 0 : index
    %c0_46 = arith.constant 0 : index
    %64 = vector.load %arg6[%c1_44, %c0_45, %c0_46] : memref<16x128x128xf32, #tpu.memory_space<vmem>>, vector<1x128x128xf32>
    %65 = vector.shape_cast %64 : vector<1x128x128xf32> to vector<128x128xf32>
    %cst_47 = arith.constant dense<0.000000e+00> : vector<8x128xf32>
    %66 = tpu.matmul %63, %65, %cst_47 {dimension_numbers = #tpu.dot_dimension_numbers<[1], [0], [0], [1], [0, 0, 1, 1], [], []>} : vector<8x128xf32>, vector<128x128xf32>, vector<8x128xf32> -> vector<8x128xf32>
    %67 = arith.addf %62, %66 : vector<8x128xf32>
    %68 = vector.extract_strided_slice %58 {offsets = [16, 0], sizes = [8, 128], strides = [1, 1]} : vector<128x128xf32> to vector<8x128xf32>
    %c2_48 = arith.constant 2 : index
    %c0_49 = arith.constant 0 : index
    %c0_50 = arith.constant 0 : index
    %69 = vector.load %arg6[%c2_48, %c0_49, %c0_50] : memref<16x128x128xf32, #tpu.memory_space<vmem>>, vector<1x128x128xf32>
    %70 = vector.shape_cast %69 : vector<1x128x128xf32> to vector<128x128xf32>
    %cst_51 = arith.constant dense<0.000000e+00> : vector<8x128xf32>
    %71 = tpu.matmul %68, %70, %cst_51 {dimension_numbers = #tpu.dot_dimension_numbers<[1], [0], [0], [1], [0, 0, 1, 1], [], []>} : vector<8x128xf32>, vector<128x128xf32>, vector<8x128xf32> -> vector<8x128xf32>
    %72 = arith.addf %67, %71 : vector<8x128xf32>
    %73 = vector.extract_strided_slice %58 {offsets = [24, 0], sizes = [8, 128], strides = [1, 1]} : vector<128x128xf32> to vector<8x128xf32>
    %c3_52 = arith.constant 3 : index
    %c0_53 = arith.constant 0 : index
    %c0_54 = arith.constant 0 : index
    %74 = vector.load %arg6[%c3_52, %c0_53, %c0_54] : memref<16x128x128xf32, #tpu.memory_space<vmem>>, vector<1x128x128xf32>
    %75 = vector.shape_cast %74 : vector<1x128x128xf32> to vector<128x128xf32>
    %cst_55 = arith.constant dense<0.000000e+00> : vector<8x128xf32>
    %76 = tpu.matmul %73, %75, %cst_55 {dimension_numbers = #tpu.dot_dimension_numbers<[1], [0], [0], [1], [0, 0, 1, 1], [], []>} : vector<8x128xf32>, vector<128x128xf32>, vector<8x128xf32> -> vector<8x128xf32>
    %77 = arith.addf %72, %76 : vector<8x128xf32>
    %78 = vector.extract_strided_slice %58 {offsets = [32, 0], sizes = [8, 128], strides = [1, 1]} : vector<128x128xf32> to vector<8x128xf32>
    %c4_56 = arith.constant 4 : index
    %c0_57 = arith.constant 0 : index
    %c0_58 = arith.constant 0 : index
    %79 = vector.load %arg6[%c4_56, %c0_57, %c0_58] : memref<16x128x128xf32, #tpu.memory_space<vmem>>, vector<1x128x128xf32>
    %80 = vector.shape_cast %79 : vector<1x128x128xf32> to vector<128x128xf32>
    %cst_59 = arith.constant dense<0.000000e+00> : vector<8x128xf32>
    %81 = tpu.matmul %78, %80, %cst_59 {dimension_numbers = #tpu.dot_dimension_numbers<[1], [0], [0], [1], [0, 0, 1, 1], [], []>} : vector<8x128xf32>, vector<128x128xf32>, vector<8x128xf32> -> vector<8x128xf32>
    %82 = arith.addf %77, %81 : vector<8x128xf32>
    %83 = vector.extract_strided_slice %58 {offsets = [40, 0], sizes = [8, 128], strides = [1, 1]} : vector<128x128xf32> to vector<8x128xf32>
    %c5_60 = arith.constant 5 : index
    %c0_61 = arith.constant 0 : index
    %c0_62 = arith.constant 0 : index
    %84 = vector.load %arg6[%c5_60, %c0_61, %c0_62] : memref<16x128x128xf32, #tpu.memory_space<vmem>>, vector<1x128x128xf32>
    %85 = vector.shape_cast %84 : vector<1x128x128xf32> to vector<128x128xf32>
    %cst_63 = arith.constant dense<0.000000e+00> : vector<8x128xf32>
    %86 = tpu.matmul %83, %85, %cst_63 {dimension_numbers = #tpu.dot_dimension_numbers<[1], [0], [0], [1], [0, 0, 1, 1], [], []>} : vector<8x128xf32>, vector<128x128xf32>, vector<8x128xf32> -> vector<8x128xf32>
    %87 = arith.addf %82, %86 : vector<8x128xf32>
    %88 = vector.extract_strided_slice %58 {offsets = [48, 0], sizes = [8, 128], strides = [1, 1]} : vector<128x128xf32> to vector<8x128xf32>
    %c6_64 = arith.constant 6 : index
    %c0_65 = arith.constant 0 : index
    %c0_66 = arith.constant 0 : index
    %89 = vector.load %arg6[%c6_64, %c0_65, %c0_66] : memref<16x128x128xf32, #tpu.memory_space<vmem>>, vector<1x128x128xf32>
    %90 = vector.shape_cast %89 : vector<1x128x128xf32> to vector<128x128xf32>
    %cst_67 = arith.constant dense<0.000000e+00> : vector<8x128xf32>
    %91 = tpu.matmul %88, %90, %cst_67 {dimension_numbers = #tpu.dot_dimension_numbers<[1], [0], [0], [1], [0, 0, 1, 1], [], []>} : vector<8x128xf32>, vector<128x128xf32>, vector<8x128xf32> -> vector<8x128xf32>
    %92 = arith.addf %87, %91 : vector<8x128xf32>
    %93 = vector.extract_strided_slice %58 {offsets = [56, 0], sizes = [8, 128], strides = [1, 1]} : vector<128x128xf32> to vector<8x128xf32>
    %c7_68 = arith.constant 7 : index
    %c0_69 = arith.constant 0 : index
    %c0_70 = arith.constant 0 : index
    %94 = vector.load %arg6[%c7_68, %c0_69, %c0_70] : memref<16x128x128xf32, #tpu.memory_space<vmem>>, vector<1x128x128xf32>
    %95 = vector.shape_cast %94 : vector<1x128x128xf32> to vector<128x128xf32>
    %cst_71 = arith.constant dense<0.000000e+00> : vector<8x128xf32>
    %96 = tpu.matmul %93, %95, %cst_71 {dimension_numbers = #tpu.dot_dimension_numbers<[1], [0], [0], [1], [0, 0, 1, 1], [], []>} : vector<8x128xf32>, vector<128x128xf32>, vector<8x128xf32> -> vector<8x128xf32>
    %97 = arith.addf %92, %96 : vector<8x128xf32>
    %98 = vector.extract_strided_slice %58 {offsets = [64, 0], sizes = [8, 128], strides = [1, 1]} : vector<128x128xf32> to vector<8x128xf32>
    %c8_72 = arith.constant 8 : index
    %c0_73 = arith.constant 0 : index
    %c0_74 = arith.constant 0 : index
    %99 = vector.load %arg6[%c8_72, %c0_73, %c0_74] : memref<16x128x128xf32, #tpu.memory_space<vmem>>, vector<1x128x128xf32>
    %100 = vector.shape_cast %99 : vector<1x128x128xf32> to vector<128x128xf32>
    %cst_75 = arith.constant dense<0.000000e+00> : vector<8x128xf32>
    %101 = tpu.matmul %98, %100, %cst_75 {dimension_numbers = #tpu.dot_dimension_numbers<[1], [0], [0], [1], [0, 0, 1, 1], [], []>} : vector<8x128xf32>, vector<128x128xf32>, vector<8x128xf32> -> vector<8x128xf32>
    %102 = arith.addf %97, %101 : vector<8x128xf32>
    %103 = vector.extract_strided_slice %58 {offsets = [72, 0], sizes = [8, 128], strides = [1, 1]} : vector<128x128xf32> to vector<8x128xf32>
    %c9 = arith.constant 9 : index
    %c0_76 = arith.constant 0 : index
    %c0_77 = arith.constant 0 : index
    %104 = vector.load %arg6[%c9, %c0_76, %c0_77] : memref<16x128x128xf32, #tpu.memory_space<vmem>>, vector<1x128x128xf32>
    %105 = vector.shape_cast %104 : vector<1x128x128xf32> to vector<128x128xf32>
    %cst_78 = arith.constant dense<0.000000e+00> : vector<8x128xf32>
    %106 = tpu.matmul %103, %105, %cst_78 {dimension_numbers = #tpu.dot_dimension_numbers<[1], [0], [0], [1], [0, 0, 1, 1], [], []>} : vector<8x128xf32>, vector<128x128xf32>, vector<8x128xf32> -> vector<8x128xf32>
    %107 = arith.addf %102, %106 : vector<8x128xf32>
    %108 = vector.extract_strided_slice %58 {offsets = [80, 0], sizes = [8, 128], strides = [1, 1]} : vector<128x128xf32> to vector<8x128xf32>
    %c10 = arith.constant 10 : index
    %c0_79 = arith.constant 0 : index
    %c0_80 = arith.constant 0 : index
    %109 = vector.load %arg6[%c10, %c0_79, %c0_80] : memref<16x128x128xf32, #tpu.memory_space<vmem>>, vector<1x128x128xf32>
    %110 = vector.shape_cast %109 : vector<1x128x128xf32> to vector<128x128xf32>
    %cst_81 = arith.constant dense<0.000000e+00> : vector<8x128xf32>
    %111 = tpu.matmul %108, %110, %cst_81 {dimension_numbers = #tpu.dot_dimension_numbers<[1], [0], [0], [1], [0, 0, 1, 1], [], []>} : vector<8x128xf32>, vector<128x128xf32>, vector<8x128xf32> -> vector<8x128xf32>
    %112 = arith.addf %107, %111 : vector<8x128xf32>
    %113 = vector.extract_strided_slice %58 {offsets = [88, 0], sizes = [8, 128], strides = [1, 1]} : vector<128x128xf32> to vector<8x128xf32>
    %c11 = arith.constant 11 : index
    %c0_82 = arith.constant 0 : index
    %c0_83 = arith.constant 0 : index
    %114 = vector.load %arg6[%c11, %c0_82, %c0_83] : memref<16x128x128xf32, #tpu.memory_space<vmem>>, vector<1x128x128xf32>
    %115 = vector.shape_cast %114 : vector<1x128x128xf32> to vector<128x128xf32>
    %cst_84 = arith.constant dense<0.000000e+00> : vector<8x128xf32>
    %116 = tpu.matmul %113, %115, %cst_84 {dimension_numbers = #tpu.dot_dimension_numbers<[1], [0], [0], [1], [0, 0, 1, 1], [], []>} : vector<8x128xf32>, vector<128x128xf32>, vector<8x128xf32> -> vector<8x128xf32>
    %117 = arith.addf %112, %116 : vector<8x128xf32>
    %118 = vector.extract_strided_slice %58 {offsets = [96, 0], sizes = [8, 128], strides = [1, 1]} : vector<128x128xf32> to vector<8x128xf32>
    %c12 = arith.constant 12 : index
    %c0_85 = arith.constant 0 : index
    %c0_86 = arith.constant 0 : index
    %119 = vector.load %arg6[%c12, %c0_85, %c0_86] : memref<16x128x128xf32, #tpu.memory_space<vmem>>, vector<1x128x128xf32>
    %120 = vector.shape_cast %119 : vector<1x128x128xf32> to vector<128x128xf32>
    %cst_87 = arith.constant dense<0.000000e+00> : vector<8x128xf32>
    %121 = tpu.matmul %118, %120, %cst_87 {dimension_numbers = #tpu.dot_dimension_numbers<[1], [0], [0], [1], [0, 0, 1, 1], [], []>} : vector<8x128xf32>, vector<128x128xf32>, vector<8x128xf32> -> vector<8x128xf32>
    %122 = arith.addf %117, %121 : vector<8x128xf32>
    %123 = vector.extract_strided_slice %58 {offsets = [104, 0], sizes = [8, 128], strides = [1, 1]} : vector<128x128xf32> to vector<8x128xf32>
    %c13 = arith.constant 13 : index
    %c0_88 = arith.constant 0 : index
    %c0_89 = arith.constant 0 : index
    %124 = vector.load %arg6[%c13, %c0_88, %c0_89] : memref<16x128x128xf32, #tpu.memory_space<vmem>>, vector<1x128x128xf32>
    %125 = vector.shape_cast %124 : vector<1x128x128xf32> to vector<128x128xf32>
    %cst_90 = arith.constant dense<0.000000e+00> : vector<8x128xf32>
    %126 = tpu.matmul %123, %125, %cst_90 {dimension_numbers = #tpu.dot_dimension_numbers<[1], [0], [0], [1], [0, 0, 1, 1], [], []>} : vector<8x128xf32>, vector<128x128xf32>, vector<8x128xf32> -> vector<8x128xf32>
    %127 = arith.addf %122, %126 : vector<8x128xf32>
    %128 = vector.extract_strided_slice %58 {offsets = [112, 0], sizes = [8, 128], strides = [1, 1]} : vector<128x128xf32> to vector<8x128xf32>
    %c14 = arith.constant 14 : index
    %c0_91 = arith.constant 0 : index
    %c0_92 = arith.constant 0 : index
    %129 = vector.load %arg6[%c14, %c0_91, %c0_92] : memref<16x128x128xf32, #tpu.memory_space<vmem>>, vector<1x128x128xf32>
    %130 = vector.shape_cast %129 : vector<1x128x128xf32> to vector<128x128xf32>
    %cst_93 = arith.constant dense<0.000000e+00> : vector<8x128xf32>
    %131 = tpu.matmul %128, %130, %cst_93 {dimension_numbers = #tpu.dot_dimension_numbers<[1], [0], [0], [1], [0, 0, 1, 1], [], []>} : vector<8x128xf32>, vector<128x128xf32>, vector<8x128xf32> -> vector<8x128xf32>
    %132 = arith.addf %127, %131 : vector<8x128xf32>
    %133 = vector.extract_strided_slice %58 {offsets = [120, 0], sizes = [8, 128], strides = [1, 1]} : vector<128x128xf32> to vector<8x128xf32>
    %c15 = arith.constant 15 : index
    %c0_94 = arith.constant 0 : index
    %c0_95 = arith.constant 0 : index
    %134 = vector.load %arg6[%c15, %c0_94, %c0_95] : memref<16x128x128xf32, #tpu.memory_space<vmem>>, vector<1x128x128xf32>
    %135 = vector.shape_cast %134 : vector<1x128x128xf32> to vector<128x128xf32>
    %cst_96 = arith.constant dense<0.000000e+00> : vector<8x128xf32>
    %136 = tpu.matmul %133, %135, %cst_96 {dimension_numbers = #tpu.dot_dimension_numbers<[1], [0], [0], [1], [0, 0, 1, 1], [], []>} : vector<8x128xf32>, vector<128x128xf32>, vector<8x128xf32> -> vector<8x128xf32>
    %137 = arith.addf %132, %136 : vector<8x128xf32>
    %c0_97 = arith.constant 0 : index
    %c0_98 = arith.constant 0 : index
    %138 = vector.load %arg7[%c0_97, %c0_98] : memref<1x128xf32, #tpu.memory_space<vmem>>, vector<1x128xf32>
    %139 = vector.broadcast %138 : vector<1x128xf32> to vector<8x128xf32>
    %140 = arith.addf %137, %139 : vector<8x128xf32>
    %c0_99 = arith.constant 0 : index
    %c0_100 = arith.constant 0 : index
    %141 = vector.load %arg8[%c0_99, %c0_100] : memref<8x128xf32, #tpu.memory_space<vmem>>, vector<8x128xf32>
    tpu.vector_store %arg8[%c0_99, %c0_100], %140 {strides = array<i32>} : memref<8x128xf32, #tpu.memory_space<vmem>>, vector<8x128xf32>,
    return
  }
}

</mosaic_0001>

<bundles_post_ra>
// kernel: rgbd_triplet_forward.1
= control target key start
LH: loop header
LB: loop body
LE: loop exit
PB: predicated region body
PF: predicated region fallthrough
CT: control target
= control target key end

     0   :  { %vm8968_vm0 = vmmov 0   ;;  %s12523_s1 = inlined_call_operand.vmem [shape: f32[128,128], index: 1, kind: input, shape index: {}]   ;;  %s12524_s0 = inlined_call_operand.vmem [shape: f32[384,128], index: 0, kind: input, shape index: {}]   ;;  %s12525_s3 = inlined_call_operand.vmem [shape: f32[1152,384], index: 3, kind: input, shape index: {}]   ;;  %s12526_s2 = inlined_call_operand.vmem [shape: f32[1,128], index: 2, kind: input, shape index: {}]   ;;  %s12527_s4 = inlined_call_operand.vmem [shape: f32[9,128,128], index: 4, kind: input, shape index: {}]   ;;  %s12528_s6 = inlined_call_operand.vmem [shape: f32[16,128,128], index: 6, kind: input, shape index: {}]   ;;  %s12529_s5 = inlined_call_operand.vmem [shape: f32[1,128], index: 5, kind: input, shape index: {}]   ;;  %s12530_s7 = inlined_call_operand.vmem [shape: f32[1,128], index: 7, kind: input, shape index: {}]   ;;  %s12531_s8 = inlined_call_operand.vmem [shape: f32[8,128], index: 8, kind: output, shape index: {}]  }
   0x1   :  { %v77_v0 = vld [vmem:[%s12523_s1] sm:$0xff]  ;;  %v78_v1 = vld [vmem:[%s12523_s1 + $0x8] sm:$0xff]  ;;  %v79_v2 = vld [vmem:[%s12523_s1 + $0x10] sm:$0xff] }
   0x2   :  { %v8052_v3 = vpack.c.bf16 %v78_v1, %v77_v0  ;;  %v80_v4 = vld [vmem:[%s12523_s1 + $0x18] sm:$0xff]  ;;  %v81_v6 = vld [vmem:[%s12523_s1 + $0x20] sm:$0xff]  ;;  %v82_v7 = vld [vmem:[%s12523_s1 + $0x28] sm:$0xff] }
   0x3   :  { %v8056_v5 = vpack.c.bf16 %v80_v4, %v79_v2  ;;  %v8060_v8 = vpack.c.bf16 %v82_v7, %v81_v6  ;;  %v29_v9 = vld [vmem:[%s12524_s0] sm:$0xff]  ;;  %v83_v10 = vld [vmem:[%s12523_s1 + $0x30] sm:$0xff]  ;;  %v84_v11 = vld [vmem:[%s12523_s1 + $0x38] sm:$0xff] }
   0x4   :  { %8053 = vmatprep.subr.bf16.mxu0 %v8052_v3  ;;  %6668 = vmatprep.mubr.f32.mxu0 %v29_v9  ;;  %v8064_v12 = vpack.c.bf16 %v84_v11, %v83_v10  ;;  %v85_v13 = vld [vmem:[%s12523_s1 + $0x40] sm:$0xff]  ;;  %v86_v14 = vld [vmem:[%s12523_s1 + $0x48] sm:$0xff]  ;;  %v87_v16 = vld [vmem:[%s12523_s1 + $0x50] sm:$0xff] }
   0x5   :  { %8055 = vmatpush3.bf16.msra.mxu0 %v8052_v3  ;;  %v8068_v15 = vpack.c.bf16 %v86_v14, %v85_v13  ;;  %v88_v17 = vld [vmem:[%s12523_s1 + $0x58] sm:$0xff]  ;;  %v89_v19 = vld [vmem:[%s12523_s1 + $0x60] sm:$0xff]  ;;  %v90_v20 = vld [vmem:[%s12523_s1 + $0x68] sm:$0xff] }
   0x6   :  { %8057 = vmatprep.subr.bf16.mxu0 %v8056_v5  ;;  %v8072_v18 = vpack.c.bf16 %v88_v17, %v87_v16  ;;  %v8076_v21 = vpack.c.bf16 %v90_v20, %v89_v19  ;;  %v91_v22 = vld [vmem:[%s12523_s1 + $0x70] sm:$0xff]  ;;  %v92_v23 = vld [vmem:[%s12523_s1 + $0x78] sm:$0xff]  ;;  %v30_v25 = vld [vmem:[%s12524_s0 + $0x8] sm:$0xff] }
   0x7   :  { %v8080_v24 = vpack.c.bf16 %v92_v23, %v91_v22  ;;  %v31_v26 = vld [vmem:[%s12524_s0 + $0x10] sm:$0xff]  ;;  %v32_v27 = vld [vmem:[%s12524_s0 + $0x18] sm:$0xff]  ;;  %v33_v28 = vld [vmem:[%s12524_s0 + $0x20] sm:$0xff] }
   0x8   :  { %v34_v29 = vld [vmem:[%s12524_s0 + $0x28] sm:$0xff]  ;;  %v35_v30 = vld [vmem:[%s12524_s0 + $0x30] sm:$0xff]  ;;  %v36_v31 = vld [vmem:[%s12524_s0 + $0x38] sm:$0xff] }
   0x9   :  { %8059 = vmatpush3.bf16.msra.mxu0 %v8056_v5  ;;  %v37_v32 = vld [vmem:[%s12524_s0 + $0x40] sm:$0xff]  ;;  %v38_v33 = vld [vmem:[%s12524_s0 + $0x48] sm:$0xff]  ;;  %v39_v34 = vld [vmem:[%s12524_s0 + $0x50] sm:$0xff] }
   0xa   :  { %8061 = vmatprep.subr.bf16.mxu0 %v8060_v8  ;;  %v40_v35 = vld [vmem:[%s12524_s0 + $0x58] sm:$0xff]  ;;  %v41_v36 = vld [vmem:[%s12524_s0 + $0x60] sm:$0xff]  ;;  %v42_v37 = vld [vmem:[%s12524_s0 + $0x68] sm:$0xff] }
   0xb   :  { %v43_v38 = vld [vmem:[%s12524_s0 + $0x70] sm:$0xff]  ;;  %v44_v39 = vld [vmem:[%s12524_s0 + $0x78] sm:$0xff]  ;;  %v45_v40 = vld [vmem:[%s12524_s0 + $0x80] sm:$0xff] }
   0xc   :  { %v46_v41 = vld [vmem:[%s12524_s0 + $0x88] sm:$0xff]  ;;  %v47_v42 = vld [vmem:[%s12524_s0 + $0x90] sm:$0xff]  ;;  %v48_v43 = vld [vmem:[%s12524_s0 + $0x98] sm:$0xff] }
   0xd   :  { %8063 = vmatpush3.bf16.msra.mxu0 %v8060_v8  ;;  %v49_v44 = vld [vmem:[%s12524_s0 + $0xa0] sm:$0xff]  ;;  %v50_v45 = vld [vmem:[%s12524_s0 + $0xa8] sm:$0xff]  ;;  %v51_v46 = vld [vmem:[%s12524_s0 + $0xb0] sm:$0xff]  ;;  %v12532_v8 = vmov 0.0|0.0  }
   0xe   :  { %8065 = vmatprep.subr.bf16.mxu0 %v8064_v12  ;;  %v52_v47 = vld [vmem:[%s12524_s0 + $0xb8] sm:$0xff]  ;;  %v53_v48 = vld [vmem:[%s12524_s0 + $0xc0] sm:$0xff]  ;;  %v54_v49 = vld [vmem:[%s12524_s0 + $0xc8] sm:$0xff]  ;;  %8084 = vmatprep.subr.bf16.mxu1 %v12532_v8 }
   0xf   :  { %v55_v50 = vld [vmem:[%s12524_s0 + $0xd0] sm:$0xff]  ;;  %v56_v51 = vld [vmem:[%s12524_s0 + $0xd8] sm:$0xff]  ;;  %v57_v52 = vld [vmem:[%s12524_s0 + $0xe0] sm:$0xff] }
  0x10   :  { %v58_v53 = vld [vmem:[%s12524_s0 + $0xe8] sm:$0xff]  ;;  %v59_v54 = vld [vmem:[%s12524_s0 + $0xf0] sm:$0xff]  ;;  %v60_v55 = vld [vmem:[%s12524_s0 + $0xf8] sm:$0xff] }
  0x11   :  { %8067 = vmatpush3.bf16.msra.mxu0 %v8064_v12  ;;  %v61_v56 = vld [vmem:[%s12524_s0 + $0x100] sm:$0xff]  ;;  %v62_v57 = vld [vmem:[%s12524_s0 + $0x108] sm:$0xff]  ;;  %v63_v58 = vld [vmem:[%s12524_s0 + $0x110] sm:$0xff] }
  0x12   :  { %8069 = vmatprep.subr.bf16.mxu0 %v8068_v15  ;;  %v64_v59 = vld [vmem:[%s12524_s0 + $0x118] sm:$0xff]  ;;  %v65_v60 = vld [vmem:[%s12524_s0 + $0x120] sm:$0xff]  ;;  %v66_v61 = vld [vmem:[%s12524_s0 + $0x128] sm:$0xff] }
  0x13   :  { %v67_v62 = vld [vmem:[%s12524_s0 + $0x130] sm:$0xff]  ;;  %v68_v63 = vld [vmem:[%s12524_s0 + $0x138] sm:$0xff]  ;;  %v69_v0 = vld [vmem:[%s12524_s0 + $0x140] sm:$0xff] }
  0x14   :  { %v70_v1 = vld [vmem:[%s12524_s0 + $0x148] sm:$0xff]  ;;  %v71_v2 = vld [vmem:[%s12524_s0 + $0x150] sm:$0xff]  ;;  %v72_v3 = vld [vmem:[%s12524_s0 + $0x158] sm:$0xff] }
  0x15   :  { %8071 = vmatpush3.bf16.msra.mxu0 %v8068_v15  ;;  %v73_v4 = vld [vmem:[%s12524_s0 + $0x160] sm:$0xff]  ;;  %v74_v5 = vld [vmem:[%s12524_s0 + $0x168] sm:$0xff]  ;;  %v75_v6 = vld [vmem:[%s12524_s0 + $0x170] sm:$0xff] }
  0x16   :  { %8073 = vmatprep.subr.bf16.mxu0 %v8072_v18  ;;  %v76_v7 = vld [vmem:[%s12524_s0 + $0x178] sm:$0xff]  ;;  %v454_v9 = vld [vmem:[%s12525_s3 + $0x8] sm:$0xff]  ;;  %v455_v10 = vld [vmem:[%s12525_s3 + $0x10] sm:$0xff] }
  0x17   :  { %949 = vmatprep.mubr.f32.mxu1 %v454_v9  ;;  %v9217_v11 = vld [vmem:[%s12526_s2] ss:$0 sm:$0xff] }
  0x19   :  { %8075 = vmatpush3.bf16.msra.mxu0 %v8072_v18 }
  0x1a   :  { %8077 = vmatprep.subr.bf16.mxu0 %v8076_v21 }
  0x1d   :  { %8079 = vmatpush3.bf16.msra.mxu0 %v8076_v21 }
  0x1e   :  { %8081 = vmatprep.subr.bf16.mxu0 %v8080_v24 }
  0x21   :  { %8083 = vmatpush3.bf16.msra.mxu0 %v8080_v24 }
  0x24   :  { %6669 = vmatmul.mubr.f32.vlgmr.msra.gmra.mrb[0].mxu0 %v30_v25 }
  0x25   :  { %6671 = vmatprep.mubr.f32.mxu0 %v31_v26 }
  0x28   :  { %6672 = vmatmul.mubr.f32.gmra.mrb[2].mxu0 %v32_v27 }
  0x29   :  { %6674 = vmatprep.mubr.f32.mxu0 %v33_v28 }
  0x2c   :  { %6675 = vmatmul.mubr.f32.gmra.mrb[4].mxu0 %v34_v29 }
  0x2d   :  { %6677 = vmatprep.mubr.f32.mxu0 %v35_v30 }
  0x30   :  { %6678 = vmatmul.mubr.f32.gmra.mrb[6].mxu0 %v36_v31 }
  0x31   :  { %6680 = vmatprep.mubr.f32.mxu0 %v37_v32 }
  0x34   :  { %6681 = vmatmul.mubr.f32.gmra.mrb[8].mxu0 %v38_v33 }
  0x35   :  { %6683 = vmatprep.mubr.f32.mxu0 %v39_v34 }
  0x38   :  { %6684 = vmatmul.mubr.f32.gmra.mrb[10].mxu0 %v40_v35 }
  0x39   :  { %6686 = vmatprep.mubr.f32.mxu0 %v41_v36 }
  0x3c   :  { %6687 = vmatmul.mubr.f32.gmra.mrb[12].mxu0 %v42_v37 }
  0x3d   :  { %6689 = vmatprep.mubr.f32.mxu0 %v43_v38 }
  0x40   :  { %6690 = vmatmul.mubr.f32.gmra.mrb[14].mxu0 %v44_v39 }
  0x41   :  { %6692 = vmatprep.mubr.f32.mxu0 %v45_v40 }
  0x44   :  { %6693 = vmatmul.mubr.f32.gmra.mrb[16].mxu0 %v46_v41 }
  0x45   :  { %6695 = vmatprep.mubr.f32.mxu0 %v47_v42 }
  0x48   :  { %6696 = vmatmul.mubr.f32.gmra.mrb[18].mxu0 %v48_v43 }
  0x49   :  { %6698 = vmatprep.mubr.f32.mxu0 %v49_v44 }
  0x4c   :  { %6699 = vmatmul.mubr.f32.gmra.mrb[20].mxu0 %v50_v45 }
  0x4d   :  { %6701 = vmatprep.mubr.f32.mxu0 %v51_v46 }
  0x50   :  { %6702 = vmatmul.mubr.f32.gmra.mrb[22].mxu0 %v52_v47 }
  0x51   :  { %6704 = vmatprep.mubr.f32.mxu0 %v53_v48 }
  0x54   :  { %6705 = vmatmul.mubr.f32.gmra.mrb[24].mxu0 %v54_v49 }
  0x55   :  { %6707 = vmatprep.mubr.f32.mxu0 %v55_v50 }
  0x58   :  { %6708 = vmatmul.mubr.f32.gmra.mrb[26].mxu0 %v56_v51 }
  0x59   :  { %6710 = vmatprep.mubr.f32.mxu0 %v57_v52 }
  0x5c   :  { %6711 = vmatmul.mubr.f32.gmra.mrb[28].mxu0 %v58_v53 }
  0x5d   :  { %6713 = vmatprep.mubr.f32.mxu0 %v59_v54 }
  0x60   :  { %6714 = vmatmul.mubr.f32.gmra.mrb[30].mxu0 %v60_v55 }
  0x61   :  { %6716 = vmatprep.mubr.f32.mxu0 %v61_v56 }
  0x64   :  { %6717 = vmatmul.mubr.f32.gmra.mrb[32].mxu0 %v62_v57 }
  0x65   :  { %6719 = vmatprep.mubr.f32.mxu0 %v63_v58 }
  0x68   :  { %6720 = vmatmul.mubr.f32.gmra.mrb[34].mxu0 %v64_v59 }
  0x69   :  { %6722 = vmatprep.mubr.f32.mxu0 %v65_v60 }
  0x6c   :  { %6723 = vmatmul.mubr.f32.gmra.mrb[36].mxu0 %v66_v61 }
  0x6d   :  { %6725 = vmatprep.mubr.f32.mxu0 %v67_v62 }
  0x70   :  { %6726 = vmatmul.mubr.f32.gmra.mrb[38].mxu0 %v68_v63 }
  0x71   :  { %6728 = vmatprep.mubr.f32.mxu0 %v69_v0 }
  0x74   :  { %6729 = vmatmul.mubr.f32.gmra.mrb[40].mxu0 %v70_v1 }
  0x75   :  { %6731 = vmatprep.mubr.f32.mxu0 %v71_v2 }
  0x78   :  { %6732 = vmatmul.mubr.f32.gmra.mrb[42].mxu0 %v72_v3 }
  0x79   :  { %6734 = vmatprep.mubr.f32.mxu0 %v73_v4 }
  0x7c   :  { %6735 = vmatmul.mubr.f32.gmra.mrb[44].mxu0 %v74_v5 }
  0x7d   :  { %6737 = vmatprep.mubr.f32.mxu0 %v75_v6 }
  0x80   :  { %6738 = vmatmul.mubr.f32.gmra.mrb[46].mxu0 %v76_v7 }
  0x81   :  { %6772 = vmatprep.mubr.f32.mxu0 %v455_v10 }
  0xf7   :  { %v6670_v12 = vpop.f32.mrb[0].mxu0 }
  0xf8   :  { %v172_v13 = vadd.f32 %v6670_v12, %v9217_v11  ;;  %v166_v14 = vpop.f32.mrb[1].mxu0 }
  0xf9   :  { %v167_v15 = vadd.f32 %v9217_v11, %v166_v14 }
  0xfa   :  { %v406_v16 = vmax.f32 %v172_v13, 0.0 }
  0xfb   :  { %v405_v17 = vmax.f32 %v167_v15, 0.0  ;;  %v6673_v18 = vpop.f32.mrb[2].mxu0 }
  0xfc   :  { %v182_v19 = vadd.f32 %v6673_v18, %v9217_v11  ;;  %v176_v20 = vpop.f32.mrb[3].mxu0 }
  0xfd   :  { %v177_v21 = vadd.f32 %v9217_v11, %v176_v20  ;;  %v8085_v22 = vpack.c.bf16 %v406_v16, %v405_v17 }
  0xfe   :  { %v408_v23 = vmax.f32 %v182_v19, 0.0 }
  0xff   :  { %v407_v24 = vmax.f32 %v177_v21, 0.0  ;;  %v6676_v25 = vpop.f32.mrb[4].mxu0  ;;  %8086 = vmatpush1.bf16.msra.mxu1 %v8085_v22 }
 0x100   :  { %v192_v26 = vadd.f32 %v6676_v25, %v9217_v11  ;;  %v186_v27 = vpop.f32.mrb[5].mxu0  ;;  %8087 = vmatprep.subr.bf16.mxu1 %v12532_v8 }
 0x101   :  { %v8088_v28 = vpack.c.bf16 %v408_v23, %v407_v24  ;;  %v187_v29 = vadd.f32 %v9217_v11, %v186_v27 }
 0x102   :  { %v410_v30 = vmax.f32 %v192_v26, 0.0 }
 0x103   :  { %v409_v31 = vmax.f32 %v187_v29, 0.0  ;;  %v6679_v32 = vpop.f32.mrb[6].mxu0  ;;  %8089 = vmatpush1.bf16.msra.mxu1 %v8088_v28 }
 0x104   :  { %v202_v33 = vadd.f32 %v6679_v32, %v9217_v11  ;;  %v196_v34 = vpop.f32.mrb[7].mxu0  ;;  %8090 = vmatprep.subr.bf16.mxu1 %v12532_v8 }
 0x105   :  { %v8091_v35 = vpack.c.bf16 %v410_v30, %v409_v31  ;;  %v197_v36 = vadd.f32 %v9217_v11, %v196_v34 }
 0x106   :  { %v412_v37 = vmax.f32 %v202_v33, 0.0 }
 0x107   :  { %v411_v38 = vmax.f32 %v197_v36, 0.0  ;;  %v6682_v39 = vpop.f32.mrb[8].mxu0  ;;  %8092 = vmatpush1.bf16.msra.mxu1 %v8091_v35 }
 0x108   :  { %v212_v40 = vadd.f32 %v6682_v39, %v9217_v11  ;;  %v206_v41 = vpop.f32.mrb[9].mxu0  ;;  %8093 = vmatprep.subr.bf16.mxu1 %v12532_v8 }
 0x109   :  { %v8094_v42 = vpack.c.bf16 %v412_v37, %v411_v38  ;;  %v207_v43 = vadd.f32 %v9217_v11, %v206_v41 }
 0x10a   :  { %v414_v44 = vmax.f32 %v212_v40, 0.0 }
 0x10b   :  { %v413_v45 = vmax.f32 %v207_v43, 0.0  ;;  %v6685_v46 = vpop.f32.mrb[10].mxu0  ;;  %8095 = vmatpush1.bf16.msra.mxu1 %v8094_v42 }
 0x10c   :  { %v222_v47 = vadd.f32 %v6685_v46, %v9217_v11  ;;  %v216_v48 = vpop.f32.mrb[11].mxu0  ;;  %8096 = vmatprep.subr.bf16.mxu1 %v12532_v8 }
 0x10d   :  { %v8097_v49 = vpack.c.bf16 %v414_v44, %v413_v45  ;;  %v217_v50 = vadd.f32 %v9217_v11, %v216_v48 }
 0x10e   :  { %v416_v51 = vmax.f32 %v222_v47, 0.0 }
 0x10f   :  { %v415_v52 = vmax.f32 %v217_v50, 0.0  ;;  %v6688_v53 = vpop.f32.mrb[12].mxu0  ;;  %8098 = vmatpush1.bf16.msra.mxu1 %v8097_v49 }
 0x110   :  { %v232_v54 = vadd.f32 %v6688_v53, %v9217_v11  ;;  %v226_v55 = vpop.f32.mrb[13].mxu0  ;;  %8099 = vmatprep.subr.bf16.mxu1 %v12532_v8 }
 0x111   :  { %v8100_v56 = vpack.c.bf16 %v416_v51, %v415_v52  ;;  %v227_v57 = vadd.f32 %v9217_v11, %v226_v55 }
 0x112   :  { %v418_v58 = vmax.f32 %v232_v54, 0.0 }
 0x113   :  { %v417_v59 = vmax.f32 %v227_v57, 0.0  ;;  %v6691_v60 = vpop.f32.mrb[14].mxu0  ;;  %8101 = vmatpush1.bf16.msra.mxu1 %v8100_v56 }
 0x114   :  { %v242_v61 = vadd.f32 %v6691_v60, %v9217_v11  ;;  %v236_v62 = vpop.f32.mrb[15].mxu0  ;;  %8102 = vmatprep.subr.bf16.mxu1 %v12532_v8 }
 0x115   :  { %v8103_v63 = vpack.c.bf16 %v418_v58, %v417_v59  ;;  %v237_v0 = vadd.f32 %v9217_v11, %v236_v62 }
 0x116   :  { %v420_v1 = vmax.f32 %v242_v61, 0.0 }
 0x117   :  { %v419_v2 = vmax.f32 %v237_v0, 0.0  ;;  %v6694_v3 = vpop.f32.mrb[16].mxu0  ;;  %8104 = vmatpush1.bf16.msra.mxu1 %v8103_v63 }
 0x118   :  { %v252_v4 = vadd.f32 %v6694_v3, %v9217_v11  ;;  %v246_v5 = vpop.f32.mrb[17].mxu0  ;;  %8105 = vmatprep.subr.bf16.mxu1 %v12532_v8 }
 0x119   :  { %v8106_v6 = vpack.c.bf16 %v420_v1, %v419_v2  ;;  %v247_v7 = vadd.f32 %v9217_v11, %v246_v5  ;;  %v453_v5 = vld [vmem:[%s12525_s3] sm:$0xff] }
 0x11a   :  { %v422_v9 = vmax.f32 %v252_v4, 0.0 }
 0x11b   :  { %v421_v10 = vmax.f32 %v247_v7, 0.0  ;;  %v6697_v12 = vpop.f32.mrb[18].mxu0  ;;  %8107 = vmatpush1.bf16.msra.mxu1 %v8106_v6 }
 0x11c   :  { %v262_v13 = vadd.f32 %v6697_v12, %v9217_v11  ;;  %v256_v14 = vpop.f32.mrb[19].mxu0  ;;  %8108 = vmatprep.subr.bf16.mxu1 %v12532_v8 }
 0x11d   :  { %v8109_v15 = vpack.c.bf16 %v422_v9, %v421_v10  ;;  %v257_v16 = vadd.f32 %v9217_v11, %v256_v14  ;;  %v457_v9 = vld [vmem:[%s12525_s3 + $0x20] sm:$0xff] }
 0x11e   :  { %v424_v17 = vmax.f32 %v262_v13, 0.0 }
 0x11f   :  { %v423_v18 = vmax.f32 %v257_v16, 0.0  ;;  %v6700_v19 = vpop.f32.mrb[20].mxu0  ;;  %8110 = vmatpush1.bf16.msra.mxu1 %v8109_v15  ;;  %v456_v16 = vld [vmem:[%s12525_s3 + $0x18] sm:$0xff] }
 0x120   :  { %v272_v20 = vadd.f32 %v6700_v19, %v9217_v11  ;;  %v266_v21 = vpop.f32.mrb[21].mxu0  ;;  %8111 = vmatprep.subr.bf16.mxu1 %v12532_v8  ;;  %v460_v19 = vld [vmem:[%s12525_s3 + $0x38] sm:$0xff] }
 0x121   :  { %v8112_v22 = vpack.c.bf16 %v424_v17, %v423_v18  ;;  %v267_v23 = vadd.f32 %v9217_v11, %v266_v21 }
 0x122   :  { %v426_v24 = vmax.f32 %v272_v20, 0.0 }
 0x123   :  { %v425_v25 = vmax.f32 %v267_v23, 0.0  ;;  %v6703_v26 = vpop.f32.mrb[22].mxu0  ;;  %8113 = vmatpush1.bf16.msra.mxu1 %v8112_v22 }
 0x124   :  { %v282_v27 = vadd.f32 %v6703_v26, %v9217_v11  ;;  %v276_v28 = vpop.f32.mrb[23].mxu0  ;;  %8114 = vmatprep.subr.bf16.mxu1 %v12532_v8 }
 0x125   :  { %v8115_v29 = vpack.c.bf16 %v426_v24, %v425_v25  ;;  %v277_v30 = vadd.f32 %v9217_v11, %v276_v28  ;;  %v459_v25 = vld [vmem:[%s12525_s3 + $0x30] sm:$0xff] }
 0x126   :  { %v428_v31 = vmax.f32 %v282_v27, 0.0  ;;  %v463_v28 = vld [vmem:[%s12525_s3 + $0x50] sm:$0xff] }
 0x127   :  { %v427_v32 = vmax.f32 %v277_v30, 0.0  ;;  %v6706_v33 = vpop.f32.mrb[24].mxu0  ;;  %8116 = vmatpush1.bf16.msra.mxu1 %v8115_v29 }
 0x128   :  { %v292_v34 = vadd.f32 %v6706_v33, %v9217_v11  ;;  %v286_v35 = vpop.f32.mrb[25].mxu0  ;;  %8117 = vmatprep.subr.bf16.mxu1 %v12532_v8 }
 0x129   :  { %v8118_v36 = vpack.c.bf16 %v428_v31, %v427_v32  ;;  %v287_v37 = vadd.f32 %v9217_v11, %v286_v35 }
 0x12a   :  { %v430_v38 = vmax.f32 %v292_v34, 0.0  ;;  %v462_v34 = vld [vmem:[%s12525_s3 + $0x48] sm:$0xff] }
 0x12b   :  { %v429_v39 = vmax.f32 %v287_v37, 0.0  ;;  %v6709_v40 = vpop.f32.mrb[26].mxu0  ;;  %8119 = vmatpush1.bf16.msra.mxu1 %v8118_v36  ;;  %v466_v37 = vld [vmem:[%s12525_s3 + $0x68] sm:$0xff] }
 0x12c   :  { %v302_v41 = vadd.f32 %v6709_v40, %v9217_v11  ;;  %v296_v42 = vpop.f32.mrb[27].mxu0  ;;  %8120 = vmatprep.subr.bf16.mxu1 %v12532_v8 }
 0x12d   :  { %v8121_v43 = vpack.c.bf16 %v430_v38, %v429_v39  ;;  %v297_v44 = vadd.f32 %v9217_v11, %v296_v42 }
 0x12e   :  { %v432_v45 = vmax.f32 %v302_v41, 0.0 }
 0x12f   :  { %v431_v46 = vmax.f32 %v297_v44, 0.0  ;;  %v6712_v47 = vpop.f32.mrb[28].mxu0  ;;  %8122 = vmatpush1.bf16.msra.mxu1 %v8121_v43  ;;  %v465_v43 = vld [vmem:[%s12525_s3 + $0x60] sm:$0xff] }
 0x130   :  { %v312_v48 = vadd.f32 %v6712_v47, %v9217_v11  ;;  %v306_v49 = vpop.f32.mrb[29].mxu0  ;;  %8123 = vmatprep.subr.bf16.mxu1 %v12532_v8 }
 0x131   :  { %v8124_v50 = vpack.c.bf16 %v432_v45, %v431_v46  ;;  %v307_v51 = vadd.f32 %v9217_v11, %v306_v49  ;;  %v469_v46 = vld [vmem:[%s12525_s3 + $0x80] sm:$0xff] }
 0x132   :  { %v434_v52 = vmax.f32 %v312_v48, 0.0 }
 0x133   :  { %v433_v53 = vmax.f32 %v307_v51, 0.0  ;;  %v6715_v54 = vpop.f32.mrb[30].mxu0  ;;  %8125 = vmatpush1.bf16.msra.mxu1 %v8124_v50 }
 0x134   :  { %v322_v55 = vadd.f32 %v6715_v54, %v9217_v11  ;;  %v316_v56 = vpop.f32.mrb[31].mxu0  ;;  %8126 = vmatprep.subr.bf16.mxu1 %v12532_v8 }
 0x135   :  { %v8127_v57 = vpack.c.bf16 %v434_v52, %v433_v53  ;;  %v317_v58 = vadd.f32 %v9217_v11, %v316_v56  ;;  %v468_v52 = vld [vmem:[%s12525_s3 + $0x78] sm:$0xff] }
 0x136   :  { %v436_v59 = vmax.f32 %v322_v55, 0.0  ;;  %v472_v55 = vld [vmem:[%s12525_s3 + $0x98] sm:$0xff] }
 0x137   :  { %v435_v60 = vmax.f32 %v317_v58, 0.0  ;;  %v6718_v61 = vpop.f32.mrb[32].mxu0  ;;  %8128 = vmatpush1.bf16.msra.mxu1 %v8127_v57 }
 0x138   :  { %v332_v62 = vadd.f32 %v6718_v61, %v9217_v11  ;;  %v326_v63 = vpop.f32.mrb[33].mxu0  ;;  %8129 = vmatprep.subr.bf16.mxu1 %v12532_v8  ;;  %v471_v61 = vld [vmem:[%s12525_s3 + $0x90] sm:$0xff] }
 0x139   :  { %v8130_v0 = vpack.c.bf16 %v436_v59, %v435_v60  ;;  %v327_v1 = vadd.f32 %v9217_v11, %v326_v63 }
 0x13a   :  { %v438_v2 = vmax.f32 %v332_v62, 0.0 }
 0x13b   :  { %v437_v3 = vmax.f32 %v327_v1, 0.0  ;;  %v6721_v4 = vpop.f32.mrb[34].mxu0  ;;  %8131 = vmatpush1.bf16.msra.mxu1 %v8130_v0  ;;  %v475_v0 = vld [vmem:[%s12525_s3 + $0xb0] sm:$0xff] }
 0x13c   :  { %v342_v6 = vadd.f32 %v6721_v4, %v9217_v11  ;;  %v336_v7 = vpop.f32.mrb[35].mxu0  ;;  %8452 = vmatprep.subr.bf16.mxu1 %v12532_v8 }
 0x13d   :  { %v8132_v10 = vpack.c.bf16 %v438_v2, %v437_v3  ;;  %v337_v12 = vadd.f32 %v9217_v11, %v336_v7 }
 0x13e   :  { %v440_v13 = vmax.f32 %v342_v6, 0.0  ;;  %950 = vmatmul.mubr.f32.vlgmr.msra.gmra.mrb[0].mxu1 %v453_v5  ;;  %v474_v5 = vld [vmem:[%s12525_s3 + $0xa8] sm:$0xff] }
 0x13f   :  { %v439_v14 = vmax.f32 %v337_v12, 0.0  ;;  %v6724_v15 = vpop.f32.mrb[36].mxu0  ;;  %8133 = vmatprep.subr.bf16.mxu0 %v8132_v10  ;;  %954 = vmatprep.mubr.f32.mxu1 %v457_v9  ;;  %v478_v6 = vld [vmem:[%s12525_s3 + $0xc8] sm:$0xff]  ;;  %v461_v12 = vld [vmem:[%s12525_s3 + $0x40] sm:$0xff] }
 0x140   :  { %v352_v17 = vadd.f32 %v6724_v15, %v9217_v11  ;;  %v346_v18 = vpop.f32.mrb[37].mxu0  ;;  %8135 = vmatpush3.bf16.msra.mxu0 %v8132_v10  ;;  %v458_v9 = vld [vmem:[%s12525_s3 + $0x28] sm:$0xff]  ;;  %v481_v10 = vld [vmem:[%s12525_s3 + $0xe0] sm:$0xff]  ;;  %v484_v15 = vld [vmem:[%s12525_s3 + $0xf8] sm:$0xff] }
 0x141   :  { %v8136_v20 = vpack.c.bf16 %v440_v13, %v439_v14  ;;  %v347_v21 = vadd.f32 %v9217_v11, %v346_v18  ;;  %v480_v13 = vld [vmem:[%s12525_s3 + $0xd8] sm:$0xff]  ;;  %v470_v18 = vld [vmem:[%s12525_s3 + $0x88] sm:$0xff] }
 0x142   :  { %v442_v22 = vmax.f32 %v352_v17, 0.0  ;;  %955 = vmatmul.mubr.f32.gmra.mrb[2].mxu1 %v456_v16  ;;  %v464_v14 = vld [vmem:[%s12525_s3 + $0x58] sm:$0xff]  ;;  %v467_v16 = vld [vmem:[%s12525_s3 + $0x70] sm:$0xff] }
 0x143   :  { %v441_v23 = vmax.f32 %v347_v21, 0.0  ;;  %v6727_v24 = vpop.f32.mrb[38].mxu0  ;;  %8137 = vmatprep.subr.bf16.mxu0 %v8136_v20  ;;  %959 = vmatprep.mubr.f32.mxu1 %v460_v19  ;;  %v483_v17 = vld [vmem:[%s12525_s3 + $0xf0] sm:$0xff]  ;;  %v486_v21 = vld [vmem:[%s12525_s3 + $0x108] sm:$0xff] }
 0x144   :  { %v362_v26 = vadd.f32 %v6727_v24, %v9217_v11  ;;  %v356_v27 = vpop.f32.mrb[39].mxu0  ;;  %8139 = vmatpush3.bf16.msra.mxu0 %v8136_v20  ;;  %v487_v19 = vld [vmem:[%s12525_s3 + $0x110] sm:$0xff]  ;;  %v473_v20 = vld [vmem:[%s12525_s3 + $0xa0] sm:$0xff] }
 0x145   :  { %v8140_v29 = vpack.c.bf16 %v442_v22, %v441_v23  ;;  %v357_v30 = vadd.f32 %v9217_v11, %v356_v27  ;;  %v476_v22 = vld [vmem:[%s12525_s3 + $0xb8] sm:$0xff]  ;;  %v490_v23 = vld [vmem:[%s12525_s3 + $0x128] sm:$0xff]  ;;  %v479_v24 = vld [vmem:[%s12525_s3 + $0xd0] sm:$0xff] }
 0x146   :  { %v444_v31 = vmax.f32 %v362_v26, 0.0  ;;  %960 = vmatmul.mubr.f32.gmra.mrb[4].mxu1 %v459_v25  ;;  %v489_v25 = vld [vmem:[%s12525_s3 + $0x120] sm:$0xff]  ;;  %v482_v26 = vld [vmem:[%s12525_s3 + $0xe8] sm:$0xff] }
 0x147   :  { %v443_v32 = vmax.f32 %v357_v30, 0.0  ;;  %v6730_v33 = vpop.f32.mrb[40].mxu0  ;;  %8141 = vmatprep.subr.bf16.mxu0 %v8140_v29  ;;  %964 = vmatprep.mubr.f32.mxu1 %v463_v28  ;;  %v493_v27 = vld [vmem:[%s12525_s3 + $0x140] sm:$0xff]  ;;  %v488_v30 = vld [vmem:[%s12525_s3 + $0x118] sm:$0xff] }
 0x148   :  { %v372_v35 = vadd.f32 %v6730_v33, %v9217_v11  ;;  %v366_v36 = vpop.f32.mrb[41].mxu0  ;;  %8143 = vmatpush3.bf16.msra.mxu0 %v8140_v29  ;;  %v485_v28 = vld [vmem:[%s12525_s3 + $0x100] sm:$0xff]  ;;  %v492_v29 = vld [vmem:[%s12525_s3 + $0x138] sm:$0xff]  ;;  %v495_v33 = vld [vmem:[%s12525_s3 + $0x150] sm:$0xff] }
 0x149   :  { %v8144_v38 = vpack.c.bf16 %v444_v31, %v443_v32  ;;  %v367_v39 = vadd.f32 %v9217_v11, %v366_v36  ;;  %v496_v31 = vld [vmem:[%s12525_s3 + $0x158] sm:$0xff]  ;;  %v491_v32 = vld [vmem:[%s12525_s3 + $0x130] sm:$0xff]  ;;  %v497_v36 = vld [vmem:[%s12525_s3 + $0x160] sm:$0xff] }
 0x14a   :  { %v446_v40 = vmax.f32 %v372_v35, 0.0  ;;  %965 = vmatmul.mubr.f32.gmra.mrb[6].mxu1 %v462_v34  ;;  %v494_v34 = vld [vmem:[%s12525_s3 + $0x148] sm:$0xff]  ;;  %v499_v35 = vld [vmem:[%s12525_s3 + $0x170] sm:$0xff] }
 0x14b   :  { %v445_v41 = vmax.f32 %v367_v39, 0.0  ;;  %v6733_v42 = vpop.f32.mrb[42].mxu0  ;;  %8145 = vmatprep.subr.bf16.mxu0 %v8144_v38  ;;  %969 = vmatprep.mubr.f32.mxu1 %v466_v37  ;;  %v498_v37 = vld [vmem:[%s12525_s3 + $0x168] sm:$0xff] }
 0x14c   :  { %v382_v44 = vadd.f32 %v6733_v42, %v9217_v11  ;;  %v376_v45 = vpop.f32.mrb[43].mxu0  ;;  %8147 = vmatpush3.bf16.msra.mxu0 %v8144_v38  ;;  %v500_v38 = vld [vmem:[%s12525_s3 + $0x178] sm:$0xff]  ;;  %v502_v39 = vld [vmem:[%s12525_s3 + $0x188] sm:$0xff]  ;;  %v503_v42 = vld [vmem:[%s12525_s3 + $0x190] sm:$0xff] }
 0x14d   :  { %v8148_v47 = vpack.c.bf16 %v446_v40, %v445_v41  ;;  %v377_v48 = vadd.f32 %v9217_v11, %v376_v45  ;;  %v5482_v40 = vld [vmem:[%s12527_s4 + $0x80] sm:$0xff]  ;;  %v5483_v41 = vld [vmem:[%s12527_s4 + $0x88] sm:$0xff] }
 0x14e   :  { %v448_v49 = vmax.f32 %v382_v44, 0.0  ;;  %970 = vmatmul.mubr.f32.gmra.mrb[8].mxu1 %v465_v43  ;;  %v8164_v43 = vpack.c.bf16 %v5483_v41, %v5482_v40  ;;  %v501_v44 = vld [vmem:[%s12525_s3 + $0x180] sm:$0xff]  ;;  %v506_v45 = vld [vmem:[%s12525_s3 + $0x1a8] sm:$0xff]  ;;  %v543_v40 = vld [vmem:[%s12525_s3 + $0x2d0] sm:$0xff] }
 0x14f   :  { %v447_v50 = vmax.f32 %v377_v48, 0.0  ;;  %v6736_v51 = vpop.f32.mrb[44].mxu0  ;;  %8149 = vmatprep.subr.bf16.mxu0 %v8148_v47  ;;  %974 = vmatprep.mubr.f32.mxu1 %v469_v46  ;;  %v505_v46 = vld [vmem:[%s12525_s3 + $0x1a0] sm:$0xff]  ;;  %v504_v48 = vld [vmem:[%s12525_s3 + $0x198] sm:$0xff]  ;;  %v590_v41 = vld [vmem:[%s12525_s3 + $0x448] sm:$0xff] }
 0x150   :  { %v392_v53 = vadd.f32 %v6736_v51, %v9217_v11  ;;  %v386_v54 = vpop.f32.mrb[45].mxu0  ;;  %8151 = vmatpush3.bf16.msra.mxu0 %v8148_v47  ;;  %v509_v47 = vld [vmem:[%s12525_s3 + $0x1c0] sm:$0xff]  ;;  %v515_v51 = vld [vmem:[%s12525_s3 + $0x1f0] sm:$0xff] }
 0x151   :  { %v8152_v56 = vpack.c.bf16 %v448_v49, %v447_v50  ;;  %v387_v57 = vadd.f32 %v9217_v11, %v386_v54  ;;  %v512_v49 = vld [vmem:[%s12525_s3 + $0x1d8] sm:$0xff]  ;;  %v511_v54 = vld [vmem:[%s12525_s3 + $0x1d0] sm:$0xff] }
 0x152   :  { %v450_v58 = vmax.f32 %v392_v53, 0.0  ;;  %975 = vmatmul.mubr.f32.gmra.mrb[10].mxu1 %v468_v52  ;;  %v508_v50 = vld [vmem:[%s12525_s3 + $0x1b8] sm:$0xff]  ;;  %v507_v52 = vld [vmem:[%s12525_s3 + $0x1b0] sm:$0xff]  ;;  %v518_v53 = vld [vmem:[%s12525_s3 + $0x208] sm:$0xff] }
 0x153   :  { %v449_v59 = vmax.f32 %v387_v57, 0.0  ;;  %v6739_v60 = vpop.f32.mrb[46].mxu0  ;;  %8153 = vmatprep.subr.bf16.mxu0 %v8152_v56  ;;  %979 = vmatprep.mubr.f32.mxu1 %v472_v55  ;;  %v521_v55 = vld [vmem:[%s12525_s3 + $0x220] sm:$0xff]  ;;  %v524_v57 = vld [vmem:[%s12525_s3 + $0x238] sm:$0xff] }
 0x154   :  { %v402_v62 = vadd.f32 %v6739_v60, %v9217_v11  ;;  %v396_v63 = vpop.f32.mrb[47].mxu0  ;;  %8155 = vmatpush3.bf16.msra.mxu0 %v8152_v56  ;;  %v510_v56 = vld [vmem:[%s12525_s3 + $0x1c8] sm:$0xff]  ;;  %v513_v60 = vld [vmem:[%s12525_s3 + $0x1e0] sm:$0xff] }
 0x155   :  { %v8156_v1 = vpack.c.bf16 %v450_v58, %v449_v59  ;;  %v397_v2 = vadd.f32 %v9217_v11, %v396_v63  ;;  %v477_v11 = vld [vmem:[%s12525_s3 + $0xc0] sm:$0xff]  ;;  %v514_v58 = vld [vmem:[%s12525_s3 + $0x1e8] sm:$0xff]  ;;  %v527_v59 = vld [vmem:[%s12525_s3 + $0x250] sm:$0xff] }
 0x156   :  { %v452_v3 = vmax.f32 %v402_v62, 0.0  ;;  %980 = vmatmul.mubr.f32.gmra.mrb[12].mxu1 %v471_v61  ;;  %v530_v61 = vld [vmem:[%s12525_s3 + $0x268] sm:$0xff]  ;;  %v517_v62 = vld [vmem:[%s12525_s3 + $0x200] sm:$0xff] }
 0x157   :  { %v451_v4 = vmax.f32 %v397_v2, 0.0  ;;  %8157 = vmatprep.subr.bf16.mxu0 %v8156_v1  ;;  %984 = vmatprep.mubr.f32.mxu1 %v475_v0  ;;  %v533_v63 = vld [vmem:[%s12525_s3 + $0x280] sm:$0xff]  ;;  %v516_v0 = vld [vmem:[%s12525_s3 + $0x1f8] sm:$0xff] }
 0x158   :  { %8159 = vmatpush3.bf16.msra.mxu0 %v8156_v1  ;;  %v536_v1 = vld [vmem:[%s12525_s3 + $0x298] sm:$0xff] }
 0x159   :  { %v8160_v7 = vpack.c.bf16 %v452_v3, %v451_v4  ;;  %v520_v2 = vld [vmem:[%s12525_s3 + $0x218] sm:$0xff]  ;;  %v539_v3 = vld [vmem:[%s12525_s3 + $0x2b0] sm:$0xff] }
 0x15a   :  { %985 = vmatmul.mubr.f32.gmra.mrb[14].mxu1 %v474_v5  ;;  %v519_v4 = vld [vmem:[%s12525_s3 + $0x210] sm:$0xff]  ;;  %v542_v5 = vld [vmem:[%s12525_s3 + $0x2c8] sm:$0xff] }
 0x15b   :  { %8161 = vmatprep.subr.bf16.mxu0 %v8160_v7  ;;  %989 = vmatprep.mubr.f32.mxu1 %v478_v6  ;;  %v523_v6 = vld [vmem:[%s12525_s3 + $0x230] sm:$0xff] }
 0x15c   :  { %8163 = vmatpush3.bf16.msra.mxu0 %v8160_v7  ;;  %v545_v7 = vld [vmem:[%s12525_s3 + $0x2e0] sm:$0xff] }
 0x15d   :  { %8165 = vmatprep.subr.bf16.mxu0 %v8164_v43 }
 0x15e   :  { %990 = vmatmul.mubr.f32.gmra.mrb[16].mxu1 %v477_v11  ;;  %v522_v11 = vld [vmem:[%s12525_s3 + $0x228] sm:$0xff] }
 0x15f   :  { %6773 = vmatmul.mubr.f32.vlgmr.msra.gmra.mrb[48].mxu0 %v458_v9  ;;  %994 = vmatprep.mubr.f32.mxu1 %v481_v10  ;;  %v548_v9 = vld [vmem:[%s12525_s3 + $0x2f8] sm:$0xff]  ;;  %v526_v10 = vld [vmem:[%s12525_s3 + $0x248] sm:$0xff] }
 0x160   :  { %6775 = vmatprep.mubr.f32.mxu0 %v461_v12  ;;  %8167 = vmatpush3.bf16.msra.mxu0 %v8164_v43  ;;  %v551_v12 = vld [vmem:[%s12525_s3 + $0x310] sm:$0xff]  ;;  %v593_v43 = vld [vmem:[%s12525_s3 + $0x460] sm:$0xff] }
 0x162   :  { %995 = vmatmul.mubr.f32.gmra.mrb[18].mxu1 %v480_v13  ;;  %v525_v13 = vld [vmem:[%s12525_s3 + $0x240] sm:$0xff] }
 0x163   :  { %6776 = vmatmul.mubr.f32.gmra.mrb[50].mxu0 %v464_v14  ;;  %999 = vmatprep.mubr.f32.mxu1 %v484_v15  ;;  %v5484_v14 = vld [vmem:[%s12527_s4 + $0x90] sm:$0xff]  ;;  %v5485_v15 = vld [vmem:[%s12527_s4 + $0x98] sm:$0xff] }
 0x164   :  { %6778 = vmatprep.mubr.f32.mxu0 %v467_v16  ;;  %v554_v16 = vld [vmem:[%s12525_s3 + $0x328] sm:$0xff] }
 0x166   :  { %1000 = vmatmul.mubr.f32.gmra.mrb[20].mxu1 %v483_v17  ;;  %v529_v17 = vld [vmem:[%s12525_s3 + $0x260] sm:$0xff] }
 0x167   :  { %6779 = vmatmul.mubr.f32.gmra.mrb[52].mxu0 %v470_v18  ;;  %1004 = vmatprep.mubr.f32.mxu1 %v487_v19  ;;  %v8168_v18 = vpack.c.bf16 %v5485_v15, %v5484_v14  ;;  %v557_v19 = vld [vmem:[%s12525_s3 + $0x340] sm:$0xff]  ;;  %v571_v14 = vld [vmem:[%s12525_s3 + $0x3b0] sm:$0xff] }
 0x168   :  { %6781 = vmatprep.mubr.f32.mxu0 %v473_v20  ;;  %v528_v20 = vld [vmem:[%s12525_s3 + $0x258] sm:$0xff]  ;;  %v641_v15 = vld [vmem:[%s12525_s3 + $0x5e0] sm:$0xff] }
 0x169   :  { %8169 = vmatprep.subr.bf16.mxu0 %v8168_v18 }
 0x16a   :  { %1005 = vmatmul.mubr.f32.gmra.mrb[22].mxu1 %v486_v21  ;;  %v560_v21 = vld [vmem:[%s12525_s3 + $0x358] sm:$0xff]  ;;  %8171 = vmatpush3.bf16.msra.mxu0 %v8168_v18  ;;  %v574_v18 = vld [vmem:[%s12525_s3 + $0x3c8] sm:$0xff] }
 0x16b   :  { %6782 = vmatmul.mubr.f32.gmra.mrb[54].mxu0 %v476_v22  ;;  %1009 = vmatprep.mubr.f32.mxu1 %v490_v23  ;;  %v532_v22 = vld [vmem:[%s12525_s3 + $0x278] sm:$0xff]  ;;  %v563_v23 = vld [vmem:[%s12525_s3 + $0x370] sm:$0xff] }
 0x16c   :  { %6784 = vmatprep.mubr.f32.mxu0 %v479_v24  ;;  %v531_v24 = vld [vmem:[%s12525_s3 + $0x270] sm:$0xff] }
 0x16e   :  { %1010 = vmatmul.mubr.f32.gmra.mrb[24].mxu1 %v489_v25  ;;  %v566_v25 = vld [vmem:[%s12525_s3 + $0x388] sm:$0xff] }
 0x16f   :  { %6785 = vmatmul.mubr.f32.gmra.mrb[56].mxu0 %v482_v26  ;;  %1014 = vmatprep.mubr.f32.mxu1 %v493_v27  ;;  %v535_v26 = vld [vmem:[%s12525_s3 + $0x290] sm:$0xff]  ;;  %v569_v27 = vld [vmem:[%s12525_s3 + $0x3a0] sm:$0xff] }
 0x170   :  { %6787 = vmatprep.mubr.f32.mxu0 %v485_v28  ;;  %v534_v28 = vld [vmem:[%s12525_s3 + $0x288] sm:$0xff] }
 0x172   :  { %1015 = vmatmul.mubr.f32.gmra.mrb[26].mxu1 %v492_v29  ;;  %v572_v29 = vld [vmem:[%s12525_s3 + $0x3b8] sm:$0xff] }
 0x173   :  { %6788 = vmatmul.mubr.f32.gmra.mrb[58].mxu0 %v488_v30  ;;  %1019 = vmatprep.mubr.f32.mxu1 %v496_v31  ;;  %v538_v30 = vld [vmem:[%s12525_s3 + $0x2a8] sm:$0xff]  ;;  %v575_v31 = vld [vmem:[%s12525_s3 + $0x3d0] sm:$0xff] }
 0x174   :  { %6790 = vmatprep.mubr.f32.mxu0 %v491_v32  ;;  %v537_v32 = vld [vmem:[%s12525_s3 + $0x2a0] sm:$0xff] }
 0x176   :  { %1020 = vmatmul.mubr.f32.gmra.mrb[28].mxu1 %v495_v33  ;;  %v578_v33 = vld [vmem:[%s12525_s3 + $0x3e8] sm:$0xff] }
 0x177   :  { %6791 = vmatmul.mubr.f32.gmra.mrb[60].mxu0 %v494_v34  ;;  %1024 = vmatprep.mubr.f32.mxu1 %v499_v35  ;;  %v541_v34 = vld [vmem:[%s12525_s3 + $0x2c0] sm:$0xff] }
 0x178   :  { %6793 = vmatprep.mubr.f32.mxu0 %v497_v36  ;;  %v581_v35 = vld [vmem:[%s12525_s3 + $0x400] sm:$0xff]  ;;  %v540_v36 = vld [vmem:[%s12525_s3 + $0x2b8] sm:$0xff] }
 0x17a   :  { %1025 = vmatmul.mubr.f32.gmra.mrb[30].mxu1 %v498_v37  ;;  %v584_v37 = vld [vmem:[%s12525_s3 + $0x418] sm:$0xff] }
 0x17b   :  { %6794 = vmatmul.mubr.f32.gmra.mrb[62].mxu0 %v500_v38  ;;  %1029 = vmatprep.mubr.f32.mxu1 %v502_v39  ;;  %v544_v38 = vld [vmem:[%s12525_s3 + $0x2d8] sm:$0xff]  ;;  %v587_v39 = vld [vmem:[%s12525_s3 + $0x430] sm:$0xff] }
 0x17c   :  { %6796 = vmatprep.mubr.f32.mxu0 %v503_v42  ;;  %v547_v42 = vld [vmem:[%s12525_s3 + $0x2f0] sm:$0xff] }
 0x17e   :  { %1030 = vmatmul.mubr.f32.gmra.mrb[32].mxu1 %v501_v44  ;;  %v546_v44 = vld [vmem:[%s12525_s3 + $0x2e8] sm:$0xff] }
 0x17f   :  { %6797 = vmatmul.mubr.f32.gmra.mrb[64].mxu0 %v506_v45  ;;  %1034 = vmatprep.mubr.f32.mxu1 %v505_v46  ;;  %v596_v45 = vld [vmem:[%s12525_s3 + $0x478] sm:$0xff]  ;;  %v550_v46 = vld [vmem:[%s12525_s3 + $0x308] sm:$0xff] }
 0x180   :  { %6799 = vmatprep.mubr.f32.mxu0 %v509_v47  ;;  %v599_v47 = vld [vmem:[%s12525_s3 + $0x490] sm:$0xff] }
 0x182   :  { %1035 = vmatmul.mubr.f32.gmra.mrb[34].mxu1 %v504_v48  ;;  %v549_v48 = vld [vmem:[%s12525_s3 + $0x300] sm:$0xff] }
 0x183   :  { %6800 = vmatmul.mubr.f32.gmra.mrb[66].mxu0 %v512_v49  ;;  %1039 = vmatprep.mubr.f32.mxu1 %v508_v50  ;;  %v602_v49 = vld [vmem:[%s12525_s3 + $0x4a8] sm:$0xff]  ;;  %v553_v50 = vld [vmem:[%s12525_s3 + $0x320] sm:$0xff] }
 0x184   :  { %6802 = vmatprep.mubr.f32.mxu0 %v515_v51  ;;  %v605_v51 = vld [vmem:[%s12525_s3 + $0x4c0] sm:$0xff] }
 0x186   :  { %1040 = vmatmul.mubr.f32.gmra.mrb[36].mxu1 %v507_v52  ;;  %v552_v52 = vld [vmem:[%s12525_s3 + $0x318] sm:$0xff] }
 0x187   :  { %6803 = vmatmul.mubr.f32.gmra.mrb[68].mxu0 %v518_v53  ;;  %1044 = vmatprep.mubr.f32.mxu1 %v511_v54  ;;  %v608_v53 = vld [vmem:[%s12525_s3 + $0x4d8] sm:$0xff] }
 0x188   :  { %6805 = vmatprep.mubr.f32.mxu0 %v521_v55  ;;  %v556_v54 = vld [vmem:[%s12525_s3 + $0x338] sm:$0xff]  ;;  %v5486_v55 = vld [vmem:[%s12527_s4 + $0xa0] sm:$0xff] }
 0x18a   :  { %1045 = vmatmul.mubr.f32.gmra.mrb[38].mxu1 %v510_v56  ;;  %v5487_v56 = vld [vmem:[%s12527_s4 + $0xa8] sm:$0xff] }
 0x18b   :  { %6806 = vmatmul.mubr.f32.gmra.mrb[70].mxu0 %v524_v57  ;;  %1049 = vmatprep.mubr.f32.mxu1 %v514_v58  ;;  %v611_v57 = vld [vmem:[%s12525_s3 + $0x4f0] sm:$0xff]  ;;  %v8172_v58 = vpack.c.bf16 %v5487_v56, %v5486_v55  ;;  %v5494_v56 = vld [vmem:[%s12527_s4 + $0xe0] sm:$0xff] }
 0x18c   :  { %6808 = vmatprep.mubr.f32.mxu0 %v527_v59  ;;  %v555_v59 = vld [vmem:[%s12525_s3 + $0x330] sm:$0xff] }
 0x18d   :  { %8173 = vmatprep.subr.bf16.mxu0 %v8172_v58  ;;  %v595_v55 = vld [vmem:[%s12525_s3 + $0x470] sm:$0xff] }
 0x18e   :  { %1050 = vmatmul.mubr.f32.gmra.mrb[40].mxu1 %v513_v60  ;;  %v614_v60 = vld [vmem:[%s12525_s3 + $0x508] sm:$0xff]  ;;  %8175 = vmatpush3.bf16.msra.mxu0 %v8172_v58  ;;  %v689_v58 = vld [vmem:[%s12525_s3 + $0x760] sm:$0xff] }
 0x18f   :  { %6809 = vmatmul.mubr.f32.gmra.mrb[72].mxu0 %v530_v61  ;;  %1054 = vmatprep.mubr.f32.mxu1 %v517_v62  ;;  %v559_v61 = vld [vmem:[%s12525_s3 + $0x350] sm:$0xff]  ;;  %v617_v62 = vld [vmem:[%s12525_s3 + $0x520] sm:$0xff] }
 0x190   :  { %6811 = vmatprep.mubr.f32.mxu0 %v533_v63  ;;  %v558_v63 = vld [vmem:[%s12525_s3 + $0x348] sm:$0xff] }
 0x192   :  { %1055 = vmatmul.mubr.f32.gmra.mrb[42].mxu1 %v516_v0  ;;  %v620_v0 = vld [vmem:[%s12525_s3 + $0x538] sm:$0xff] }
 0x193   :  { %6812 = vmatmul.mubr.f32.gmra.mrb[74].mxu0 %v536_v1  ;;  %1059 = vmatprep.mubr.f32.mxu1 %v520_v2  ;;  %v562_v1 = vld [vmem:[%s12525_s3 + $0x368] sm:$0xff]  ;;  %v623_v2 = vld [vmem:[%s12525_s3 + $0x550] sm:$0xff] }
 0x194   :  { %6814 = vmatprep.mubr.f32.mxu0 %v539_v3  ;;  %v561_v3 = vld [vmem:[%s12525_s3 + $0x360] sm:$0xff] }
 0x196   :  { %1060 = vmatmul.mubr.f32.gmra.mrb[44].mxu1 %v519_v4  ;;  %v626_v4 = vld [vmem:[%s12525_s3 + $0x568] sm:$0xff] }
 0x197   :  { %6815 = vmatmul.mubr.f32.gmra.mrb[76].mxu0 %v542_v5  ;;  %1064 = vmatprep.mubr.f32.mxu1 %v523_v6  ;;  %v565_v5 = vld [vmem:[%s12525_s3 + $0x380] sm:$0xff] }
 0x198   :  { %6817 = vmatprep.mubr.f32.mxu0 %v545_v7  ;;  %v629_v6 = vld [vmem:[%s12525_s3 + $0x580] sm:$0xff]  ;;  %v564_v7 = vld [vmem:[%s12525_s3 + $0x378] sm:$0xff] }
 0x19a   :  { %1065 = vmatmul.mubr.f32.gmra.mrb[46].mxu1 %v522_v11  ;;  %v632_v11 = vld [vmem:[%s12525_s3 + $0x598] sm:$0xff] }
 0x19b   :  { %6818 = vmatmul.mubr.f32.gmra.mrb[78].mxu0 %v548_v9  ;;  %1069 = vmatprep.mubr.f32.mxu1 %v526_v10  ;;  %v568_v9 = vld [vmem:[%s12525_s3 + $0x398] sm:$0xff]  ;;  %v635_v10 = vld [vmem:[%s12525_s3 + $0x5b0] sm:$0xff] }
 0x19c   :  { %6820 = vmatprep.mubr.f32.mxu0 %v551_v12  ;;  %v567_v12 = vld [vmem:[%s12525_s3 + $0x390] sm:$0xff] }
 0x19e   :  { %1070 = vmatmul.mubr.f32.gmra.mrb[48].mxu1 %v525_v13  ;;  %v638_v13 = vld [vmem:[%s12525_s3 + $0x5c8] sm:$0xff] }
 0x19f   :  { %6821 = vmatmul.mubr.f32.gmra.mrb[80].mxu0 %v554_v16  ;;  %1074 = vmatprep.mubr.f32.mxu1 %v529_v17  ;;  %v570_v16 = vld [vmem:[%s12525_s3 + $0x3a8] sm:$0xff]  ;;  %v644_v17 = vld [vmem:[%s12525_s3 + $0x5f8] sm:$0xff] }
 0x1a0   :  { %6823 = vmatprep.mubr.f32.mxu0 %v557_v19  ;;  %v647_v19 = vld [vmem:[%s12525_s3 + $0x610] sm:$0xff] }
 0x1a2   :  { %1075 = vmatmul.mubr.f32.gmra.mrb[50].mxu1 %v528_v20  ;;  %v573_v20 = vld [vmem:[%s12525_s3 + $0x3c0] sm:$0xff] }
 0x1a3   :  { %6824 = vmatmul.mubr.f32.gmra.mrb[82].mxu0 %v560_v21  ;;  %1079 = vmatprep.mubr.f32.mxu1 %v532_v22  ;;  %v650_v21 = vld [vmem:[%s12525_s3 + $0x628] sm:$0xff]  ;;  %v577_v22 = vld [vmem:[%s12525_s3 + $0x3e0] sm:$0xff] }
 0x1a4   :  { %6826 = vmatprep.mubr.f32.mxu0 %v563_v23  ;;  %v653_v23 = vld [vmem:[%s12525_s3 + $0x640] sm:$0xff] }
 0x1a6   :  { %1080 = vmatmul.mubr.f32.gmra.mrb[52].mxu1 %v531_v24  ;;  %v576_v24 = vld [vmem:[%s12525_s3 + $0x3d8] sm:$0xff] }
 0x1a7   :  { %6827 = vmatmul.mubr.f32.gmra.mrb[84].mxu0 %v566_v25  ;;  %1084 = vmatprep.mubr.f32.mxu1 %v535_v26  ;;  %v656_v25 = vld [vmem:[%s12525_s3 + $0x658] sm:$0xff] }
 0x1a8   :  { %6829 = vmatprep.mubr.f32.mxu0 %v569_v27  ;;  %v580_v26 = vld [vmem:[%s12525_s3 + $0x3f8] sm:$0xff]  ;;  %v659_v27 = vld [vmem:[%s12525_s3 + $0x670] sm:$0xff] }
 0x1aa   :  { %1085 = vmatmul.mubr.f32.gmra.mrb[54].mxu1 %v534_v28  ;;  %v579_v28 = vld [vmem:[%s12525_s3 + $0x3f0] sm:$0xff] }
 0x1ab   :  { %6830 = vmatmul.mubr.f32.gmra.mrb[86].mxu0 %v572_v29  ;;  %1089 = vmatprep.mubr.f32.mxu1 %v538_v30  ;;  %v5488_v29 = vld [vmem:[%s12527_s4 + $0xb0] sm:$0xff]  ;;  %v5489_v30 = vld [vmem:[%s12527_s4 + $0xb8] sm:$0xff] }
 0x1ac   :  { %6832 = vmatprep.mubr.f32.mxu0 %v575_v31  ;;  %v662_v31 = vld [vmem:[%s12525_s3 + $0x688] sm:$0xff] }
 0x1ae   :  { %1090 = vmatmul.mubr.f32.gmra.mrb[56].mxu1 %v537_v32  ;;  %v583_v32 = vld [vmem:[%s12525_s3 + $0x410] sm:$0xff] }
 0x1af   :  { %6833 = vmatmul.mubr.f32.gmra.mrb[88].mxu0 %v578_v33  ;;  %1094 = vmatprep.mubr.f32.mxu1 %v541_v34  ;;  %v8176_v33 = vpack.c.bf16 %v5489_v30, %v5488_v29  ;;  %v665_v34 = vld [vmem:[%s12525_s3 + $0x6a0] sm:$0xff]  ;;  %v616_v29 = vld [vmem:[%s12525_s3 + $0x518] sm:$0xff] }
 0x1b0   :  { %6835 = vmatprep.mubr.f32.mxu0 %v581_v35  ;;  %v582_v35 = vld [vmem:[%s12525_s3 + $0x408] sm:$0xff] }
 0x1b1   :  { %8177 = vmatprep.subr.bf16.mxu0 %v8176_v33 }
 0x1b2   :  { %1095 = vmatmul.mubr.f32.gmra.mrb[58].mxu1 %v540_v36  ;;  %v668_v36 = vld [vmem:[%s12525_s3 + $0x6b8] sm:$0xff]  ;;  %8179 = vmatpush3.bf16.msra.mxu0 %v8176_v33  ;;  %v615_v33 = vld [vmem:[%s12525_s3 + $0x510] sm:$0xff] }
 0x1b3   :  { %6836 = vmatmul.mubr.f32.gmra.mrb[90].mxu0 %v584_v37  ;;  %1099 = vmatprep.mubr.f32.mxu1 %v544_v38  ;;  %v586_v37 = vld [vmem:[%s12525_s3 + $0x428] sm:$0xff]  ;;  %v671_v38 = vld [vmem:[%s12525_s3 + $0x6d0] sm:$0xff] }
 0x1b4   :  { %6838 = vmatprep.mubr.f32.mxu0 %v587_v39  ;;  %v585_v39 = vld [vmem:[%s12525_s3 + $0x420] sm:$0xff] }
 0x1b6   :  { %1100 = vmatmul.mubr.f32.gmra.mrb[60].mxu1 %v543_v40  ;;  %v674_v40 = vld [vmem:[%s12525_s3 + $0x6e8] sm:$0xff] }
 0x1b7   :  { %6839 = vmatmul.mubr.f32.gmra.mrb[92].mxu0 %v590_v41  ;;  %1104 = vmatprep.mubr.f32.mxu1 %v547_v42  ;;  %v589_v41 = vld [vmem:[%s12525_s3 + $0x440] sm:$0xff] }
 0x1b8   :  { %6841 = vmatprep.mubr.f32.mxu0 %v593_v43  ;;  %v5490_v42 = vld [vmem:[%s12527_s4 + $0xc0] sm:$0xff]  ;;  %v5491_v43 = vld [vmem:[%s12527_s4 + $0xc8] sm:$0xff] }
 0x1ba   :  { %1105 = vmatmul.mubr.f32.gmra.mrb[62].mxu1 %v546_v44  ;;  %v677_v44 = vld [vmem:[%s12525_s3 + $0x700] sm:$0xff] }
 0x1bb   :  { %6842 = vmatmul.mubr.f32.gmra.mrb[94].mxu0 %v596_v45  ;;  %1109 = vmatprep.mubr.f32.mxu1 %v550_v46  ;;  %v8180_v45 = vpack.c.bf16 %v5491_v43, %v5490_v42  ;;  %v588_v46 = vld [vmem:[%s12525_s3 + $0x438] sm:$0xff]  ;;  %v743_v43 = vld [vmem:[%s12525_s3 + $0x910] sm:$0xff] }
 0x1bc   :  { %6844 = vmatprep.mubr.f32.mxu0 %v599_v47  ;;  %v680_v47 = vld [vmem:[%s12525_s3 + $0x718] sm:$0xff] }
 0x1bd   :  { %8181 = vmatprep.subr.bf16.mxu0 %v8180_v45 }
 0x1be   :  { %1110 = vmatmul.mubr.f32.gmra.mrb[64].mxu1 %v549_v48  ;;  %v592_v48 = vld [vmem:[%s12525_s3 + $0x458] sm:$0xff]  ;;  %8183 = vmatpush3.bf16.msra.mxu0 %v8180_v45  ;;  %v621_v45 = vld [vmem:[%s12525_s3 + $0x540] sm:$0xff] }
 0x1bf   :  { %6845 = vmatmul.mubr.f32.gmra.mrb[96].mxu0 %v602_v49  ;;  %1114 = vmatprep.mubr.f32.mxu1 %v553_v50  ;;  %v5492_v49 = vld [vmem:[%s12527_s4 + $0xd0] sm:$0xff]  ;;  %v5493_v50 = vld [vmem:[%s12527_s4 + $0xd8] sm:$0xff] }
 0x1c0   :  { %6847 = vmatprep.mubr.f32.mxu0 %v605_v51  ;;  %v683_v51 = vld [vmem:[%s12525_s3 + $0x730] sm:$0xff] }
 0x1c2   :  { %1115 = vmatmul.mubr.f32.gmra.mrb[66].mxu1 %v552_v52  ;;  %v8184_v52 = vpack.c.bf16 %v5493_v50, %v5492_v49  ;;  %v749_v49 = vld [vmem:[%s12525_s3 + $0x940] sm:$0xff] }
 0x1c3   :  { %6848 = vmatmul.mubr.f32.gmra.mrb[98].mxu0 %v608_v53  ;;  %1119 = vmatprep.mubr.f32.mxu1 %v556_v54  ;;  %v591_v53 = vld [vmem:[%s12525_s3 + $0x450] sm:$0xff]  ;;  %v686_v54 = vld [vmem:[%s12525_s3 + $0x748] sm:$0xff] }
 0x1c4   :  { %6850 = vmatprep.mubr.f32.mxu0 %v611_v57  ;;  %8185 = vmatprep.subr.bf16.mxu0 %v8184_v52  ;;  %v5495_v57 = vld [vmem:[%s12527_s4 + $0xe8] sm:$0xff] }
 0x1c5   :  { %8187 = vmatpush3.bf16.msra.mxu0 %v8184_v52  ;;  %v752_v52 = vld [vmem:[%s12525_s3 + $0x958] sm:$0xff] }
 0x1c6   :  { %1120 = vmatmul.mubr.f32.gmra.mrb[68].mxu1 %v555_v59  ;;  %v8188_v59 = vpack.c.bf16 %v5495_v57, %v5494_v56  ;;  %v627_v57 = vld [vmem:[%s12525_s3 + $0x570] sm:$0xff] }
 0x1c7   :  { %6851 = vmatmul.mubr.f32.gmra.mrb[100].mxu0 %v614_v60  ;;  %1124 = vmatprep.mubr.f32.mxu1 %v559_v61  ;;  %v594_v60 = vld [vmem:[%s12525_s3 + $0x468] sm:$0xff]  ;;  %v692_v61 = vld [vmem:[%s12525_s3 + $0x778] sm:$0xff] }
 0x1c8   :  { %6853 = vmatprep.mubr.f32.mxu0 %v617_v62  ;;  %v598_v62 = vld [vmem:[%s12525_s3 + $0x488] sm:$0xff]  ;;  %8189 = vmatprep.subr.bf16.mxu0 %v8188_v59 }
 0x1c9   :  { %8191 = vmatpush3.bf16.msra.mxu0 %v8188_v59  ;;  %v631_v59 = vld [vmem:[%s12525_s3 + $0x590] sm:$0xff] }
 0x1ca   :  { %1125 = vmatmul.mubr.f32.gmra.mrb[70].mxu1 %v558_v63  ;;  %v5496_v63 = vld [vmem:[%s12527_s4 + $0xf0] sm:$0xff] }
 0x1cb   :  { %6854 = vmatmul.mubr.f32.gmra.mrb[102].mxu0 %v620_v0  ;;  %1129 = vmatprep.mubr.f32.mxu1 %v562_v1  ;;  %v5497_v0 = vld [vmem:[%s12527_s4 + $0xf8] sm:$0xff]  ;;  %v695_v1 = vld [vmem:[%s12525_s3 + $0x790] sm:$0xff] }
 0x1cc   :  { %6856 = vmatprep.mubr.f32.mxu0 %v623_v2  ;;  %v8192_v2 = vpack.c.bf16 %v5497_v0, %v5496_v63  ;;  %v630_v63 = vld [vmem:[%s12525_s3 + $0x588] sm:$0xff]  ;;  %v764_v0 = vld [vmem:[%s12525_s3 + $0x9b8] sm:$0xff] }
 0x1ce   :  { %1130 = vmatmul.mubr.f32.gmra.mrb[72].mxu1 %v561_v3  ;;  %v597_v3 = vld [vmem:[%s12525_s3 + $0x480] sm:$0xff]  ;;  %8193 = vmatprep.subr.bf16.mxu0 %v8192_v2 }
 0x1cf   :  { %6857 = vmatmul.mubr.f32.gmra.mrb[104].mxu0 %v626_v4  ;;  %1134 = vmatprep.mubr.f32.mxu1 %v565_v5  ;;  %v698_v4 = vld [vmem:[%s12525_s3 + $0x7a8] sm:$0xff]  ;;  %v601_v5 = vld [vmem:[%s12525_s3 + $0x4a0] sm:$0xff] }
 0x1d0   :  { %6859 = vmatprep.mubr.f32.mxu0 %v629_v6  ;;  %v2455_v6 = vld [vmem:[%s12527_s4] sm:$0xff]  ;;  %8195 = vmatpush3.bf16.msra.mxu0 %v8192_v2 }
 0x1d2   :  { %1135 = vmatmul.mubr.f32.gmra.mrb[74].mxu1 %v564_v7  ;;  %v2456_v7 = vld [vmem:[%s12527_s4 + $0x8] sm:$0xff] }
 0x1d3   :  { %6860 = vmatmul.mubr.f32.gmra.mrb[106].mxu0 %v632_v11  ;;  %1139 = vmatprep.mubr.f32.mxu1 %v568_v9  ;;  %v701_v11 = vld [vmem:[%s12525_s3 + $0x7c0] sm:$0xff]  ;;  %v9877_v9 = vpack.c.bf16 %v2456_v7, %v2455_v6  ;;  %v770_v6 = vld [vmem:[%s12525_s3 + $0x9e8] sm:$0xff] }
 0x1d4   :  { %6862 = vmatprep.mubr.f32.mxu0 %v635_v10  ;;  %v600_v10 = vld [vmem:[%s12525_s3 + $0x498] sm:$0xff]  ;;  %v637_v7 = vld [vmem:[%s12525_s3 + $0x5c0] sm:$0xff] }
 0x1d5   :  { %8197 = vmatprep.subr.bf16.mxu0 %v9877_v9 }
 0x1d6   :  { %1140 = vmatmul.mubr.f32.gmra.mrb[76].mxu1 %v567_v12  ;;  %v704_v12 = vld [vmem:[%s12525_s3 + $0x7d8] sm:$0xff] }
 0x1d7   :  { %6863 = vmatmul.mubr.f32.gmra.mrb[108].mxu0 %v638_v13  ;;  %1144 = vmatprep.mubr.f32.mxu1 %v571_v14  ;;  %v604_v13 = vld [vmem:[%s12525_s3 + $0x4b8] sm:$0xff]  ;;  %v707_v14 = vld [vmem:[%s12525_s3 + $0x7f0] sm:$0xff] }
 0x1d8   :  { %6865 = vmatprep.mubr.f32.mxu0 %v641_v15  ;;  %v603_v15 = vld [vmem:[%s12525_s3 + $0x4b0] sm:$0xff] }
 0x1da   :  { %1145 = vmatmul.mubr.f32.gmra.mrb[78].mxu1 %v570_v16  ;;  %v710_v16 = vld [vmem:[%s12525_s3 + $0x808] sm:$0xff] }
 0x1db   :  { %6866 = vmatmul.mubr.f32.gmra.mrb[110].mxu0 %v644_v17  ;;  %1149 = vmatprep.mubr.f32.mxu1 %v574_v18  ;;  %v607_v17 = vld [vmem:[%s12525_s3 + $0x4d0] sm:$0xff]  ;;  %v713_v18 = vld [vmem:[%s12525_s3 + $0x820] sm:$0xff] }
 0x1dc   :  { %6868 = vmatprep.mubr.f32.mxu0 %v647_v19  ;;  %v606_v19 = vld [vmem:[%s12525_s3 + $0x4c8] sm:$0xff] }
 0x1de   :  { %1150 = vmatmul.mubr.f32.gmra.mrb[80].mxu1 %v573_v20  ;;  %v716_v20 = vld [vmem:[%s12525_s3 + $0x838] sm:$0xff] }
 0x1df   :  { %6869 = vmatmul.mubr.f32.gmra.mrb[112].mxu0 %v650_v21  ;;  %1154 = vmatprep.mubr.f32.mxu1 %v577_v22  ;;  %v610_v21 = vld [vmem:[%s12525_s3 + $0x4e8] sm:$0xff]  ;;  %v719_v22 = vld [vmem:[%s12525_s3 + $0x850] sm:$0xff] }
 0x1e0   :  { %6871 = vmatprep.mubr.f32.mxu0 %v653_v23  ;;  %v609_v23 = vld [vmem:[%s12525_s3 + $0x4e0] sm:$0xff] }
 0x1e2   :  { %1155 = vmatmul.mubr.f32.gmra.mrb[82].mxu1 %v576_v24  ;;  %v722_v24 = vld [vmem:[%s12525_s3 + $0x868] sm:$0xff] }
 0x1e3   :  { %6872 = vmatmul.mubr.f32.gmra.mrb[114].mxu0 %v656_v25  ;;  %1159 = vmatprep.mubr.f32.mxu1 %v580_v26  ;;  %v613_v25 = vld [vmem:[%s12525_s3 + $0x500] sm:$0xff] }
 0x1e4   :  { %6874 = vmatprep.mubr.f32.mxu0 %v659_v27  ;;  %v725_v26 = vld [vmem:[%s12525_s3 + $0x880] sm:$0xff]  ;;  %v612_v27 = vld [vmem:[%s12525_s3 + $0x4f8] sm:$0xff] }
 0x1e6   :  { %1160 = vmatmul.mubr.f32.gmra.mrb[84].mxu1 %v579_v28  ;;  %v728_v28 = vld [vmem:[%s12525_s3 + $0x898] sm:$0xff] }
 0x1e7   :  { %6875 = vmatmul.mubr.f32.gmra.mrb[116].mxu0 %v662_v31  ;;  %1164 = vmatprep.mubr.f32.mxu1 %v583_v32  ;;  %v731_v31 = vld [vmem:[%s12525_s3 + $0x8b0] sm:$0xff] }
 0x1e8   :  { %6877 = vmatprep.mubr.f32.mxu0 %v665_v34  ;;  %v734_v34 = vld [vmem:[%s12525_s3 + $0x8c8] sm:$0xff] }
 0x1ea   :  { %1165 = vmatmul.mubr.f32.gmra.mrb[86].mxu1 %v582_v35  ;;  %v619_v35 = vld [vmem:[%s12525_s3 + $0x530] sm:$0xff] }
 0x1eb   :  { %6878 = vmatmul.mubr.f32.gmra.mrb[118].mxu0 %v668_v36  ;;  %1169 = vmatprep.mubr.f32.mxu1 %v586_v37  ;;  %v737_v37 = vld [vmem:[%s12525_s3 + $0x8e0] sm:$0xff] }
 0x1ec   :  { %6880 = vmatprep.mubr.f32.mxu0 %v671_v38 }
 0x1ee   :  { %1170 = vmatmul.mubr.f32.gmra.mrb[88].mxu1 %v585_v39  ;;  %v618_v39 = vld [vmem:[%s12525_s3 + $0x528] sm:$0xff] }
 0x1ef   :  { %6881 = vmatmul.mubr.f32.gmra.mrb[120].mxu0 %v674_v40  ;;  %1174 = vmatprep.mubr.f32.mxu1 %v589_v41  ;;  %v740_v40 = vld [vmem:[%s12525_s3 + $0x8f8] sm:$0xff]  ;;  %v622_v41 = vld [vmem:[%s12525_s3 + $0x548] sm:$0xff] }
 0x1f0   :  { %6883 = vmatprep.mubr.f32.mxu0 %v677_v44 }
 0x1f2   :  { %1175 = vmatmul.mubr.f32.gmra.mrb[90].mxu1 %v588_v46  ;;  %v746_v46 = vld [vmem:[%s12525_s3 + $0x928] sm:$0xff] }
 0x1f3   :  { %6884 = vmatmul.mubr.f32.gmra.mrb[122].mxu0 %v680_v47  ;;  %1179 = vmatprep.mubr.f32.mxu1 %v592_v48  ;;  %v625_v47 = vld [vmem:[%s12525_s3 + $0x560] sm:$0xff] }
 0x1f4   :  { %6886 = vmatprep.mubr.f32.mxu0 %v683_v51  ;;  %v624_v51 = vld [vmem:[%s12525_s3 + $0x558] sm:$0xff] }
 0x1f6   :  { %1180 = vmatmul.mubr.f32.gmra.mrb[92].mxu1 %v591_v53  ;;  %v628_v53 = vld [vmem:[%s12525_s3 + $0x578] sm:$0xff] }
 0x1f7   :  { %6887 = vmatmul.mubr.f32.gmra.mrb[124].mxu0 %v686_v54  ;;  %1184 = vmatprep.mubr.f32.mxu1 %v595_v55  ;;  %v755_v55 = vld [vmem:[%s12525_s3 + $0x970] sm:$0xff] }
 0x1f8   :  { %6889 = vmatprep.mubr.f32.mxu0 %v689_v58  ;;  %v758_v58 = vld [vmem:[%s12525_s3 + $0x988] sm:$0xff] }
 0x1fa   :  { %1185 = vmatmul.mubr.f32.gmra.mrb[94].mxu1 %v594_v60 }
 0x1fb   :  { %6890 = vmatmul.mubr.f32.gmra.mrb[126].mxu0 %v692_v61  ;;  %1189 = vmatprep.mubr.f32.mxu1 %v598_v62  ;;  %v761_v61 = vld [vmem:[%s12525_s3 + $0x9a0] sm:$0xff] }
 0x1fc   :  { %6892 = vmatprep.mubr.f32.mxu0 %v695_v1  ;;  %v634_v1 = vld [vmem:[%s12525_s3 + $0x5a8] sm:$0xff] }
 0x1fe   :  { %1190 = vmatmul.mubr.f32.gmra.mrb[96].mxu1 %v597_v3  ;;  %v767_v3 = vld [vmem:[%s12525_s3 + $0x9d0] sm:$0xff] }
 0x1ff   :  { %6893 = vmatmul.mubr.f32.gmra.mrb[128].mxu0 %v698_v4  ;;  %1194 = vmatprep.mubr.f32.mxu1 %v601_v5  ;;  %v633_v5 = vld [vmem:[%s12525_s3 + $0x5a0] sm:$0xff] }
 0x200   :  { %6895 = vmatprep.mubr.f32.mxu0 %v701_v11 }
 0x202   :  { %1195 = vmatmul.mubr.f32.gmra.mrb[98].mxu1 %v600_v10  ;;  %v773_v10 = vld [vmem:[%s12525_s3 + $0xa00] sm:$0xff] }
 0x203   :  { %6896 = vmatmul.mubr.f32.gmra.mrb[130].mxu0 %v704_v12  ;;  %1199 = vmatprep.mubr.f32.mxu1 %v604_v13  ;;  %v636_v13 = vld [vmem:[%s12525_s3 + $0x5b8] sm:$0xff] }
 0x204   :  { %6898 = vmatprep.mubr.f32.mxu0 %v707_v14  ;;  %v776_v14 = vld [vmem:[%s12525_s3 + $0xa18] sm:$0xff] }
 0x206   :  { %1200 = vmatmul.mubr.f32.gmra.mrb[100].mxu1 %v603_v15  ;;  %v640_v15 = vld [vmem:[%s12525_s3 + $0x5d8] sm:$0xff] }
 0x207   :  { %6899 = vmatmul.mubr.f32.gmra.mrb[132].mxu0 %v710_v16  ;;  %1204 = vmatprep.mubr.f32.mxu1 %v607_v17  ;;  %v779_v17 = vld [vmem:[%s12525_s3 + $0xa30] sm:$0xff] }
 0x208   :  { %6901 = vmatprep.mubr.f32.mxu0 %v713_v18  ;;  %v5611_v18 = vld [vmem:[%s12528_s6 + $0x80] sm:$0xff] }
 0x20a   :  { %1205 = vmatmul.mubr.f32.gmra.mrb[102].mxu1 %v606_v19  ;;  %v5612_v19 = vld [vmem:[%s12528_s6 + $0x88] sm:$0xff] }
 0x20b   :  { %6902 = vmatmul.mubr.f32.gmra.mrb[134].mxu0 %v716_v20  ;;  %1209 = vmatprep.mubr.f32.mxu1 %v610_v21 }
 0x20c   :  { %6904 = vmatprep.mubr.f32.mxu0 %v719_v22  ;;  %v8453_v22 = vpack.c.bf16 %v5612_v19, %v5611_v18  ;;  %v815_v18 = vld [vmem:[%s12525_s3 + $0xb50] sm:$0xff] }
 0x20e   :  { %1210 = vmatmul.mubr.f32.gmra.mrb[104].mxu1 %v609_v23 }
 0x20f   :  { %6905 = vmatmul.mubr.f32.gmra.mrb[136].mxu0 %v722_v24  ;;  %1214 = vmatprep.mubr.f32.mxu1 %v613_v25  ;;  %v639_v25 = vld [vmem:[%s12525_s3 + $0x5d0] sm:$0xff] }
 0x210   :  { %6907 = vmatprep.mubr.f32.mxu0 %v725_v26  ;;  %8454 = vmatpush3.bf16.msra.mxu1 %v8453_v22 }
 0x211   :  { %v9937_v30 = vpop.f32.mrb[0].mxu1  ;;  %8455 = vmatprep.subr.bf16.mxu1 %v12532_v8 }
 0x212   :  { %v953_v32 = vpop.f32.mrb[1].mxu1  ;;  %1215 = vmatmul.mubr.f32.gmra.mrb[106].mxu1 %v612_v27  ;;  %v782_v27 = vld [vmem:[%s12525_s3 + $0xa48] sm:$0xff] }
 0x213   :  { %6908 = vmatmul.mubr.f32.gmra.mrb[138].mxu0 %v728_v28  ;;  %1219 = vmatprep.mubr.f32.mxu1 %v616_v29  ;;  %v643_v28 = vld [vmem:[%s12525_s3 + $0x5f0] sm:$0xff] }
 0x214   :  { %6910 = vmatprep.mubr.f32.mxu0 %v731_v31  ;;  %v785_v31 = vld [vmem:[%s12525_s3 + $0xa60] sm:$0xff] }
 0x215   :  { %v9951_v36 = vpop.f32.mrb[2].mxu1 }
 0x216   :  { %v958_v38 = vpop.f32.mrb[3].mxu1  ;;  %1220 = vmatmul.mubr.f32.gmra.mrb[108].mxu1 %v615_v33 }
 0x217   :  { %6911 = vmatmul.mubr.f32.gmra.mrb[140].mxu0 %v734_v34  ;;  %1224 = vmatprep.mubr.f32.mxu1 %v619_v35  ;;  %v642_v35 = vld [vmem:[%s12525_s3 + $0x5e8] sm:$0xff] }
 0x218   :  { %6913 = vmatprep.mubr.f32.mxu0 %v737_v37  ;;  %v788_v37 = vld [vmem:[%s12525_s3 + $0xa78] sm:$0xff]  ;;  %v646_v38 = vld [vmem:[%s12525_s3 + $0x608] sm:$0xff] }
 0x219   :  { %v9965_v42 = vpop.f32.mrb[4].mxu1 }
 0x21a   :  { %v963_v44 = vpop.f32.mrb[5].mxu1  ;;  %1225 = vmatmul.mubr.f32.gmra.mrb[110].mxu1 %v618_v39 }
 0x21b   :  { %6914 = vmatmul.mubr.f32.gmra.mrb[142].mxu0 %v740_v40  ;;  %1229 = vmatprep.mubr.f32.mxu1 %v622_v41  ;;  %v791_v40 = vld [vmem:[%s12525_s3 + $0xa90] sm:$0xff] }
 0x21c   :  { %6916 = vmatprep.mubr.f32.mxu0 %v743_v43 }
 0x21d   :  { %v9979_v48 = vpop.f32.mrb[6].mxu1 }
 0x21e   :  { %v968_v50 = vpop.f32.mrb[7].mxu1  ;;  %1230 = vmatmul.mubr.f32.gmra.mrb[112].mxu1 %v621_v45  ;;  %v645_v45 = vld [vmem:[%s12525_s3 + $0x600] sm:$0xff] }
 0x21f   :  { %6917 = vmatmul.mubr.f32.gmra.mrb[144].mxu0 %v746_v46  ;;  %1234 = vmatprep.mubr.f32.mxu1 %v625_v47  ;;  %v794_v47 = vld [vmem:[%s12525_s3 + $0xaa8] sm:$0xff]  ;;  %v797_v50 = vld [vmem:[%s12525_s3 + $0xac0] sm:$0xff] }
 0x220   :  { %6919 = vmatprep.mubr.f32.mxu0 %v749_v49 }
 0x221   :  { %v9993_v54 = vpop.f32.mrb[8].mxu1 }
 0x222   :  { %v973_v56 = vpop.f32.mrb[9].mxu1  ;;  %1235 = vmatmul.mubr.f32.gmra.mrb[114].mxu1 %v624_v51 }
 0x223   :  { %6920 = vmatmul.mubr.f32.gmra.mrb[146].mxu0 %v752_v52  ;;  %1239 = vmatprep.mubr.f32.mxu1 %v628_v53 }
 0x224   :  { %6922 = vmatprep.mubr.f32.mxu0 %v755_v55  ;;  %v648_v55 = vld [vmem:[%s12525_s3 + $0x618] sm:$0xff] }
 0x225   :  { %v10007_v60 = vpop.f32.mrb[10].mxu1 }
 0x226   :  { %v978_v62 = vpop.f32.mrb[11].mxu1  ;;  %1240 = vmatmul.mubr.f32.gmra.mrb[116].mxu1 %v627_v57  ;;  %v800_v57 = vld [vmem:[%s12525_s3 + $0xad8] sm:$0xff] }
 0x227   :  { %6923 = vmatmul.mubr.f32.gmra.mrb[148].mxu0 %v758_v58  ;;  %1244 = vmatprep.mubr.f32.mxu1 %v631_v59  ;;  %v652_v58 = vld [vmem:[%s12525_s3 + $0x638] sm:$0xff] }
 0x228   :  { %6925 = vmatprep.mubr.f32.mxu0 %v761_v61 }
 0x229   :  { %v10021_v2 = vpop.f32.mrb[12].mxu1 }
 0x22a   :  { %v983_v4 = vpop.f32.mrb[13].mxu1  ;;  %1245 = vmatmul.mubr.f32.gmra.mrb[118].mxu1 %v630_v63 }
 0x22b   :  { %6926 = vmatmul.mubr.f32.gmra.mrb[150].mxu0 %v764_v0  ;;  %1249 = vmatprep.mubr.f32.mxu1 %v634_v1  ;;  %v651_v1 = vld [vmem:[%s12525_s3 + $0x630] sm:$0xff] }
 0x22c   :  { %6928 = vmatprep.mubr.f32.mxu0 %v767_v3  ;;  %v806_v3 = vld [vmem:[%s12525_s3 + $0xb08] sm:$0xff]  ;;  %v655_v4 = vld [vmem:[%s12525_s3 + $0x650] sm:$0xff] }
 0x22d   :  { %v10035_v11 = vpop.f32.mrb[14].mxu1 }
 0x22e   :  { %v988_v12 = vpop.f32.mrb[15].mxu1  ;;  %1250 = vmatmul.mubr.f32.gmra.mrb[120].mxu1 %v633_v5 }
 0x22f   :  { %6929 = vmatmul.mubr.f32.gmra.mrb[152].mxu0 %v770_v6  ;;  %1254 = vmatprep.mubr.f32.mxu1 %v637_v7  ;;  %v809_v6 = vld [vmem:[%s12525_s3 + $0xb20] sm:$0xff] }
 0x230   :  { %6931 = vmatprep.mubr.f32.mxu0 %v773_v10 }
 0x231   :  { %v10049_v16 = vpop.f32.mrb[16].mxu1 }
 0x232   :  { %v993_v20 = vpop.f32.mrb[17].mxu1  ;;  %1255 = vmatmul.mubr.f32.gmra.mrb[122].mxu1 %v636_v13  ;;  %v6774_v21 = vpop.f32.mrb[48].mxu0  ;;  %v654_v13 = vld [vmem:[%s12525_s3 + $0x648] sm:$0xff] }
 0x233   :  { %v10061_v23 = vadd.f32 %v6774_v21, %v9951_v36  ;;  %v1736_v24 = vpop.f32.mrb[49].mxu0  ;;  %6932 = vmatmul.mubr.f32.gmra.mrb[154].mxu0 %v776_v14  ;;  %1259 = vmatprep.mubr.f32.mxu1 %v640_v15  ;;  %v812_v15 = vld [vmem:[%s12525_s3 + $0xb38] sm:$0xff] }
 0x234   :  { %v10067_v26 = vadd.f32 %v1736_v24, %v9937_v30  ;;  %6934 = vmatprep.mubr.f32.mxu0 %v779_v17  ;;  %v657_v24 = vld [vmem:[%s12525_s3 + $0x660] sm:$0xff] }
 0x235   :  { %v996_v29 = vpop.f32.mrb[18].mxu1 }
 0x236   :  { %v998_v32 = vpop.f32.mrb[19].mxu1  ;;  %1260 = vmatmul.mubr.f32.gmra.mrb[124].mxu1 %v639_v25  ;;  %v6777_v30 = vpop.f32.mrb[50].mxu0 }
 0x237   :  { %v10080_v33 = vadd.f32 %v6777_v30, %v9979_v48  ;;  %v1746_v34 = vpop.f32.mrb[51].mxu0  ;;  %6935 = vmatmul.mubr.f32.gmra.mrb[156].mxu0 %v782_v27  ;;  %1264 = vmatprep.mubr.f32.mxu1 %v643_v28  ;;  %v649_v48 = vld [vmem:[%s12525_s3 + $0x620] sm:$0xff]  ;;  %v818_v27 = vld [vmem:[%s12525_s3 + $0xb68] sm:$0xff] }
 0x238   :  { %v10086_v36 = vadd.f32 %v1746_v34, %v9965_v42  ;;  %6937 = vmatprep.mubr.f32.mxu0 %v785_v31  ;;  %v661_v28 = vld [vmem:[%s12525_s3 + $0x680] sm:$0xff] }
 0x239   :  { %v1001_v39 = vpop.f32.mrb[20].mxu1  ;;  %v821_v31 = vld [vmem:[%s12525_s3 + $0xb80] sm:$0xff] }
 0x23a   :  { %v1003_v41 = vpop.f32.mrb[21].mxu1  ;;  %1265 = vmatmul.mubr.f32.gmra.mrb[126].mxu1 %v642_v35  ;;  %v6780_v43 = vpop.f32.mrb[52].mxu0 }
 0x23b   :  { %v10098_v42 = vadd.f32 %v6780_v43, %v10007_v60  ;;  %v1756_v44 = vpop.f32.mrb[53].mxu0  ;;  %6938 = vmatmul.mubr.f32.gmra.mrb[158].mxu0 %v788_v37  ;;  %1269 = vmatprep.mubr.f32.mxu1 %v646_v38  ;;  %v803_v60 = vld [vmem:[%s12525_s3 + $0xaf0] sm:$0xff]  ;;  %v660_v37 = vld [vmem:[%s12525_s3 + $0x678] sm:$0xff] }
 0x23c   :  { %v10104_v46 = vadd.f32 %v1756_v44, %v9993_v54  ;;  %6940 = vmatprep.mubr.f32.mxu0 %v791_v40  ;;  %v664_v40 = vld [vmem:[%s12525_s3 + $0x698] sm:$0xff]  ;;  %v827_v43 = vld [vmem:[%s12525_s3 + $0xbb0] sm:$0xff] }
 0x23d   :  { %v1006_v49 = vpop.f32.mrb[22].mxu1 }
 0x23e   :  { %v1008_v51 = vpop.f32.mrb[23].mxu1  ;;  %1270 = vmatmul.mubr.f32.gmra.mrb[128].mxu1 %v645_v45  ;;  %v6783_v52 = vpop.f32.mrb[54].mxu0 }
 0x23f   :  { %v10116_v53 = vadd.f32 %v6783_v52, %v10035_v11  ;;  %v1766_v54 = vpop.f32.mrb[55].mxu0  ;;  %6941 = vmatmul.mubr.f32.gmra.mrb[160].mxu0 %v794_v47  ;;  %1274 = vmatprep.mubr.f32.mxu1 %v649_v48  ;;  %v663_v48 = vld [vmem:[%s12525_s3 + $0x690] sm:$0xff] }
 0x240   :  { %v10122_v56 = vadd.f32 %v1766_v54, %v10021_v2  ;;  %6943 = vmatprep.mubr.f32.mxu0 %v797_v50  ;;  %v830_v50 = vld [vmem:[%s12525_s3 + $0xbc8] sm:$0xff]  ;;  %v667_v51 = vld [vmem:[%s12525_s3 + $0x6b0] sm:$0xff]  ;;  %v833_v54 = vld [vmem:[%s12525_s3 + $0xbe0] sm:$0xff] }
 0x241   :  { %v1011_v59 = vpop.f32.mrb[24].mxu1 }
 0x242   :  { %v1013_v61 = vpop.f32.mrb[25].mxu1  ;;  %1275 = vmatmul.mubr.f32.gmra.mrb[130].mxu1 %v648_v55  ;;  %v6786_v62 = vpop.f32.mrb[56].mxu0 }
 0x243   :  { %v10133_v63 = vadd.f32 %v6786_v62, %v996_v29  ;;  %v1776_v0 = vpop.f32.mrb[57].mxu0  ;;  %6944 = vmatmul.mubr.f32.gmra.mrb[162].mxu0 %v800_v57  ;;  %1279 = vmatprep.mubr.f32.mxu1 %v652_v58  ;;  %v836_v61 = vld [vmem:[%s12525_s3 + $0xbf8] sm:$0xff]  ;;  %v670_v62 = vld [vmem:[%s12525_s3 + $0x6c8] sm:$0xff] }
 0x244   :  { %v10139_v2 = vadd.f32 %v1776_v0, %v10049_v16  ;;  %6946 = vmatprep.mubr.f32.mxu0 %v803_v60  ;;  %v658_v16 = vld [vmem:[%s12525_s3 + $0x668] sm:$0xff] }
 0x245   :  { %v1016_v5 = vpop.f32.mrb[26].mxu1  ;;  %v666_v60 = vld [vmem:[%s12525_s3 + $0x6a8] sm:$0xff] }
 0x246   :  { %v1018_v7 = vpop.f32.mrb[27].mxu1  ;;  %1280 = vmatmul.mubr.f32.gmra.mrb[132].mxu1 %v651_v1  ;;  %v6789_v11 = vpop.f32.mrb[58].mxu0  ;;  %v839_v1 = vld [vmem:[%s12525_s3 + $0xc10] sm:$0xff] }
 0x247   :  { %v10150_v10 = vadd.f32 %v6789_v11, %v1006_v49  ;;  %v1786_v12 = vpop.f32.mrb[59].mxu0  ;;  %6947 = vmatmul.mubr.f32.gmra.mrb[164].mxu0 %v806_v3  ;;  %1284 = vmatprep.mubr.f32.mxu1 %v655_v4  ;;  %v842_v11 = vld [vmem:[%s12525_s3 + $0xc28] sm:$0xff] }
 0x248   :  { %v10155_v14 = vadd.f32 %v1786_v12, %v1001_v39  ;;  %6949 = vmatprep.mubr.f32.mxu0 %v809_v6  ;;  %v824_v39 = vld [vmem:[%s12525_s3 + $0xb98] sm:$0xff]  ;;  %v669_v6 = vld [vmem:[%s12525_s3 + $0x6c0] sm:$0xff] }
 0x249   :  { %v1021_v17 = vpop.f32.mrb[28].mxu1  ;;  %v673_v12 = vld [vmem:[%s12525_s3 + $0x6e0] sm:$0xff] }
 0x24a   :  { %v1023_v19 = vpop.f32.mrb[29].mxu1  ;;  %1285 = vmatmul.mubr.f32.gmra.mrb[134].mxu1 %v654_v13  ;;  %v6792_v20 = vpop.f32.mrb[60].mxu0 }
 0x24b   :  { %v10166_v21 = vadd.f32 %v6792_v20, %v1016_v5  ;;  %v1796_v22 = vpop.f32.mrb[61].mxu0  ;;  %6950 = vmatmul.mubr.f32.gmra.mrb[166].mxu0 %v812_v15  ;;  %1289 = vmatprep.mubr.f32.mxu1 %v658_v16  ;;  %v845_v15 = vld [vmem:[%s12525_s3 + $0xc40] sm:$0xff]  ;;  %v672_v19 = vld [vmem:[%s12525_s3 + $0x6d8] sm:$0xff] }
 0x24c   :  { %v10171_v25 = vadd.f32 %v1796_v22, %v1011_v59  ;;  %6952 = vmatprep.mubr.f32.mxu0 %v815_v18  ;;  %v848_v22 = vld [vmem:[%s12525_s3 + $0xc58] sm:$0xff] }
 0x24d   :  { %v1026_v29 = vpop.f32.mrb[30].mxu1 }
 0x24e   :  { %v1028_v32 = vpop.f32.mrb[31].mxu1  ;;  %1290 = vmatmul.mubr.f32.gmra.mrb[136].mxu1 %v657_v24  ;;  %v6795_v30 = vpop.f32.mrb[62].mxu0  ;;  %v676_v24 = vld [vmem:[%s12525_s3 + $0x6f8] sm:$0xff] }
 0x24f   :  { %v10182_v34 = vadd.f32 %v6795_v30, %v1026_v29  ;;  %v1806_v35 = vpop.f32.mrb[63].mxu0  ;;  %6953 = vmatmul.mubr.f32.gmra.mrb[168].mxu0 %v818_v27  ;;  %1294 = vmatprep.mubr.f32.mxu1 %v661_v28  ;;  %v851_v28 = vld [vmem:[%s12525_s3 + $0xc70] sm:$0xff] }
 0x250   :  { %v10187_v38 = vadd.f32 %v1806_v35, %v1021_v17  ;;  %6955 = vmatprep.mubr.f32.mxu0 %v821_v31  ;;  %v675_v30 = vld [vmem:[%s12525_s3 + $0x6f0] sm:$0xff] }
 0x251   :  { %v1031_v41 = vpop.f32.mrb[32].mxu1 }
 0x252   :  { %v1033_v44 = vpop.f32.mrb[33].mxu1  ;;  %1295 = vmatmul.mubr.f32.gmra.mrb[138].mxu1 %v660_v37  ;;  %v6798_v45 = vpop.f32.mrb[64].mxu0  ;;  %v854_v37 = vld [vmem:[%s12525_s3 + $0xc88] sm:$0xff] }
 0x253   :  { %v1816_v47 = vpop.f32.mrb[65].mxu0  ;;  %6956 = vmatmul.mubr.f32.gmra.mrb[170].mxu0 %v824_v39  ;;  %1299 = vmatprep.mubr.f32.mxu1 %v664_v40  ;;  %v679_v39 = vld [vmem:[%s12525_s3 + $0x710] sm:$0xff] }
 0x254   :  { %v10201_v49 = vadd.f32 %v1816_v47, %v1031_v41  ;;  %6958 = vmatprep.mubr.f32.mxu0 %v827_v43  ;;  %v857_v41 = vld [vmem:[%s12525_s3 + $0xca0] sm:$0xff]  ;;  %v678_v47 = vld [vmem:[%s12525_s3 + $0x708] sm:$0xff] }
 0x255   :  { %v1036_v52 = vpop.f32.mrb[34].mxu1 }
 0x256   :  { %v10212_v55 = vadd.f32 %v6798_v45, %v1036_v52  ;;  %v1038_v57 = vpop.f32.mrb[35].mxu1  ;;  %1300 = vmatmul.mubr.f32.gmra.mrb[140].mxu1 %v663_v48  ;;  %v6801_v58 = vpop.f32.mrb[66].mxu0 }
 0x257   :  { %6959 = vmatmul.mubr.f32.gmra.mrb[172].mxu0 %v830_v50  ;;  %1304 = vmatprep.mubr.f32.mxu1 %v667_v51  ;;  %v1826_v59 = vpop.f32.mrb[67].mxu0  ;;  %v860_v50 = vld [vmem:[%s12525_s3 + $0xcb8] sm:$0xff]  ;;  %v682_v51 = vld [vmem:[%s12525_s3 + $0x728] sm:$0xff] }
 0x258   :  { %6961 = vmatprep.mubr.f32.mxu0 %v833_v54  ;;  %v863_v54 = vld [vmem:[%s12525_s3 + $0xcd0] sm:$0xff] }
 0x259   :  { %v1041_v0 = vpop.f32.mrb[36].mxu1 }
 0x25a   :  { %v10226_v3 = vadd.f32 %v1826_v59, %v1041_v0  ;;  %v1043_v4 = vpop.f32.mrb[37].mxu1  ;;  %1305 = vmatmul.mubr.f32.gmra.mrb[142].mxu1 %v666_v60  ;;  %v6804_v5 = vpop.f32.mrb[68].mxu0  ;;  %v681_v60 = vld [vmem:[%s12525_s3 + $0x720] sm:$0xff] }
 0x25b   :  { %6962 = vmatmul.mubr.f32.gmra.mrb[174].mxu0 %v836_v61  ;;  %1309 = vmatprep.mubr.f32.mxu1 %v670_v62  ;;  %v1836_v7 = vpop.f32.mrb[69].mxu0  ;;  %v866_v62 = vld [vmem:[%s12525_s3 + $0xce8] sm:$0xff]  ;;  %v685_v0 = vld [vmem:[%s12525_s3 + $0x740] sm:$0xff] }
 0x25c   :  { %6964 = vmatprep.mubr.f32.mxu0 %v839_v1  ;;  %v869_v4 = vld [vmem:[%s12525_s3 + $0xd00] sm:$0xff] }
 0x25d   :  { %v1046_v13 = vpop.f32.mrb[38].mxu1 }
 0x25e   :  { %v10240_v16 = vadd.f32 %v6801_v58, %v1046_v13  ;;  %v1048_v17 = vpop.f32.mrb[39].mxu1  ;;  %1310 = vmatmul.mubr.f32.gmra.mrb[144].mxu1 %v669_v6  ;;  %v6807_v18 = vpop.f32.mrb[70].mxu0  ;;  %v872_v13 = vld [vmem:[%s12525_s3 + $0xd18] sm:$0xff] }
 0x25f   :  { %6965 = vmatmul.mubr.f32.gmra.mrb[176].mxu0 %v842_v11  ;;  %1314 = vmatprep.mubr.f32.mxu1 %v673_v12  ;;  %v1846_v20 = vpop.f32.mrb[71].mxu0  ;;  %v684_v11 = vld [vmem:[%s12525_s3 + $0x738] sm:$0xff] }
 0x260   :  { %6967 = vmatprep.mubr.f32.mxu0 %v845_v15  ;;  %v688_v15 = vld [vmem:[%s12525_s3 + $0x758] sm:$0xff] }
 0x261   :  { %v1051_v27 = vpop.f32.mrb[40].mxu1 }
 0x262   :  { %v10254_v29 = vadd.f32 %v1836_v7, %v1051_v27  ;;  %v1053_v31 = vpop.f32.mrb[41].mxu1  ;;  %1315 = vmatmul.mubr.f32.gmra.mrb[146].mxu1 %v672_v19  ;;  %v6810_v32 = vpop.f32.mrb[72].mxu0 }
 0x263   :  { %6968 = vmatmul.mubr.f32.gmra.mrb[178].mxu0 %v848_v22  ;;  %1319 = vmatprep.mubr.f32.mxu1 %v676_v24  ;;  %v1856_v35 = vpop.f32.mrb[73].mxu0  ;;  %v687_v24 = vld [vmem:[%s12525_s3 + $0x750] sm:$0xff] }
 0x264   :  { %6970 = vmatprep.mubr.f32.mxu0 %v851_v28  ;;  %v878_v28 = vld [vmem:[%s12525_s3 + $0xd48] sm:$0xff]  ;;  %v691_v31 = vld [vmem:[%s12525_s3 + $0x770] sm:$0xff] }
 0x265   :  { %v1056_v40 = vpop.f32.mrb[42].mxu1 }
 0x266   :  { %v10268_v43 = vadd.f32 %v6804_v5, %v1056_v40  ;;  %v1058_v44 = vpop.f32.mrb[43].mxu1  ;;  %1320 = vmatmul.mubr.f32.gmra.mrb[148].mxu1 %v675_v30  ;;  %v10270_v45 = vpop.f32.mrb[74].mxu0 }
 0x267   :  { %6971 = vmatmul.mubr.f32.gmra.mrb[180].mxu0 %v854_v37  ;;  %1324 = vmatprep.mubr.f32.mxu1 %v679_v39  ;;  %v1866_v48 = vpop.f32.mrb[75].mxu0  ;;  %v884_v44 = vld [vmem:[%s12525_s3 + $0xd78] sm:$0xff] }
 0x268   :  { %6973 = vmatprep.mubr.f32.mxu0 %v857_v41  ;;  %v690_v41 = vld [vmem:[%s12525_s3 + $0x768] sm:$0xff] }
 0x269   :  { %v1061_v52 = vpop.f32.mrb[44].mxu1 }
 0x26a   :  { %v10284_v57 = vadd.f32 %v1846_v20, %v1061_v52  ;;  %v1063_v58 = vpop.f32.mrb[45].mxu1  ;;  %1325 = vmatmul.mubr.f32.gmra.mrb[150].mxu1 %v678_v47  ;;  %v10286_v59 = vpop.f32.mrb[76].mxu0 }
 0x26b   :  { %6974 = vmatmul.mubr.f32.gmra.mrb[182].mxu0 %v860_v50  ;;  %1329 = vmatprep.mubr.f32.mxu1 %v682_v51  ;;  %v10291_v61 = vpop.f32.mrb[77].mxu0  ;;  %v5613_v50 = vld [vmem:[%s12528_s6 + $0x90] sm:$0xff]  ;;  %v5614_v51 = vld [vmem:[%s12528_s6 + $0x98] sm:$0xff] }
 0x26c   :  { %6976 = vmatprep.mubr.f32.mxu0 %v863_v54  ;;  %v8456_v54 = vpack.c.bf16 %v5614_v51, %v5613_v50 }
 0x26d   :  { %v1066_v1 = vpop.f32.mrb[46].mxu1 }
 0x26e   :  { %v10302_v5 = vadd.f32 %v6807_v18, %v1066_v1  ;;  %v1068_v6 = vpop.f32.mrb[47].mxu1  ;;  %1330 = vmatmul.mubr.f32.gmra.mrb[152].mxu1 %v681_v60  ;;  %v10304_v7 = vpop.f32.mrb[78].mxu0  ;;  %v875_v18 = vld [vmem:[%s12525_s3 + $0xd30] sm:$0xff] }
 0x26f   :  { %6977 = vmatmul.mubr.f32.gmra.mrb[184].mxu0 %v866_v62  ;;  %1334 = vmatprep.mubr.f32.mxu1 %v685_v0  ;;  %v10309_v12 = vpop.f32.mrb[79].mxu0  ;;  %v2457_v62 = vld [vmem:[%s12527_s4 + $0x10] sm:$0xff]  ;;  %v2458_v0 = vld [vmem:[%s12527_s4 + $0x18] sm:$0xff]  ;;  %v697_v6 = vld [vmem:[%s12525_s3 + $0x7a0] sm:$0xff] }
 0x270   :  { %6979 = vmatprep.mubr.f32.mxu0 %v869_v4  ;;  %v693_v4 = vld [vmem:[%s12525_s3 + $0x780] sm:$0xff]  ;;  %8457 = vmatpush3.bf16.msra.mxu1 %v8456_v54 }
 0x271   :  { %v1071_v17 = vpop.f32.mrb[48].mxu1  ;;  %8458 = vmatprep.subr.bf16.mxu1 %v12532_v8 }
 0x272   :  { %v10320_v19 = vadd.f32 %v1856_v35, %v1071_v17  ;;  %v1073_v20 = vpop.f32.mrb[49].mxu1  ;;  %1335 = vmatmul.mubr.f32.gmra.mrb[154].mxu1 %v684_v11  ;;  %v10322_v22 = vpop.f32.mrb[80].mxu0  ;;  %v881_v35 = vld [vmem:[%s12525_s3 + $0xd60] sm:$0xff] }
 0x273   :  { %6980 = vmatmul.mubr.f32.gmra.mrb[186].mxu0 %v872_v13  ;;  %1339 = vmatprep.mubr.f32.mxu1 %v688_v15  ;;  %v10327_v27 = vpop.f32.mrb[81].mxu0  ;;  %v8200_v13 = vpack.c.bf16 %v2458_v0, %v2457_v62  ;;  %v706_v62 = vld [vmem:[%s12525_s3 + $0x7e8] sm:$0xff] }
 0x274   :  { %6982 = vmatprep.mubr.f32.mxu0 %v875_v18  ;;  %v2459_v18 = vld [vmem:[%s12527_s4 + $0x20] sm:$0xff] }
 0x275   :  { %v1076_v30 = vpop.f32.mrb[50].mxu1 }
 0x276   :  { %v10338_v37 = vadd.f32 %v6810_v32, %v1076_v30  ;;  %v1078_v39 = vpop.f32.mrb[51].mxu1  ;;  %1340 = vmatmul.mubr.f32.gmra.mrb[156].mxu1 %v687_v24  ;;  %v10340_v40 = vpop.f32.mrb[82].mxu0  ;;  %v694_v32 = vld [vmem:[%s12525_s3 + $0x788] sm:$0xff] }
 0x277   :  { %6983 = vmatmul.mubr.f32.gmra.mrb[188].mxu0 %v878_v28  ;;  %1344 = vmatprep.mubr.f32.mxu1 %v691_v31  ;;  %v10348_v47 = vpop.f32.mrb[83].mxu0  ;;  %v700_v28 = vld [vmem:[%s12525_s3 + $0x7b8] sm:$0xff]  ;;  %v2461_v39 = vld [vmem:[%s12527_s4 + $0x30] sm:$0xff] }
 0x278   :  { %6985 = vmatprep.mubr.f32.mxu0 %v881_v35 }
 0x279   :  { %v1081_v52 = vpop.f32.mrb[52].mxu1 }
 0x27a   :  { %v10359_v58 = vadd.f32 %v1866_v48, %v1081_v52  ;;  %v1083_v60 = vpop.f32.mrb[53].mxu1  ;;  %1345 = vmatmul.mubr.f32.gmra.mrb[158].mxu1 %v690_v41  ;;  %v10367_v1 = vpop.f32.mrb[84].mxu0  ;;  %v2463_v52 = vld [vmem:[%s12527_s4 + $0x40] sm:$0xff] }
 0x27b   :  { %6986 = vmatmul.mubr.f32.gmra.mrb[190].mxu0 %v884_v44  ;;  %1349 = vmatprep.mubr.f32.mxu1 %v694_v32  ;;  %v10372_v48 = vpop.f32.mrb[85].mxu0  ;;  %v703_v44 = vld [vmem:[%s12525_s3 + $0x7d0] sm:$0xff] }
 0x27c   :  { %7020 = vmatprep.mubr.f32.mxu0 %v10201_v49  ;;  %v2460_v49 = vld [vmem:[%s12527_s4 + $0x28] sm:$0xff] }
 0x27d   :  { %v1086_v11 = vpop.f32.mrb[54].mxu1  ;;  %v8204_v30 = vpack.c.bf16 %v2460_v49, %v2459_v18  ;;  %v709_v18 = vld [vmem:[%s12525_s3 + $0x800] sm:$0xff] }
 0x27e   :  { %v10380_v15 = vadd.f32 %v10270_v45, %v1086_v11  ;;  %v1088_v17 = vpop.f32.mrb[55].mxu1  ;;  %1350 = vmatmul.mubr.f32.gmra.mrb[160].mxu1 %v693_v4  ;;  %v10388_v20 = vpop.f32.mrb[86].mxu0  ;;  %v696_v45 = vld [vmem:[%s12525_s3 + $0x798] sm:$0xff]  ;;  %v2465_v11 = vld [vmem:[%s12527_s4 + $0x50] sm:$0xff] }
 0x27f   :  { %7021 = vmatmul.mubr.f32.vlgmr.msra.gmra.mrb[192].mxu0 %v10212_v55  ;;  %1354 = vmatprep.mubr.f32.mxu1 %v697_v6  ;;  %v10394_v24 = vpop.f32.mrb[87].mxu0  ;;  %v705_v17 = vld [vmem:[%s12525_s3 + $0x7e0] sm:$0xff] }
 0x280   :  { %7023 = vmatprep.mubr.f32.mxu0 %v10226_v3  ;;  %8199 = vmatpush3.bf16.msra.mxu0 %v9877_v9  ;;  %v2462_v9 = vld [vmem:[%s12527_s4 + $0x38] sm:$0xff] }
 0x281   :  { %v1091_v31 = vpop.f32.mrb[56].mxu1  ;;  %8201 = vmatprep.subr.bf16.mxu0 %v8200_v13  ;;  %v8208_v50 = vpack.c.bf16 %v2462_v9, %v2461_v39  ;;  %v712_v39 = vld [vmem:[%s12525_s3 + $0x818] sm:$0xff] }
 0x282   :  { %v10402_v55 = vadd.f32 %v10291_v61, %v1091_v31  ;;  %v1093_v35 = vpop.f32.mrb[57].mxu1  ;;  %1355 = vmatmul.mubr.f32.gmra.mrb[162].mxu1 %v696_v45  ;;  %v10410_v3 = vpop.f32.mrb[88].mxu0  ;;  %v699_v61 = vld [vmem:[%s12525_s3 + $0x7b0] sm:$0xff]  ;;  %v2467_v31 = vld [vmem:[%s12527_s4 + $0x60] sm:$0xff] }
 0x283   :  { %7024 = vmatmul.mubr.f32.gmra.mrb[194].mxu0 %v10240_v16  ;;  %1359 = vmatprep.mubr.f32.mxu1 %v700_v28  ;;  %v10416_v41 = vpop.f32.mrb[89].mxu0  ;;  %v708_v35 = vld [vmem:[%s12525_s3 + $0x7f8] sm:$0xff] }
 0x284   :  { %7026 = vmatprep.mubr.f32.mxu0 %v10254_v29  ;;  %8203 = vmatpush3.bf16.msra.mxu0 %v8200_v13  ;;  %v2464_v29 = vld [vmem:[%s12527_s4 + $0x48] sm:$0xff] }
 0x285   :  { %v1096_v32 = vpop.f32.mrb[58].mxu1  ;;  %8205 = vmatprep.subr.bf16.mxu0 %v8204_v30  ;;  %v8212_v4 = vpack.c.bf16 %v2464_v29, %v2463_v52  ;;  %v715_v52 = vld [vmem:[%s12525_s3 + $0x830] sm:$0xff] }
 0x286   :  { %v10423_v51 = vadd.f32 %v10286_v59, %v1096_v32  ;;  %v1098_v16 = vpop.f32.mrb[59].mxu1  ;;  %1360 = vmatmul.mubr.f32.gmra.mrb[164].mxu1 %v699_v61  ;;  %v10431_v54 = vpop.f32.mrb[90].mxu0  ;;  %v702_v59 = vld [vmem:[%s12525_s3 + $0x7c8] sm:$0xff]  ;;  %v2469_v32 = vld [vmem:[%s12527_s4 + $0x70] sm:$0xff] }
 0x287   :  { %7027 = vmatmul.mubr.f32.gmra.mrb[196].mxu0 %v10268_v43  ;;  %1364 = vmatprep.mubr.f32.mxu1 %v703_v44  ;;  %v10437_v60 = vpop.f32.mrb[91].mxu0 }
 0x288   :  { %7029 = vmatprep.mubr.f32.mxu0 %v10284_v57  ;;  %8207 = vmatpush3.bf16.msra.mxu0 %v8204_v30  ;;  %v2466_v57 = vld [vmem:[%s12527_s4 + $0x58] sm:$0xff] }
 0x289   :  { %v1101_v0 = vpop.f32.mrb[60].mxu1  ;;  %8209 = vmatprep.subr.bf16.mxu0 %v8208_v50  ;;  %v8216_v45 = vpack.c.bf16 %v2466_v57, %v2465_v11  ;;  %v718_v11 = vld [vmem:[%s12525_s3 + $0x848] sm:$0xff] }
 0x28a   :  { %v1887_v6 = vadd.f32 %v10309_v12, %v1101_v0  ;;  %v1103_v43 = vpop.f32.mrb[61].mxu1  ;;  %1365 = vmatmul.mubr.f32.gmra.mrb[166].mxu1 %v702_v59  ;;  %v10450_v13 = vpop.f32.mrb[92].mxu0  ;;  %v5498_v0 = vld [vmem:[%s12527_s4 + $0x100] sm:$0xff] }
 0x28b   :  { %7030 = vmatmul.mubr.f32.gmra.mrb[198].mxu0 %v10302_v5  ;;  %1369 = vmatprep.mubr.f32.mxu1 %v706_v62  ;;  %v10456_v12 = vpop.f32.mrb[93].mxu0 }
 0x28c   :  { %7032 = vmatprep.mubr.f32.mxu0 %v10320_v19  ;;  %8211 = vmatpush3.bf16.msra.mxu0 %v8208_v50  ;;  %v2468_v19 = vld [vmem:[%s12527_s4 + $0x68] sm:$0xff] }
 0x28d   :  { %v1106_v49 = vpop.f32.mrb[62].mxu1  ;;  %8213 = vmatprep.subr.bf16.mxu0 %v8212_v4  ;;  %v8220_v61 = vpack.c.bf16 %v2468_v19, %v2467_v31  ;;  %v721_v31 = vld [vmem:[%s12525_s3 + $0x860] sm:$0xff] }
 0x28e   :  { %v1892_v28 = vadd.f32 %v10304_v7, %v1106_v49  ;;  %v1108_v5 = vpop.f32.mrb[63].mxu1  ;;  %1370 = vmatmul.mubr.f32.gmra.mrb[168].mxu1 %v705_v17  ;;  %v10469_v30 = vpop.f32.mrb[94].mxu0  ;;  %v5500_v49 = vld [vmem:[%s12527_s4 + $0x110] sm:$0xff] }
 0x28f   :  { %7033 = vmatmul.mubr.f32.gmra.mrb[200].mxu0 %v10338_v37  ;;  %1374 = vmatprep.mubr.f32.mxu1 %v709_v18  ;;  %v10475_v7 = vpop.f32.mrb[95].mxu0  ;;  %v717_v5 = vld [vmem:[%s12525_s3 + $0x840] sm:$0xff] }
 0x290   :  { %7035 = vmatprep.mubr.f32.mxu0 %v10359_v58  ;;  %8215 = vmatpush3.bf16.msra.mxu0 %v8212_v4  ;;  %v2470_v58 = vld [vmem:[%s12527_s4 + $0x78] sm:$0xff] }
 0x291   :  { %v1111_v9 = vpop.f32.mrb[64].mxu1  ;;  %8217 = vmatprep.subr.bf16.mxu0 %v8216_v45  ;;  %v8224_v59 = vpack.c.bf16 %v2470_v58, %v2469_v32  ;;  %v724_v32 = vld [vmem:[%s12525_s3 + $0x878] sm:$0xff] }
 0x292   :  { %v10482_v44 = vadd.f32 %v10327_v27, %v1111_v9  ;;  %v1113_v37 = vpop.f32.mrb[65].mxu1  ;;  %1375 = vmatmul.mubr.f32.gmra.mrb[170].mxu1 %v708_v35  ;;  %v10490_v50 = vpop.f32.mrb[96].mxu0  ;;  %v711_v27 = vld [vmem:[%s12525_s3 + $0x810] sm:$0xff]  ;;  %v5502_v9 = vld [vmem:[%s12527_s4 + $0x120] sm:$0xff] }
 0x293   :  { %7036 = vmatmul.mubr.f32.gmra.mrb[202].mxu0 %v10380_v15  ;;  %1379 = vmatprep.mubr.f32.mxu1 %v712_v39  ;;  %v10496_v16 = vpop.f32.mrb[97].mxu0 }
 0x294   :  { %7038 = vmatprep.mubr.f32.mxu0 %v10402_v55  ;;  %8219 = vmatpush3.bf16.msra.mxu0 %v8216_v45  ;;  %v5499_v55 = vld [vmem:[%s12527_s4 + $0x108] sm:$0xff] }
 0x295   :  { %v1116_v29 = vpop.f32.mrb[66].mxu1  ;;  %8221 = vmatprep.subr.bf16.mxu0 %v8220_v61  ;;  %v8228_v17 = vpack.c.bf16 %v5499_v55, %v5498_v0  ;;  %v727_v0 = vld [vmem:[%s12525_s3 + $0x890] sm:$0xff] }
 0x296   :  { %v10503_v62 = vadd.f32 %v10322_v22, %v1116_v29  ;;  %v1118_v15 = vpop.f32.mrb[67].mxu1  ;;  %1380 = vmatmul.mubr.f32.gmra.mrb[172].mxu1 %v711_v27  ;;  %v10511_v4 = vpop.f32.mrb[98].mxu0  ;;  %v714_v22 = vld [vmem:[%s12525_s3 + $0x828] sm:$0xff]  ;;  %v5504_v29 = vld [vmem:[%s12527_s4 + $0x130] sm:$0xff] }
 0x297   :  { %7039 = vmatmul.mubr.f32.gmra.mrb[204].mxu0 %v10423_v51  ;;  %1384 = vmatprep.mubr.f32.mxu1 %v715_v52  ;;  %v10517_v43 = vpop.f32.mrb[99].mxu0 }
 0x298   :  { %7041 = vmatprep.mubr.f32.mxu0 %v1887_v6  ;;  %8223 = vmatpush3.bf16.msra.mxu0 %v8220_v61  ;;  %v5501_v6 = vld [vmem:[%s12527_s4 + $0x118] sm:$0xff] }
 0x299   :  { %v1121_v57 = vpop.f32.mrb[68].mxu1  ;;  %8225 = vmatprep.subr.bf16.mxu0 %v8224_v59  ;;  %v8232_v35 = vpack.c.bf16 %v5501_v6, %v5500_v49  ;;  %v730_v49 = vld [vmem:[%s12525_s3 + $0x8a8] sm:$0xff] }
 0x29a   :  { %v10523_v18 = vadd.f32 %v10348_v47, %v1121_v57  ;;  %v1123_v51 = vpop.f32.mrb[69].mxu1  ;;  %1385 = vmatmul.mubr.f32.gmra.mrb[174].mxu1 %v714_v22  ;;  %v10531_v45 = vpop.f32.mrb[100].mxu0  ;;  %v5506_v57 = vld [vmem:[%s12527_s4 + $0x140] sm:$0xff] }
 0x29b   :  { %7042 = vmatmul.mubr.f32.gmra.mrb[206].mxu0 %v1892_v28  ;;  %1389 = vmatprep.mubr.f32.mxu1 %v718_v11  ;;  %v10536_v47 = vpop.f32.mrb[101].mxu0 }
 0x29c   :  { %8227 = vmatpush3.bf16.msra.mxu0 %v8224_v59  ;;  %7076 = vmatprep.mubr.f32.mxu0 %v10067_v26  ;;  %v5503_v26 = vld [vmem:[%s12527_s4 + $0x128] sm:$0xff] }
 0x29d   :  { %v1126_v19 = vpop.f32.mrb[70].mxu1  ;;  %8229 = vmatprep.subr.bf16.mxu0 %v8228_v17  ;;  %v8236_v27 = vpack.c.bf16 %v5503_v26, %v5502_v9  ;;  %v733_v9 = vld [vmem:[%s12525_s3 + $0x8c0] sm:$0xff] }
 0x29e   :  { %v10543_v39 = vadd.f32 %v10340_v40, %v1126_v19  ;;  %v1128_v28 = vpop.f32.mrb[71].mxu1  ;;  %1390 = vmatmul.mubr.f32.gmra.mrb[176].mxu1 %v717_v5  ;;  %v10551_v61 = vpop.f32.mrb[102].mxu0  ;;  %v720_v40 = vld [vmem:[%s12525_s3 + $0x858] sm:$0xff]  ;;  %v5508_v19 = vld [vmem:[%s12527_s4 + $0x150] sm:$0xff] }
 0x29f   :  { %7077 = vmatmul.mubr.f32.vlgmr.msra.gmra.mrb[192].mxu0 %v10061_v23  ;;  %1394 = vmatprep.mubr.f32.mxu1 %v721_v31  ;;  %v10557_v37 = vpop.f32.mrb[103].mxu0 }
 0x2a0   :  { %7079 = vmatprep.mubr.f32.mxu0 %v10086_v36  ;;  %8231 = vmatpush3.bf16.msra.mxu0 %v8228_v17  ;;  %v5505_v36 = vld [vmem:[%s12527_s4 + $0x138] sm:$0xff] }
 0x2a1   :  { %v1131_v58 = vpop.f32.mrb[72].mxu1  ;;  %8233 = vmatprep.subr.bf16.mxu0 %v8232_v35  ;;  %v8240_v22 = vpack.c.bf16 %v5505_v36, %v5504_v29  ;;  %v736_v29 = vld [vmem:[%s12525_s3 + $0x8d8] sm:$0xff] }
 0x2a2   :  { %v10564_v52 = vadd.f32 %v10372_v48, %v1131_v58  ;;  %v1133_v23 = vpop.f32.mrb[73].mxu1  ;;  %1395 = vmatmul.mubr.f32.gmra.mrb[178].mxu1 %v720_v40  ;;  %v10572_v59 = vpop.f32.mrb[104].mxu0  ;;  %v723_v48 = vld [vmem:[%s12525_s3 + $0x870] sm:$0xff]  ;;  %v5510_v58 = vld [vmem:[%s12527_s4 + $0x160] sm:$0xff] }
 0x2a3   :  { %7080 = vmatmul.mubr.f32.gmra.mrb[194].mxu0 %v10080_v33  ;;  %1399 = vmatprep.mubr.f32.mxu1 %v724_v32  ;;  %v10578_v15 = vpop.f32.mrb[105].mxu0 }
 0x2a4   :  { %7082 = vmatprep.mubr.f32.mxu0 %v10104_v46  ;;  %8235 = vmatpush3.bf16.msra.mxu0 %v8232_v35  ;;  %v5507_v46 = vld [vmem:[%s12527_s4 + $0x148] sm:$0xff] }
 0x2a5   :  { %v1136_v55 = vpop.f32.mrb[74].mxu1  ;;  %8237 = vmatprep.subr.bf16.mxu0 %v8236_v27  ;;  %v8244_v5 = vpack.c.bf16 %v5507_v46, %v5506_v57  ;;  %v739_v57 = vld [vmem:[%s12525_s3 + $0x8f0] sm:$0xff] }
 0x2a6   :  { %v10585_v11 = vadd.f32 %v10367_v1, %v1136_v55  ;;  %v1138_v33 = vpop.f32.mrb[75].mxu1  ;;  %1400 = vmatmul.mubr.f32.gmra.mrb[180].mxu1 %v723_v48  ;;  %v10593_v17 = vpop.f32.mrb[106].mxu0  ;;  %v726_v1 = vld [vmem:[%s12525_s3 + $0x888] sm:$0xff]  ;;  %v5512_v55 = vld [vmem:[%s12527_s4 + $0x170] sm:$0xff] }
 0x2a7   :  { %7083 = vmatmul.mubr.f32.gmra.mrb[196].mxu0 %v10098_v42  ;;  %1404 = vmatprep.mubr.f32.mxu1 %v727_v0  ;;  %v10599_v51 = vpop.f32.mrb[107].mxu0 }
 0x2a8   :  { %7085 = vmatprep.mubr.f32.mxu0 %v10122_v56  ;;  %8239 = vmatpush3.bf16.msra.mxu0 %v8236_v27  ;;  %v5509_v56 = vld [vmem:[%s12527_s4 + $0x158] sm:$0xff] }
 0x2a9   :  { %v1141_v6 = vpop.f32.mrb[76].mxu1  ;;  %8241 = vmatprep.subr.bf16.mxu0 %v8240_v22  ;;  %v8248_v40 = vpack.c.bf16 %v5509_v56, %v5508_v19  ;;  %v742_v19 = vld [vmem:[%s12525_s3 + $0x908] sm:$0xff] }
 0x2aa   :  { %v10606_v31 = vadd.f32 %v10394_v24, %v1141_v6  ;;  %v1143_v42 = vpop.f32.mrb[77].mxu1  ;;  %1405 = vmatmul.mubr.f32.gmra.mrb[182].mxu1 %v726_v1  ;;  %v10614_v35 = vpop.f32.mrb[108].mxu0  ;;  %v729_v24 = vld [vmem:[%s12525_s3 + $0x8a0] sm:$0xff] }
 0x2ab   :  { %7086 = vmatmul.mubr.f32.gmra.mrb[198].mxu0 %v10116_v53  ;;  %1409 = vmatprep.mubr.f32.mxu1 %v730_v49  ;;  %v10620_v28 = vpop.f32.mrb[109].mxu0  ;;  %v5514_v6 = vld [vmem:[%s12527_s4 + $0x180] sm:$0xff] }
 0x2ac   :  { %7088 = vmatprep.mubr.f32.mxu0 %v10139_v2  ;;  %8243 = vmatpush3.bf16.msra.mxu0 %v8240_v22  ;;  %v5511_v2 = vld [vmem:[%s12527_s4 + $0x168] sm:$0xff] }
 0x2ad   :  { %v1146_v26 = vpop.f32.mrb[78].mxu1  ;;  %8245 = vmatprep.subr.bf16.mxu0 %v8244_v5  ;;  %v8252_v48 = vpack.c.bf16 %v5511_v2, %v5510_v58  ;;  %v745_v58 = vld [vmem:[%s12525_s3 + $0x920] sm:$0xff] }
 0x2ae   :  { %v10627_v32 = vadd.f32 %v10388_v20, %v1146_v26  ;;  %v1148_v53 = vpop.f32.mrb[79].mxu1  ;;  %1410 = vmatmul.mubr.f32.gmra.mrb[184].mxu1 %v729_v24  ;;  %v10635_v27 = vpop.f32.mrb[110].mxu0  ;;  %v732_v20 = vld [vmem:[%s12525_s3 + $0x8b8] sm:$0xff]  ;;  %v5516_v26 = vld [vmem:[%s12527_s4 + $0x190] sm:$0xff] }
 0x2af   :  { %7089 = vmatmul.mubr.f32.gmra.mrb[200].mxu0 %v10133_v63  ;;  %1414 = vmatprep.mubr.f32.mxu1 %v733_v9  ;;  %v10641_v23 = vpop.f32.mrb[111].mxu0 }
 0x2b0   :  { %7091 = vmatprep.mubr.f32.mxu0 %v10155_v14  ;;  %8247 = vmatpush3.bf16.msra.mxu0 %v8244_v5  ;;  %v5513_v14 = vld [vmem:[%s12527_s4 + $0x178] sm:$0xff] }
 0x2b1   :  { %v1151_v36 = vpop.f32.mrb[80].mxu1  ;;  %8249 = vmatprep.subr.bf16.mxu0 %v8248_v40  ;;  %v8256_v1 = vpack.c.bf16 %v5513_v14, %v5512_v55  ;;  %v748_v55 = vld [vmem:[%s12525_s3 + $0x938] sm:$0xff]  ;;  %v5615_v14 = vld [vmem:[%s12528_s6 + $0xa0] sm:$0xff] }
 0x2b2   :  { %v10648_v0 = vadd.f32 %v10416_v41, %v1151_v36  ;;  %v1153_v63 = vpop.f32.mrb[81].mxu1  ;;  %1415 = vmatmul.mubr.f32.gmra.mrb[186].mxu1 %v732_v20  ;;  %v10656_v22 = vpop.f32.mrb[112].mxu0  ;;  %v735_v41 = vld [vmem:[%s12525_s3 + $0x8d0] sm:$0xff]  ;;  %v5518_v36 = vld [vmem:[%s12527_s4 + $0x1a0] sm:$0xff] }
 0x2b3   :  { %7092 = vmatmul.mubr.f32.gmra.mrb[202].mxu0 %v10150_v10  ;;  %1419 = vmatprep.mubr.f32.mxu1 %v736_v29  ;;  %v10662_v33 = vpop.f32.mrb[113].mxu0 }
 0x2b4   :  { %7094 = vmatprep.mubr.f32.mxu0 %v10171_v25  ;;  %8251 = vmatpush3.bf16.msra.mxu0 %v8248_v40  ;;  %v5515_v25 = vld [vmem:[%s12527_s4 + $0x188] sm:$0xff] }
 0x2b5   :  { %v1156_v46 = vpop.f32.mrb[82].mxu1  ;;  %8253 = vmatprep.subr.bf16.mxu0 %v8252_v48  ;;  %v8260_v24 = vpack.c.bf16 %v5515_v25, %v5514_v6  ;;  %v5521_v6 = vld [vmem:[%s12527_s4 + $0x1b8] sm:$0xff] }
 0x2b6   :  { %v10669_v49 = vadd.f32 %v10410_v3, %v1156_v46  ;;  %v1158_v10 = vpop.f32.mrb[83].mxu1  ;;  %1420 = vmatmul.mubr.f32.gmra.mrb[188].mxu1 %v735_v41  ;;  %v10677_v5 = vpop.f32.mrb[114].mxu0  ;;  %v738_v3 = vld [vmem:[%s12525_s3 + $0x8e8] sm:$0xff] }
 0x2b7   :  { %7095 = vmatmul.mubr.f32.gmra.mrb[204].mxu0 %v10166_v21  ;;  %1424 = vmatprep.mubr.f32.mxu1 %v739_v57  ;;  %v10683_v42 = vpop.f32.mrb[115].mxu0  ;;  %v5520_v10 = vld [vmem:[%s12527_s4 + $0x1b0] sm:$0xff] }
 0x2b8   :  { %7097 = vmatprep.mubr.f32.mxu0 %v10187_v38  ;;  %8255 = vmatpush3.bf16.msra.mxu0 %v8252_v48  ;;  %v5517_v38 = vld [vmem:[%s12527_s4 + $0x198] sm:$0xff] }
 0x2b9   :  { %v1161_v56 = vpop.f32.mrb[84].mxu1  ;;  %8257 = vmatprep.subr.bf16.mxu0 %v8256_v1  ;;  %v8264_v20 = vpack.c.bf16 %v5517_v38, %v5516_v26  ;;  %v5522_v26 = vld [vmem:[%s12527_s4 + $0x1c0] sm:$0xff] }
 0x2ba   :  { %v10690_v9 = vadd.f32 %v10437_v60, %v1161_v56  ;;  %v1163_v21 = vpop.f32.mrb[85].mxu1  ;;  %1425 = vmatmul.mubr.f32.gmra.mrb[190].mxu1 %v738_v3  ;;  %v10698_v40 = vpop.f32.mrb[116].mxu0  ;;  %v741_v60 = vld [vmem:[%s12525_s3 + $0x900] sm:$0xff] }
 0x2bb   :  { %7098 = vmatmul.mubr.f32.gmra.mrb[206].mxu0 %v10182_v34  ;;  %1429 = vmatprep.mubr.f32.mxu1 %v742_v19  ;;  %v10704_v53 = vpop.f32.mrb[117].mxu0  ;;  %v751_v19 = vld [vmem:[%s12525_s3 + $0x950] sm:$0xff] }
 0x2bc   :  { %8259 = vmatpush3.bf16.msra.mxu0 %v8256_v1  ;;  %7132 = vmatprep.mubr.f32.mxu0 %v10482_v44  ;;  %v5519_v44 = vld [vmem:[%s12527_s4 + $0x1a8] sm:$0xff] }
 0x2bd   :  { %v1166_v2 = vpop.f32.mrb[86].mxu1  ;;  %8261 = vmatprep.subr.bf16.mxu0 %v8260_v24  ;;  %v8268_v57 = vpack.c.bf16 %v5519_v44, %v5518_v36  ;;  %v5524_v36 = vld [vmem:[%s12527_s4 + $0x1d0] sm:$0xff] }
 0x2be   :  { %v10711_v29 = vadd.f32 %v10431_v54, %v1166_v2  ;;  %v1168_v34 = vpop.f32.mrb[87].mxu1  ;;  %1430 = vmatmul.mubr.f32.gmra.mrb[192].mxu1 %v741_v60  ;;  %v10719_v48 = vpop.f32.mrb[118].mxu0  ;;  %v744_v54 = vld [vmem:[%s12525_s3 + $0x918] sm:$0xff] }
 0x2bf   :  { %7133 = vmatmul.mubr.f32.vlgmr.msra.gmra.mrb[192].mxu0 %v10503_v62  ;;  %1434 = vmatprep.mubr.f32.mxu1 %v745_v58  ;;  %v10725_v63 = vpop.f32.mrb[119].mxu0  ;;  %v5616_v62 = vld [vmem:[%s12528_s6 + $0xa8] sm:$0xff] }
 0x2c0   :  { %7135 = vmatprep.mubr.f32.mxu0 %v10523_v18  ;;  %8263 = vmatpush3.bf16.msra.mxu0 %v8260_v24  ;;  %v8459_v46 = vpack.c.bf16 %v5616_v62, %v5615_v14  ;;  %v8272_v24 = vpack.c.bf16 %v5521_v6, %v5520_v10  ;;  %v754_v58 = vld [vmem:[%s12525_s3 + $0x968] sm:$0xff]  ;;  %v760_v10 = vld [vmem:[%s12525_s3 + $0x998] sm:$0xff] }
 0x2c1   :  { %v1171_v41 = vpop.f32.mrb[88].mxu1  ;;  %8265 = vmatprep.subr.bf16.mxu0 %v8264_v20 }
 0x2c2   :  { %v10738_v1 = vadd.f32 %v10456_v12, %v1171_v41  ;;  %v1173_v18 = vpop.f32.mrb[89].mxu1  ;;  %1435 = vmatmul.mubr.f32.gmra.mrb[194].mxu1 %v744_v54  ;;  %v10746_v25 = vpop.f32.mrb[120].mxu0  ;;  %v747_v12 = vld [vmem:[%s12525_s3 + $0x930] sm:$0xff]  ;;  %v753_v54 = vld [vmem:[%s12525_s3 + $0x960] sm:$0xff] }
 0x2c3   :  { %7136 = vmatmul.mubr.f32.gmra.mrb[194].mxu0 %v10543_v39  ;;  %1439 = vmatprep.mubr.f32.mxu1 %v748_v55  ;;  %v10752_v3 = vpop.f32.mrb[121].mxu0  ;;  %v757_v55 = vld [vmem:[%s12525_s3 + $0x980] sm:$0xff]  ;;  %v756_v18 = vld [vmem:[%s12525_s3 + $0x978] sm:$0xff] }
 0x2c4   :  { %7138 = vmatprep.mubr.f32.mxu0 %v10564_v52  ;;  %8267 = vmatpush3.bf16.msra.mxu0 %v8264_v20  ;;  %v5523_v52 = vld [vmem:[%s12527_s4 + $0x1c8] sm:$0xff] }
 0x2c5   :  { %v1176_v56 = vpop.f32.mrb[90].mxu1  ;;  %8269 = vmatprep.subr.bf16.mxu0 %v8268_v57  ;;  %8460 = vmatpush3.bf16.msra.mxu1 %v8459_v46  ;;  %v8276_v20 = vpack.c.bf16 %v5523_v52, %v5522_v26  ;;  %v763_v26 = vld [vmem:[%s12525_s3 + $0x9b0] sm:$0xff] }
 0x2c6   :  { %v10759_v39 = vadd.f32 %v10450_v13, %v1176_v56  ;;  %v1178_v21 = vpop.f32.mrb[91].mxu1  ;;  %1440 = vmatmul.mubr.f32.gmra.mrb[196].mxu1 %v747_v12  ;;  %v10767_v38 = vpop.f32.mrb[122].mxu0  ;;  %8461 = vmatprep.subr.bf16.mxu1 %v12532_v8  ;;  %v750_v13 = vld [vmem:[%s12525_s3 + $0x948] sm:$0xff]  ;;  %v5528_v56 = vld [vmem:[%s12527_s4 + $0x1f0] sm:$0xff] }
 0x2c7   :  { %7139 = vmatmul.mubr.f32.gmra.mrb[196].mxu0 %v10585_v11  ;;  %1444 = vmatprep.mubr.f32.mxu1 %v751_v19  ;;  %v10774_v60 = vpop.f32.mrb[123].mxu0  ;;  %v759_v21 = vld [vmem:[%s12525_s3 + $0x990] sm:$0xff] }
 0x2c8   :  { %7141 = vmatprep.mubr.f32.mxu0 %v10606_v31  ;;  %8271 = vmatpush3.bf16.msra.mxu0 %v8268_v57  ;;  %v5525_v31 = vld [vmem:[%s12527_s4 + $0x1d8] sm:$0xff]  ;;  %v5526_v57 = vld [vmem:[%s12527_s4 + $0x1e0] sm:$0xff] }
 0x2c9   :  { %v1181_v2 = vpop.f32.mrb[92].mxu1  ;;  %8273 = vmatprep.subr.bf16.mxu0 %v8272_v24  ;;  %v8280_v62 = vpack.c.bf16 %v5525_v31, %v5524_v36 }
 0x2ca   :  { %v1967_v34 = vadd.f32 %v10475_v7, %v1181_v2  ;;  %v1183_v11 = vpop.f32.mrb[93].mxu1  ;;  %1445 = vmatmul.mubr.f32.gmra.mrb[198].mxu1 %v750_v13  ;;  %v10787_v44 = vpop.f32.mrb[124].mxu0  ;;  %v5530_v2 = vld [vmem:[%s12527_s4 + $0x200] sm:$0xff] }
 0x2cb   :  { %7142 = vmatmul.mubr.f32.gmra.mrb[198].mxu0 %v10627_v32  ;;  %1449 = vmatprep.mubr.f32.mxu1 %v754_v58  ;;  %v10793_v7 = vpop.f32.mrb[125].mxu0  ;;  %v762_v11 = vld [vmem:[%s12525_s3 + $0x9a8] sm:$0xff] }
 0x2cc   :  { %7144 = vmatprep.mubr.f32.mxu0 %v10648_v0  ;;  %8275 = vmatpush3.bf16.msra.mxu0 %v8272_v24  ;;  %v5527_v0 = vld [vmem:[%s12527_s4 + $0x1e8] sm:$0xff] }
 0x2cd   :  { %v1186_v14 = vpop.f32.mrb[94].mxu1  ;;  %8277 = vmatprep.subr.bf16.mxu0 %v8276_v20  ;;  %v8284_v12 = vpack.c.bf16 %v5527_v0, %v5526_v57 }
 0x2ce   :  { %v1972_v41 = vadd.f32 %v10469_v30, %v1186_v14  ;;  %v1188_v32 = vpop.f32.mrb[95].mxu1  ;;  %1450 = vmatmul.mubr.f32.gmra.mrb[200].mxu1 %v753_v54  ;;  %v10806_v46 = vpop.f32.mrb[126].mxu0 }
 0x2cf   :  { %7145 = vmatmul.mubr.f32.gmra.mrb[200].mxu0 %v10669_v49  ;;  %1454 = vmatprep.mubr.f32.mxu1 %v757_v55  ;;  %v10812_v30 = vpop.f32.mrb[127].mxu0 }
 0x2d0   :  { %7147 = vmatprep.mubr.f32.mxu0 %v10690_v9  ;;  %8279 = vmatpush3.bf16.msra.mxu0 %v8276_v20  ;;  %v5529_v9 = vld [vmem:[%s12527_s4 + $0x1f8] sm:$0xff] }
 0x2d1   :  { %v1191_v6 = vpop.f32.mrb[96].mxu1  ;;  %8281 = vmatprep.subr.bf16.mxu0 %v8280_v62  ;;  %v8288_v13 = vpack.c.bf16 %v5529_v9, %v5528_v56 }
 0x2d2   :  { %v1977_v19 = vadd.f32 %v10496_v16, %v1191_v6  ;;  %v1193_v49 = vpop.f32.mrb[97].mxu1  ;;  %1455 = vmatmul.mubr.f32.gmra.mrb[202].mxu1 %v756_v18  ;;  %v10825_v24 = vpop.f32.mrb[128].mxu0 }
 0x2d3   :  { %7148 = vmatmul.mubr.f32.gmra.mrb[202].mxu0 %v10711_v29  ;;  %1459 = vmatprep.mubr.f32.mxu1 %v760_v10  ;;  %v10831_v16 = vpop.f32.mrb[129].mxu0  ;;  %v5535_v10 = vld [vmem:[%s12527_s4 + $0x228] sm:$0xff] }
 0x2d4   :  { %7150 = vmatprep.mubr.f32.mxu0 %v10738_v1  ;;  %8283 = vmatpush3.bf16.msra.mxu0 %v8280_v62  ;;  %v5531_v1 = vld [vmem:[%s12527_s4 + $0x208] sm:$0xff]  ;;  %v765_v62 = vld [vmem:[%s12525_s3 + $0x9c0] sm:$0xff] }
 0x2d5   :  { %v1196_v52 = vpop.f32.mrb[98].mxu1  ;;  %8285 = vmatprep.subr.bf16.mxu0 %v8284_v12  ;;  %v8292_v31 = vpack.c.bf16 %v5531_v1, %v5530_v2 }
 0x2d6   :  { %v1982_v58 = vadd.f32 %v10490_v50, %v1196_v52  ;;  %v1198_v29 = vpop.f32.mrb[99].mxu1  ;;  %1460 = vmatmul.mubr.f32.gmra.mrb[204].mxu1 %v759_v21  ;;  %v10844_v20 = vpop.f32.mrb[130].mxu0  ;;  %v766_v50 = vld [vmem:[%s12525_s3 + $0x9c8] sm:$0xff]  ;;  %v5536_v52 = vld [vmem:[%s12527_s4 + $0x230] sm:$0xff] }
 0x2d7   :  { %7151 = vmatmul.mubr.f32.gmra.mrb[204].mxu0 %v10759_v39  ;;  %1464 = vmatprep.mubr.f32.mxu1 %v763_v26  ;;  %v10853_v54 = vpop.f32.mrb[131].mxu0  ;;  %v5532_v39 = vld [vmem:[%s12527_s4 + $0x210] sm:$0xff] }
 0x2d8   :  { %7153 = vmatprep.mubr.f32.mxu0 %v1967_v34  ;;  %8287 = vmatpush3.bf16.msra.mxu0 %v8284_v12  ;;  %v5533_v34 = vld [vmem:[%s12527_s4 + $0x218] sm:$0xff]  ;;  %v771_v26 = vld [vmem:[%s12525_s3 + $0x9f0] sm:$0xff] }
 0x2d9   :  { %v1201_v36 = vpop.f32.mrb[100].mxu1  ;;  %8289 = vmatprep.subr.bf16.mxu0 %v8288_v13  ;;  %v8296_v57 = vpack.c.bf16 %v5533_v34, %v5532_v39  ;;  %v768_v12 = vld [vmem:[%s12525_s3 + $0x9d8] sm:$0xff] }
 0x2da   :  { %v1987_v55 = vadd.f32 %v10517_v43, %v1201_v36  ;;  %v1203_v14 = vpop.f32.mrb[101].mxu1  ;;  %1465 = vmatmul.mubr.f32.gmra.mrb[206].mxu1 %v762_v11  ;;  %v769_v43 = vld [vmem:[%s12525_s3 + $0x9e0] sm:$0xff]  ;;  %v10875_v6 = vpop.f32.mrb[132].mxu0 }
 0x2db   :  { %7154 = vmatmul.mubr.f32.gmra.mrb[206].mxu0 %v1972_v41  ;;  %1469 = vmatprep.mubr.f32.mxu1 %v766_v50  ;;  %v5534_v41 = vld [vmem:[%s12527_s4 + $0x220] sm:$0xff]  ;;  %v10883_v56 = vpop.f32.mrb[133].mxu0  ;;  %v774_v50 = vld [vmem:[%s12525_s3 + $0xa08] sm:$0xff] }
 0x2dc   :  { %8291 = vmatpush3.bf16.msra.mxu0 %v8288_v13  ;;  %7188 = vmatprep.mubr.f32.mxu0 %v1977_v19  ;;  %v8300_v49 = vpack.c.bf16 %v5535_v10, %v5534_v41  ;;  %v5537_v13 = vld [vmem:[%s12527_s4 + $0x238] sm:$0xff]  ;;  %v5538_v36 = vld [vmem:[%s12527_s4 + $0x240] sm:$0xff] }
 0x2dd   :  { %v1206_v32 = vpop.f32.mrb[102].mxu1  ;;  %8293 = vmatprep.subr.bf16.mxu0 %v8292_v31  ;;  %v8304_v1 = vpack.c.bf16 %v5537_v13, %v5536_v52 }
 0x2de   :  { %v1992_v0 = vadd.f32 %v10511_v4, %v1206_v32  ;;  %v1208_v18 = vpop.f32.mrb[103].mxu1  ;;  %1470 = vmatmul.mubr.f32.gmra.mrb[208].mxu1 %v765_v62  ;;  %v772_v4 = vld [vmem:[%s12525_s3 + $0x9f8] sm:$0xff]  ;;  %v10899_v11 = vpop.f32.mrb[134].mxu0  ;;  %v5540_v32 = vld [vmem:[%s12527_s4 + $0x250] sm:$0xff] }
 0x2df   :  { %7189 = vmatmul.mubr.f32.vlgmr.msra.gmra.mrb[192].mxu0 %v1982_v58  ;;  %1474 = vmatprep.mubr.f32.mxu1 %v769_v43  ;;  %v10913_v14 = vpop.f32.mrb[135].mxu0  ;;  %v777_v43 = vld [vmem:[%s12525_s3 + $0xa20] sm:$0xff] }
 0x2e0   :  { %7191 = vmatprep.mubr.f32.mxu0 %v1987_v55  ;;  %8295 = vmatpush3.bf16.msra.mxu0 %v8292_v31  ;;  %v5539_v31 = vld [vmem:[%s12527_s4 + $0x248] sm:$0xff] }
 0x2e1   :  { %v1211_v19 = vpop.f32.mrb[104].mxu1  ;;  %8297 = vmatprep.subr.bf16.mxu0 %v8296_v57  ;;  %v8308_v62 = vpack.c.bf16 %v5539_v31, %v5538_v36 }
 0x2e2   :  { %v1997_v9 = vadd.f32 %v10536_v47, %v1211_v19  ;;  %v1213_v21 = vpop.f32.mrb[105].mxu1  ;;  %1475 = vmatmul.mubr.f32.gmra.mrb[210].mxu1 %v768_v12  ;;  %v775_v47 = vld [vmem:[%s12525_s3 + $0xa10] sm:$0xff]  ;;  %v10929_v12 = vpop.f32.mrb[136].mxu0  ;;  %v5542_v19 = vld [vmem:[%s12527_s4 + $0x260] sm:$0xff] }
 0x2e3   :  { %7192 = vmatmul.mubr.f32.gmra.mrb[194].mxu0 %v1992_v0  ;;  %1479 = vmatprep.mubr.f32.mxu1 %v772_v4  ;;  %v780_v4 = vld [vmem:[%s12525_s3 + $0xa38] sm:$0xff]  ;;  %v10943_v21 = vpop.f32.mrb[137].mxu0 }
 0x2e4   :  { %7194 = vmatprep.mubr.f32.mxu0 %v1997_v9  ;;  %8299 = vmatpush3.bf16.msra.mxu0 %v8296_v57  ;;  %v5541_v57 = vld [vmem:[%s12527_s4 + $0x258] sm:$0xff] }
 0x2e5   :  { %v1216_v58 = vpop.f32.mrb[106].mxu1  ;;  %8301 = vmatprep.subr.bf16.mxu0 %v8300_v49  ;;  %v8312_v10 = vpack.c.bf16 %v5541_v57, %v5540_v32 }
 0x2e6   :  { %v2002_v29 = vadd.f32 %v10531_v45, %v1216_v58  ;;  %v1218_v2 = vpop.f32.mrb[107].mxu1  ;;  %1480 = vmatmul.mubr.f32.gmra.mrb[212].mxu1 %v771_v26  ;;  %v778_v45 = vld [vmem:[%s12525_s3 + $0xa28] sm:$0xff]  ;;  %v5544_v58 = vld [vmem:[%s12527_s4 + $0x270] sm:$0xff]  ;;  %v10959_v31 = vpop.f32.mrb[138].mxu0 }
 0x2e7   :  { %1484 = vmatprep.mubr.f32.mxu1 %v775_v47  ;;  %v783_v47 = vld [vmem:[%s12525_s3 + $0xa50] sm:$0xff] }
 0x2e8   :  { %7195 = vmatmul.mubr.f32.gmra.mrb[196].mxu0 %v2002_v29  ;;  %v5545_v29 = vld [vmem:[%s12527_s4 + $0x278] sm:$0xff] }
 0x2e9   :  { %v1221_v55 = vpop.f32.mrb[108].mxu1  ;;  %8303 = vmatpush3.bf16.msra.mxu0 %v8300_v49  ;;  %v5543_v49 = vld [vmem:[%s12527_s4 + $0x268] sm:$0xff]  ;;  %v8320_v36 = vpack.c.bf16 %v5545_v29, %v5544_v58 }
 0x2ea   :  { %v2007_v39 = vadd.f32 %v10557_v37, %v1221_v55  ;;  %v1223_v34 = vpop.f32.mrb[109].mxu1  ;;  %1485 = vmatmul.mubr.f32.gmra.mrb[214].mxu1 %v774_v50  ;;  %8305 = vmatprep.subr.bf16.mxu0 %v8304_v1  ;;  %v781_v37 = vld [vmem:[%s12525_s3 + $0xa40] sm:$0xff]  ;;  %v8316_v13 = vpack.c.bf16 %v5543_v49, %v5542_v19  ;;  %v796_v19 = vld [vmem:[%s12525_s3 + $0xab8] sm:$0xff] }
 0x2eb   :  { %1489 = vmatprep.mubr.f32.mxu1 %v778_v45  ;;  %v786_v45 = vld [vmem:[%s12525_s3 + $0xa68] sm:$0xff]  ;;  %v5546_v55 = vld [vmem:[%s12527_s4 + $0x280] sm:$0xff] }
 0x2ec   :  { %7197 = vmatprep.mubr.f32.mxu0 %v2007_v39  ;;  %v5547_v39 = vld [vmem:[%s12527_s4 + $0x288] sm:$0xff] }
 0x2ed   :  { %v1226_v0 = vpop.f32.mrb[110].mxu1  ;;  %8307 = vmatpush3.bf16.msra.mxu0 %v8304_v1  ;;  %v10976_v57 = vpack.c.bf16 %v5547_v39, %v5546_v55 }
 0x2ee   :  { %v2012_v18 = vadd.f32 %v10551_v61, %v1226_v0  ;;  %v1228_v41 = vpop.f32.mrb[111].mxu1  ;;  %1490 = vmatmul.mubr.f32.gmra.mrb[216].mxu1 %v777_v43  ;;  %8309 = vmatprep.subr.bf16.mxu0 %v8308_v62  ;;  %v784_v61 = vld [vmem:[%s12525_s3 + $0xa58] sm:$0xff]  ;;  %v793_v0 = vld [vmem:[%s12525_s3 + $0xaa0] sm:$0xff] }
 0x2ef   :  { %1494 = vmatprep.mubr.f32.mxu1 %v781_v37  ;;  %v789_v37 = vld [vmem:[%s12525_s3 + $0xa80] sm:$0xff] }
 0x2f0   :  { %7198 = vmatmul.mubr.f32.gmra.mrb[198].mxu0 %v2012_v18 }
 0x2f1   :  { %v1231_v9 = vpop.f32.mrb[112].mxu1  ;;  %8311 = vmatpush3.bf16.msra.mxu0 %v8308_v62  ;;  %v10973_v62 = vpop.f32.mrb[139].mxu0 }
 0x2f2   :  { %v2017_v26 = vadd.f32 %v10578_v15, %v1231_v9  ;;  %v1233_v52 = vpop.f32.mrb[113].mxu1  ;;  %1495 = vmatmul.mubr.f32.gmra.mrb[218].mxu1 %v780_v4  ;;  %8313 = vmatprep.subr.bf16.mxu0 %v8312_v10  ;;  %v787_v15 = vld [vmem:[%s12525_s3 + $0xa70] sm:$0xff]  ;;  %v792_v4 = vld [vmem:[%s12525_s3 + $0xa98] sm:$0xff] }
 0x2f3   :  { %1499 = vmatprep.mubr.f32.mxu1 %v784_v61  ;;  %v799_v52 = vld [vmem:[%s12525_s3 + $0xad0] sm:$0xff] }
 0x2f4   :  { %7200 = vmatprep.mubr.f32.mxu0 %v2017_v26  ;;  %v795_v26 = vld [vmem:[%s12525_s3 + $0xab0] sm:$0xff] }
 0x2f5   :  { %v1236_v2 = vpop.f32.mrb[114].mxu1  ;;  %8315 = vmatpush3.bf16.msra.mxu0 %v8312_v10  ;;  %v10986_v10 = vpop.f32.mrb[140].mxu0 }
 0x2f6   :  { %v2022_v1 = vadd.f32 %v10572_v59, %v1236_v2  ;;  %v1238_v50 = vpop.f32.mrb[115].mxu1  ;;  %1500 = vmatmul.mubr.f32.gmra.mrb[220].mxu1 %v783_v47  ;;  %8317 = vmatprep.subr.bf16.mxu0 %v8316_v13  ;;  %v790_v59 = vld [vmem:[%s12525_s3 + $0xa88] sm:$0xff]  ;;  %v10994_v61 = vpop.f32.mrb[141].mxu0 }
 0x2f7   :  { %1504 = vmatprep.mubr.f32.mxu1 %v787_v15  ;;  %v11004_v29 = vpop.f32.mrb[142].mxu0  ;;  %v802_v2 = vld [vmem:[%s12525_s3 + $0xae8] sm:$0xff] }
 0x2f8   :  { %7201 = vmatmul.mubr.f32.gmra.mrb[200].mxu0 %v2022_v1  ;;  %v11009_v15 = vpop.f32.mrb[143].mxu0  ;;  %v5618_v1 = vld [vmem:[%s12528_s6 + $0xb8] sm:$0xff] }
 0x2f9   :  { %v1241_v34 = vpop.f32.mrb[116].mxu1  ;;  %8319 = vmatpush3.bf16.msra.mxu0 %v8316_v13  ;;  %v11021_v39 = vpop.f32.mrb[144].mxu0 }
 0x2fa   :  { %v2027_v43 = vadd.f32 %v10599_v51, %v1241_v34  ;;  %v1243_v32 = vpop.f32.mrb[117].mxu1  ;;  %1505 = vmatmul.mubr.f32.gmra.mrb[222].mxu1 %v786_v45  ;;  %8321 = vmatprep.subr.bf16.mxu0 %v8320_v36  ;;  %v11026_v34 = vpop.f32.mrb[145].mxu0 }
 0x2fb   :  { %1509 = vmatprep.mubr.f32.mxu1 %v790_v59  ;;  %v801_v59 = vld [vmem:[%s12525_s3 + $0xae0] sm:$0xff] }
 0x2fc   :  { %7203 = vmatprep.mubr.f32.mxu0 %v2027_v43  ;;  %v805_v43 = vld [vmem:[%s12525_s3 + $0xb00] sm:$0xff] }
 0x2fd   :  { %v1246_v18 = vpop.f32.mrb[118].mxu1  ;;  %8323 = vmatpush3.bf16.msra.mxu0 %v8320_v36 }
 0x2fe   :  { %v2032_v41 = vadd.f32 %v10593_v17, %v1246_v18  ;;  %v1248_v51 = vpop.f32.mrb[119].mxu1  ;;  %1510 = vmatmul.mubr.f32.gmra.mrb[224].mxu1 %v789_v37  ;;  %8325 = vmatprep.subr.bf16.mxu0 %v10976_v57  ;;  %v804_v18 = vld [vmem:[%s12525_s3 + $0xaf8] sm:$0xff] }
 0x2ff   :  { %1514 = vmatprep.mubr.f32.mxu1 %v793_v0  ;;  %v11033_v0 = vpop.f32.mrb[146].mxu0  ;;  %v808_v51 = vld [vmem:[%s12525_s3 + $0xb18] sm:$0xff] }
 0x300   :  { %7204 = vmatmul.mubr.f32.gmra.mrb[202].mxu0 %v2032_v41  ;;  %v11038_v41 = vpop.f32.mrb[147].mxu0 }
 0x301   :  { %v1251_v49 = vpop.f32.mrb[120].mxu1 }
 0x302   :  { %v2037_v17 = vadd.f32 %v10620_v28, %v1251_v49  ;;  %v1253_v9 = vpop.f32.mrb[121].mxu1  ;;  %1515 = vmatmul.mubr.f32.gmra.mrb[226].mxu1 %v792_v4  ;;  %v798_v28 = vld [vmem:[%s12525_s3 + $0xac8] sm:$0xff]  ;;  %v11044_v49 = vpop.f32.mrb[148].mxu0 }
 0x303   :  { %1519 = vmatprep.mubr.f32.mxu1 %v796_v19  ;;  %v5548_v9 = vld [vmem:[%s12527_s4 + $0x290] sm:$0xff] }
 0x304   :  { %7206 = vmatprep.mubr.f32.mxu0 %v2037_v17  ;;  %v807_v17 = vld [vmem:[%s12525_s3 + $0xb10] sm:$0xff] }
 0x305   :  { %v1256_v13 = vpop.f32.mrb[122].mxu1 }
 0x306   :  { %v2042_v47 = vadd.f32 %v10614_v35, %v1256_v13  ;;  %v1258_v58 = vpop.f32.mrb[123].mxu1  ;;  %1520 = vmatmul.mubr.f32.gmra.mrb[228].mxu1 %v795_v26  ;;  %v5617_v35 = vld [vmem:[%s12528_s6 + $0xb0] sm:$0xff]  ;;  %v5549_v26 = vld [vmem:[%s12527_s4 + $0x298] sm:$0xff] }
 0x307   :  { %1524 = vmatprep.mubr.f32.mxu1 %v799_v52  ;;  %v8462_v36 = vpack.c.bf16 %v5618_v1, %v5617_v35  ;;  %v11055_v52 = vpop.f32.mrb[149].mxu0  ;;  %v810_v35 = vld [vmem:[%s12525_s3 + $0xb28] sm:$0xff]  ;;  %v5550_v1 = vld [vmem:[%s12527_s4 + $0x2a0] sm:$0xff] }
 0x308   :  { %7207 = vmatmul.mubr.f32.gmra.mrb[204].mxu0 %v2042_v47 }
 0x309   :  { %v1261_v50 = vpop.f32.mrb[124].mxu1  ;;  %8463 = vmatpush3.bf16.msra.mxu1 %v8462_v36 }
 0x30a   :  { %v2047_v45 = vadd.f32 %v10641_v23, %v1261_v50  ;;  %v1263_v55 = vpop.f32.mrb[125].mxu1  ;;  %1525 = vmatmul.mubr.f32.gmra.mrb[230].mxu1 %v798_v28  ;;  %8464 = vmatprep.subr.bf16.mxu1 %v12532_v8  ;;  %v8328_v28 = vpack.c.bf16 %v5549_v26, %v5548_v9  ;;  %v5551_v50 = vld [vmem:[%s12527_s4 + $0x2a8] sm:$0xff]  ;;  %v816_v9 = vld [vmem:[%s12525_s3 + $0xb58] sm:$0xff]  ;;  %v5554_v26 = vld [vmem:[%s12527_s4 + $0x2c0] sm:$0xff] }
 0x30b   :  { %1529 = vmatprep.mubr.f32.mxu1 %v802_v2  ;;  %v11061_v2 = vpop.f32.mrb[150].mxu0  ;;  %v5564_v8 = vld [vmem:[%s12527_s4 + $0x310] sm:$0xff] }
 0x30c   :  { %7209 = vmatprep.mubr.f32.mxu0 %v2047_v45  ;;  %v11072_v36 = vpop.f32.mrb[151].mxu0 }
 0x30d   :  { %v1266_v23 = vpop.f32.mrb[126].mxu1 }
 0x30e   :  { %v2052_v32 = vadd.f32 %v10635_v27, %v1266_v23  ;;  %v1268_v37 = vpop.f32.mrb[127].mxu1  ;;  %1530 = vmatmul.mubr.f32.gmra.mrb[232].mxu1 %v801_v59  ;;  %v11079_v23 = vpop.f32.mrb[152].mxu0 }
 0x30f   :  { %1534 = vmatprep.mubr.f32.mxu1 %v805_v43  ;;  %v8332_v43 = vpack.c.bf16 %v5551_v50, %v5550_v1  ;;  %v5552_v37 = vld [vmem:[%s12527_s4 + $0x2b0] sm:$0xff] }
 0x310   :  { %7210 = vmatmul.mubr.f32.gmra.mrb[206].mxu0 %v2052_v32  ;;  %v813_v32 = vld [vmem:[%s12525_s3 + $0xb40] sm:$0xff]  ;;  %v819_v50 = vld [vmem:[%s12525_s3 + $0xb70] sm:$0xff] }
 0x311   :  { %v1271_v4 = vpop.f32.mrb[128].mxu1 }
 0x312   :  { %v2057_v19 = vadd.f32 %v10662_v33, %v1271_v4  ;;  %v1273_v27 = vpop.f32.mrb[129].mxu1  ;;  %1535 = vmatmul.mubr.f32.gmra.mrb[234].mxu1 %v804_v18  ;;  %v811_v33 = vld [vmem:[%s12525_s3 + $0xb30] sm:$0xff]  ;;  %v817_v18 = vld [vmem:[%s12525_s3 + $0xb60] sm:$0xff] }
 0x313   :  { %1539 = vmatprep.mubr.f32.mxu1 %v808_v51 }
 0x314   :  { %7244 = vmatprep.mubr.f32.mxu0 %v2057_v19 }
 0x315   :  { %v1276_v13 = vpop.f32.mrb[130].mxu1 }
 0x316   :  { %v2062_v47 = vadd.f32 %v10656_v22, %v1276_v13  ;;  %v1278_v58 = vpop.f32.mrb[131].mxu1  ;;  %1540 = vmatmul.mubr.f32.gmra.mrb[236].mxu1 %v807_v17  ;;  %v814_v22 = vld [vmem:[%s12525_s3 + $0xb48] sm:$0xff]  ;;  %v820_v13 = vld [vmem:[%s12525_s3 + $0xb78] sm:$0xff] }
 0x317   :  { %1544 = vmatprep.mubr.f32.mxu1 %v811_v33  ;;  %v5555_v33 = vld [vmem:[%s12527_s4 + $0x2c8] sm:$0xff] }
 0x318   :  { %7245 = vmatmul.mubr.f32.vlgmr.msra.gmra.mrb[192].mxu0 %v2062_v47 }
 0x319   :  { %v1281_v45 = vpop.f32.mrb[132].mxu1  ;;  %8327 = vmatpush3.bf16.msra.mxu0 %v10976_v57  ;;  %v5553_v57 = vld [vmem:[%s12527_s4 + $0x2b8] sm:$0xff] }
 0x31a   :  { %v2067_v55 = vadd.f32 %v10683_v42, %v1281_v45  ;;  %v1283_v59 = vpop.f32.mrb[133].mxu1  ;;  %1545 = vmatmul.mubr.f32.gmra.mrb[238].mxu1 %v810_v35  ;;  %8329 = vmatprep.subr.bf16.mxu0 %v8328_v28  ;;  %v11090_v42 = vpop.f32.mrb[153].mxu0  ;;  %v8336_v27 = vpack.c.bf16 %v5553_v57, %v5552_v37  ;;  %v8340_v35 = vpack.c.bf16 %v5555_v33, %v5554_v26  ;;  %v5557_v45 = vld [vmem:[%s12527_s4 + $0x2d8] sm:$0xff] }
 0x31b   :  { %1549 = vmatprep.mubr.f32.mxu1 %v814_v22  ;;  %v11096_v17 = vpop.f32.mrb[154].mxu0  ;;  %v5556_v22 = vld [vmem:[%s12527_s4 + $0x2d0] sm:$0xff] }
 0x31c   :  { %7247 = vmatprep.mubr.f32.mxu0 %v2067_v55  ;;  %v823_v55 = vld [vmem:[%s12525_s3 + $0xb90] sm:$0xff]  ;;  %v8344_v37 = vpack.c.bf16 %v5557_v45, %v5556_v22 }
 0x31d   :  { %v1286_v51 = vpop.f32.mrb[134].mxu1  ;;  %8331 = vmatpush3.bf16.msra.mxu0 %v8328_v28 }
 0x31e   :  { %v2072_v4 = vadd.f32 %v10677_v5, %v1286_v51  ;;  %v1288_v19 = vpop.f32.mrb[135].mxu1  ;;  %1550 = vmatmul.mubr.f32.gmra.mrb[240].mxu1 %v813_v32  ;;  %8333 = vmatprep.subr.bf16.mxu0 %v8332_v43  ;;  %v11107_v5 = vpop.f32.mrb[155].mxu0  ;;  %v5558_v51 = vld [vmem:[%s12527_s4 + $0x2e0] sm:$0xff] }
 0x31f   :  { %1554 = vmatprep.mubr.f32.mxu1 %v817_v18  ;;  %v11113_v1 = vpop.f32.mrb[156].mxu0  ;;  %v822_v18 = vld [vmem:[%s12525_s3 + $0xb88] sm:$0xff] }
 0x320   :  { %7248 = vmatmul.mubr.f32.gmra.mrb[194].mxu0 %v2072_v4  ;;  %v5559_v4 = vld [vmem:[%s12527_s4 + $0x2e8] sm:$0xff] }
 0x321   :  { %v1291_v47 = vpop.f32.mrb[136].mxu1  ;;  %8335 = vmatpush3.bf16.msra.mxu0 %v8332_v43  ;;  %v826_v19 = vld [vmem:[%s12525_s3 + $0xba8] sm:$0xff]  ;;  %v8348_v33 = vpack.c.bf16 %v5559_v4, %v5558_v51 }
 0x322   :  { %v2077_v58 = vadd.f32 %v10704_v53, %v1291_v47  ;;  %v1293_v28 = vpop.f32.mrb[137].mxu1  ;;  %1555 = vmatmul.mubr.f32.gmra.mrb[242].mxu1 %v816_v9  ;;  %8337 = vmatprep.subr.bf16.mxu0 %v8336_v27  ;;  %v11124_v53 = vpop.f32.mrb[157].mxu0  ;;  %v825_v47 = vld [vmem:[%s12525_s3 + $0xba0] sm:$0xff] }
 0x323   :  { %1559 = vmatprep.mubr.f32.mxu1 %v820_v13  ;;  %v11130_v57 = vpop.f32.mrb[158].mxu0  ;;  %v5561_v28 = vld [vmem:[%s12527_s4 + $0x2f8] sm:$0xff] }
 0x324   :  { %7250 = vmatprep.mubr.f32.mxu0 %v2077_v58  ;;  %v5560_v58 = vld [vmem:[%s12527_s4 + $0x2f0] sm:$0xff] }
 0x325   :  { %v1296_v59 = vpop.f32.mrb[138].mxu1  ;;  %8339 = vmatpush3.bf16.msra.mxu0 %v8336_v27 }
 0x326   :  { %v2082_v43 = vadd.f32 %v10698_v40, %v1296_v59  ;;  %v1298_v32 = vpop.f32.mrb[139].mxu1  ;;  %1560 = vmatmul.mubr.f32.gmra.mrb[244].mxu1 %v819_v50  ;;  %8341 = vmatprep.subr.bf16.mxu0 %v8340_v35  ;;  %v11141_v40 = vpop.f32.mrb[159].mxu0 }
 0x327   :  { %1564 = vmatprep.mubr.f32.mxu1 %v823_v55  ;;  %v11147_v13 = vpop.f32.mrb[160].mxu0  ;;  %v8352_v55 = vpack.c.bf16 %v5561_v28, %v5560_v58  ;;  %v5562_v32 = vld [vmem:[%s12527_s4 + $0x300] sm:$0xff] }
 0x328   :  { %7251 = vmatmul.mubr.f32.gmra.mrb[196].mxu0 %v2082_v43  ;;  %v828_v43 = vld [vmem:[%s12525_s3 + $0xbb8] sm:$0xff] }
 0x329   :  { %v1301_v27 = vpop.f32.mrb[140].mxu1  ;;  %8343 = vmatpush3.bf16.msra.mxu0 %v8340_v35  ;;  %v829_v35 = vld [vmem:[%s12525_s3 + $0xbc0] sm:$0xff] }
 0x32a   :  { %v2087_v9 = vadd.f32 %v10725_v63, %v1301_v27  ;;  %v1303_v26 = vpop.f32.mrb[141].mxu1  ;;  %1565 = vmatmul.mubr.f32.gmra.mrb[246].mxu1 %v822_v18  ;;  %8345 = vmatprep.subr.bf16.mxu0 %v8344_v37  ;;  %v11158_v63 = vpop.f32.mrb[161].mxu0  ;;  %v832_v18 = vld [vmem:[%s12525_s3 + $0xbd8] sm:$0xff] }
 0x32b   :  { %1569 = vmatprep.mubr.f32.mxu1 %v826_v19  ;;  %v11164_v59 = vpop.f32.mrb[162].mxu0  ;;  %v831_v26 = vld [vmem:[%s12525_s3 + $0xbd0] sm:$0xff] }
 0x32c   :  { %7253 = vmatprep.mubr.f32.mxu0 %v2087_v9 }
 0x32d   :  { %v1306_v50 = vpop.f32.mrb[142].mxu1  ;;  %8347 = vmatpush3.bf16.msra.mxu0 %v8344_v37  ;;  %v5563_v37 = vld [vmem:[%s12527_s4 + $0x308] sm:$0xff] }
 0x32e   :  { %v2092_v22 = vadd.f32 %v10719_v48, %v1306_v50  ;;  %v1308_v45 = vpop.f32.mrb[143].mxu1  ;;  %1570 = vmatmul.mubr.f32.gmra.mrb[248].mxu1 %v825_v47  ;;  %8349 = vmatprep.subr.bf16.mxu0 %v8348_v33  ;;  %v11175_v48 = vpop.f32.mrb[163].mxu0  ;;  %v11181_v27 = vpack.c.bf16 %v5563_v37, %v5562_v32  ;;  %v834_v50 = vld [vmem:[%s12525_s3 + $0xbe8] sm:$0xff]  ;;  %v837_v37 = vld [vmem:[%s12525_s3 + $0xc00] sm:$0xff] }
 0x32f   :  { %1574 = vmatprep.mubr.f32.mxu1 %v829_v35  ;;  %v11183_v9 = vpop.f32.mrb[164].mxu0  ;;  %v838_v45 = vld [vmem:[%s12525_s3 + $0xc08] sm:$0xff] }
 0x330   :  { %7254 = vmatmul.mubr.f32.gmra.mrb[198].mxu0 %v2092_v22  ;;  %v11188_v47 = vpop.f32.mrb[165].mxu0 }
 0x331   :  { %v1311_v51 = vpop.f32.mrb[144].mxu1  ;;  %8351 = vmatpush3.bf16.msra.mxu0 %v8348_v33  ;;  %v835_v33 = vld [vmem:[%s12525_s3 + $0xbf0] sm:$0xff]  ;;  %v11195_v35 = vpop.f32.mrb[166].mxu0 }
 0x332   :  { %v2097_v4 = vadd.f32 %v10752_v3, %v1311_v51  ;;  %v1313_v19 = vpop.f32.mrb[145].mxu1  ;;  %1575 = vmatmul.mubr.f32.gmra.mrb[250].mxu1 %v828_v43  ;;  %8353 = vmatprep.subr.bf16.mxu0 %v8352_v55  ;;  %v11200_v22 = vpop.f32.mrb[167].mxu0  ;;  %v841_v51 = vld [vmem:[%s12525_s3 + $0xc20] sm:$0xff] }
 0x333   :  { %1579 = vmatprep.mubr.f32.mxu1 %v832_v18  ;;  %v11206_v32 = vpop.f32.mrb[168].mxu0 }
 0x334   :  { %7256 = vmatprep.mubr.f32.mxu0 %v2097_v4  ;;  %v11211_v18 = vpop.f32.mrb[169].mxu0 }
 0x335   :  { %v1316_v3 = vpop.f32.mrb[146].mxu1  ;;  %8355 = vmatpush3.bf16.msra.mxu0 %v8352_v55 }
 0x336   :  { %v2102_v58 = vadd.f32 %v10746_v25, %v1316_v3  ;;  %v1318_v28 = vpop.f32.mrb[147].mxu1  ;;  %1580 = vmatmul.mubr.f32.gmra.mrb[252].mxu1 %v831_v26  ;;  %8357 = vmatprep.subr.bf16.mxu0 %v11181_v27  ;;  %v11217_v26 = vpop.f32.mrb[170].mxu0 }
 0x337   :  { %1584 = vmatprep.mubr.f32.mxu1 %v835_v33  ;;  %v840_v33 = vld [vmem:[%s12525_s3 + $0xc18] sm:$0xff]  ;;  %v11222_v3 = vpop.f32.mrb[171].mxu0 }
 0x338   :  { %7257 = vmatmul.mubr.f32.gmra.mrb[200].mxu0 %v2102_v58  ;;  %v844_v58 = vld [vmem:[%s12525_s3 + $0xc38] sm:$0xff] }
 0x339   :  { %v1321_v55 = vpop.f32.mrb[148].mxu1 }
 0x33a   :  { %v2107_v25 = vadd.f32 %v10774_v60, %v1321_v55  ;;  %v1323_v43 = vpop.f32.mrb[149].mxu1  ;;  %1585 = vmatmul.mubr.f32.gmra.mrb[254].mxu1 %v834_v50  ;;  %v843_v55 = vld [vmem:[%s12525_s3 + $0xc30] sm:$0xff] }
 0x33b   :  { %1589 = vmatprep.mubr.f32.mxu1 %v838_v45  ;;  %v11228_v45 = vpop.f32.mrb[172].mxu0  ;;  %v847_v43 = vld [vmem:[%s12525_s3 + $0xc50] sm:$0xff] }
 0x33c   :  { %7259 = vmatprep.mubr.f32.mxu0 %v2107_v25  ;;  %v11233_v25 = vpop.f32.mrb[173].mxu0 }
 0x33d   :  { %v1326_v4 = vpop.f32.mrb[150].mxu1 }
 0x33e   :  { %v2112_v19 = vadd.f32 %v10767_v38, %v1326_v4  ;;  %v1328_v60 = vpop.f32.mrb[151].mxu1  ;;  %1590 = vmatmul.mubr.f32.gmra.mrb[0].mxu1 %v837_v37  ;;  %v11239_v4 = vpop.f32.mrb[174].mxu0 }
 0x33f   :  { %1594 = vmatprep.mubr.f32.mxu1 %v841_v51  ;;  %v11244_v60 = vpop.f32.mrb[175].mxu0 }
 0x340   :  { %7260 = vmatmul.mubr.f32.gmra.mrb[202].mxu0 %v2112_v19  ;;  %v846_v19 = vld [vmem:[%s12525_s3 + $0xc48] sm:$0xff] }
 0x341   :  { %v1331_v28 = vpop.f32.mrb[152].mxu1 }
 0x342   :  { %v2117_v50 = vadd.f32 %v10793_v7, %v1331_v28  ;;  %v1333_v38 = vpop.f32.mrb[153].mxu1  ;;  %1595 = vmatmul.mubr.f32.gmra.mrb[2].mxu1 %v840_v33  ;;  %v850_v33 = vld [vmem:[%s12525_s3 + $0xc68] sm:$0xff] }
 0x343   :  { %1599 = vmatprep.mubr.f32.mxu1 %v844_v58  ;;  %v849_v38 = vld [vmem:[%s12525_s3 + $0xc60] sm:$0xff] }
 0x344   :  { %7262 = vmatprep.mubr.f32.mxu0 %v2117_v50  ;;  %v11250_v50 = vpop.f32.mrb[176].mxu0 }
 0x345   :  { %v1336_v37 = vpop.f32.mrb[154].mxu1 }
 0x346   :  { %v2122_v51 = vadd.f32 %v10787_v44, %v1336_v37  ;;  %v1338_v7 = vpop.f32.mrb[155].mxu1  ;;  %1600 = vmatmul.mubr.f32.gmra.mrb[4].mxu1 %v843_v55  ;;  %v11255_v55 = vpop.f32.mrb[177].mxu0 }
 0x347   :  { %1604 = vmatprep.mubr.f32.mxu1 %v847_v43  ;;  %v853_v43 = vld [vmem:[%s12525_s3 + $0xc80] sm:$0xff]  ;;  %v11261_v7 = vpop.f32.mrb[178].mxu0 }
 0x348   :  { %7263 = vmatmul.mubr.f32.gmra.mrb[204].mxu0 %v2122_v51  ;;  %12534 = vst [vmem:[#allocation2_spill] sm:$0xff] %v11261_v7  ;;  %v5565_v7 = vld [vmem:[%s12527_s4 + $0x318] sm:$0xff] }
 0x349   :  { %v1341_v58 = vpop.f32.mrb[156].mxu1 }
 0x34a   :  { %v2127_v28 = vadd.f32 %v10812_v30, %v1341_v58  ;;  %v1343_v44 = vpop.f32.mrb[157].mxu1  ;;  %1605 = vmatmul.mubr.f32.gmra.mrb[6].mxu1 %v846_v19  ;;  %v852_v19 = vld [vmem:[%s12525_s3 + $0xc78] sm:$0xff] }
 0x34b   :  { %1609 = vmatprep.mubr.f32.mxu1 %v850_v33  ;;  %v11266_v33 = vpop.f32.mrb[179].mxu0  ;;  %v856_v58 = vld [vmem:[%s12525_s3 + $0xc98] sm:$0xff] }
 0x34c   :  { %7265 = vmatprep.mubr.f32.mxu0 %v2127_v28  ;;  %12535 = vst [vmem:[#allocation3_spill] sm:$0xff] %v11266_v33  ;;  %v5620_v28 = vld [vmem:[%s12528_s6 + $0xc8] sm:$0xff] }
 0x34d   :  { %v1346_v37 = vpop.f32.mrb[158].mxu1 }
 0x34e   :  { %v2132_v51 = vadd.f32 %v10806_v46, %v1346_v37  ;;  %v1348_v30 = vpop.f32.mrb[159].mxu1  ;;  %1610 = vmatmul.mubr.f32.gmra.mrb[8].mxu1 %v849_v38  ;;  %v5619_v46 = vld [vmem:[%s12528_s6 + $0xc0] sm:$0xff] }
 0x34f   :  { %1614 = vmatprep.mubr.f32.mxu1 %v853_v43  ;;  %v8465_v38 = vpack.c.bf16 %v5620_v28, %v5619_v46  ;;  %v11278_v30 = vpop.f32.mrb[180].mxu0 }
 0x350   :  { %7266 = vmatmul.mubr.f32.gmra.mrb[206].mxu0 %v2132_v51  ;;  %12536 = vst [vmem:[#allocation4_spill] sm:$0xff] %v11278_v30  ;;  %v855_v51 = vld [vmem:[%s12525_s3 + $0xc90] sm:$0xff]  ;;  %v11289_v46 = vpop.f32.mrb[181].mxu0 }
 0x351   :  { %v1351_v44 = vpop.f32.mrb[160].mxu1  ;;  %8466 = vmatpush3.bf16.msra.mxu1 %v8465_v38  ;;  %12537 = vst [vmem:[#allocation5_spill] sm:$0xff] %v11289_v46  ;;  %v11296_v30 = vpop.f32.mrb[182].mxu0  ;;  %v858_v38 = vld [vmem:[%s12525_s3 + $0xca8] sm:$0xff] }
 0x352   :  { %v2137_v43 = vadd.f32 %v10831_v16, %v1351_v44  ;;  %v1353_v37 = vpop.f32.mrb[161].mxu1  ;;  %1615 = vmatmul.mubr.f32.gmra.mrb[10].mxu1 %v852_v19  ;;  %v859_v16 = vld [vmem:[%s12525_s3 + $0xcb0] sm:$0xff]  ;;  %v12538_v19 = vmov 0.0|0.0   ;;  %v5567_v46 = vld [vmem:[%s12527_s4 + $0x328] sm:$0xff]  ;;  %v11307_v33 = vpop.f32.mrb[183].mxu0 }
 0x353   :  { %1619 = vmatprep.mubr.f32.mxu1 %v856_v58  ;;  %8467 = vmatprep.subr.bf16.mxu1 %v12538_v19  ;;  %v8360_v37 = vpack.c.bf16 %v5565_v7, %v5564_v8  ;;  %v862_v8 = vld [vmem:[%s12525_s3 + $0xcc8] sm:$0xff] }
 0x354   :  { %7300 = vmatprep.mubr.f32.mxu0 %v2137_v43  ;;  %v5566_v43 = vld [vmem:[%s12527_s4 + $0x320] sm:$0xff] }
 0x355   :  { %v1356_v58 = vpop.f32.mrb[162].mxu1 }
 0x356   :  { %v2142_v28 = vadd.f32 %v10825_v24, %v1356_v58  ;;  %v1358_v44 = vpop.f32.mrb[163].mxu1  ;;  %1620 = vmatmul.mubr.f32.gmra.mrb[12].mxu1 %v855_v51  ;;  %v11314_v58 = vpop.f32.mrb[184].mxu0 }
 0x357   :  { %1624 = vmatprep.mubr.f32.mxu1 %v859_v16  ;;  %v8364_v16 = vpack.c.bf16 %v5567_v46, %v5566_v43  ;;  %12539 = vst [vmem:[#allocation6_spill] sm:$0xff] %v11314_v58  ;;  %v5568_v44 = vld [vmem:[%s12527_s4 + $0x330] sm:$0xff]  ;;  %v865_v46 = vld [vmem:[%s12525_s3 + $0xce0] sm:$0xff]  ;;  %v864_v58 = vld [vmem:[%s12525_s3 + $0xcd8] sm:$0xff] }
 0x358   :  { %7301 = vmatmul.mubr.f32.vlgmr.msra.gmra.mrb[192].mxu0 %v2142_v28  ;;  %v861_v28 = vld [vmem:[%s12525_s3 + $0xcc0] sm:$0xff] }
 0x359   :  { %v1361_v24 = vpop.f32.mrb[164].mxu1  ;;  %8359 = vmatpush3.bf16.msra.mxu0 %v11181_v27  ;;  %v5569_v27 = vld [vmem:[%s12527_s4 + $0x338] sm:$0xff] }
 0x35a   :  { %v2147_v7 = vadd.f32 %v10853_v54, %v1361_v24  ;;  %v1363_v51 = vpop.f32.mrb[165].mxu1  ;;  %1625 = vmatmul.mubr.f32.gmra.mrb[14].mxu1 %v858_v38  ;;  %8361 = vmatprep.subr.bf16.mxu0 %v8360_v37  ;;  %v11325_v54 = vpop.f32.mrb[185].mxu0  ;;  %v8368_v24 = vpack.c.bf16 %v5569_v27, %v5568_v44 }
 0x35b   :  { %1629 = vmatprep.mubr.f32.mxu1 %v862_v8  ;;  %v11331_v51 = vpop.f32.mrb[186].mxu0 }
 0x35c   :  { %7303 = vmatprep.mubr.f32.mxu0 %v2147_v7  ;;  %12540 = vst [vmem:[#allocation7_spill] sm:$0xff] %v11331_v51  ;;  %v5570_v7 = vld [vmem:[%s12527_s4 + $0x340] sm:$0xff]  ;;  %v867_v51 = vld [vmem:[%s12525_s3 + $0xcf0] sm:$0xff] }
 0x35d   :  { %v1366_v38 = vpop.f32.mrb[166].mxu1  ;;  %8363 = vmatpush3.bf16.msra.mxu0 %v8360_v37  ;;  %v5571_v37 = vld [vmem:[%s12527_s4 + $0x348] sm:$0xff] }
 0x35e   :  { %v2152_v43 = vadd.f32 %v10844_v20, %v1366_v38  ;;  %v1368_v8 = vpop.f32.mrb[167].mxu1  ;;  %1630 = vmatmul.mubr.f32.gmra.mrb[16].mxu1 %v861_v28  ;;  %8365 = vmatprep.subr.bf16.mxu0 %v8364_v16  ;;  %v11342_v20 = vpop.f32.mrb[187].mxu0  ;;  %v868_v28 = vld [vmem:[%s12525_s3 + $0xcf8] sm:$0xff]  ;;  %v8372_v38 = vpack.c.bf16 %v5571_v37, %v5570_v7 }
 0x35f   :  { %1634 = vmatprep.mubr.f32.mxu1 %v865_v46  ;;  %v11348_v8 = vpop.f32.mrb[188].mxu0 }
 0x360   :  { %7304 = vmatmul.mubr.f32.gmra.mrb[194].mxu0 %v2152_v43  ;;  %12541 = vst [vmem:[#allocation8_spill] sm:$0xff] %v11348_v8  ;;  %v5572_v43 = vld [vmem:[%s12527_s4 + $0x350] sm:$0xff]  ;;  %v870_v8 = vld [vmem:[%s12525_s3 + $0xd08] sm:$0xff] }
 0x361   :  { %v1371_v44 = vpop.f32.mrb[168].mxu1  ;;  %8367 = vmatpush3.bf16.msra.mxu0 %v8364_v16  ;;  %v5573_v16 = vld [vmem:[%s12527_s4 + $0x358] sm:$0xff] }
 0x362   :  { %v2157_v27 = vadd.f32 %v10883_v56, %v1371_v44  ;;  %v1373_v46 = vpop.f32.mrb[169].mxu1  ;;  %1635 = vmatmul.mubr.f32.gmra.mrb[18].mxu1 %v864_v58  ;;  %8369 = vmatprep.subr.bf16.mxu0 %v8368_v24  ;;  %v11359_v56 = vpop.f32.mrb[189].mxu0  ;;  %v871_v58 = vld [vmem:[%s12525_s3 + $0xd10] sm:$0xff]  ;;  %v8376_v44 = vpack.c.bf16 %v5573_v16, %v5572_v43 }
 0x363   :  { %1639 = vmatprep.mubr.f32.mxu1 %v868_v28  ;;  %v11365_v46 = vpop.f32.mrb[190].mxu0 }
 0x364   :  { %7306 = vmatprep.mubr.f32.mxu0 %v2157_v27  ;;  %12542 = vst [vmem:[#allocation9_spill] sm:$0xff] %v11365_v46  ;;  %v5574_v27 = vld [vmem:[%s12527_s4 + $0x360] sm:$0xff]  ;;  %v5577_v46 = vld [vmem:[%s12527_s4 + $0x378] sm:$0xff] }
 0x365   :  { %v1376_v7 = vpop.f32.mrb[170].mxu1  ;;  %8371 = vmatpush3.bf16.msra.mxu0 %v8368_v24  ;;  %v5575_v24 = vld [vmem:[%s12527_s4 + $0x368] sm:$0xff] }
 0x366   :  { %v2162_v37 = vadd.f32 %v10875_v6, %v1376_v7  ;;  %v1378_v28 = vpop.f32.mrb[171].mxu1  ;;  %1640 = vmatmul.mubr.f32.gmra.mrb[20].mxu1 %v867_v51  ;;  %8373 = vmatprep.subr.bf16.mxu0 %v8372_v38  ;;  %v11376_v6 = vpop.f32.mrb[191].mxu0  ;;  %v874_v51 = vld [vmem:[%s12525_s3 + $0xd28] sm:$0xff]  ;;  %v8380_v7 = vpack.c.bf16 %v5575_v24, %v5574_v27 }
 0x367   :  { %1644 = vmatprep.mubr.f32.mxu1 %v871_v58  ;;  %v873_v28 = vld [vmem:[%s12525_s3 + $0xd20] sm:$0xff] }
 0x368   :  { %7307 = vmatmul.mubr.f32.gmra.mrb[196].mxu0 %v2162_v37  ;;  %v5576_v37 = vld [vmem:[%s12527_s4 + $0x370] sm:$0xff] }
 0x369   :  { %v1381_v43 = vpop.f32.mrb[172].mxu1  ;;  %8375 = vmatpush3.bf16.msra.mxu0 %v8372_v38  ;;  %v8384_v24 = vpack.c.bf16 %v5577_v46, %v5576_v37  ;;  %v879_v37 = vld [vmem:[%s12525_s3 + $0xd50] sm:$0xff] }
 0x36a   :  { %v2167_v16 = vadd.f32 %v10913_v14, %v1381_v43  ;;  %v1383_v58 = vpop.f32.mrb[173].mxu1  ;;  %1645 = vmatmul.mubr.f32.gmra.mrb[22].mxu1 %v870_v8  ;;  %8377 = vmatprep.subr.bf16.mxu0 %v8376_v44  ;;  %v877_v14 = vld [vmem:[%s12525_s3 + $0xd40] sm:$0xff] }
 0x36b   :  { %1649 = vmatprep.mubr.f32.mxu1 %v874_v51  ;;  %v876_v51 = vld [vmem:[%s12525_s3 + $0xd38] sm:$0xff]  ;;  %v5578_v43 = vld [vmem:[%s12527_s4 + $0x380] sm:$0xff] }
 0x36c   :  { %7309 = vmatprep.mubr.f32.mxu0 %v2167_v16  ;;  %v5579_v16 = vld [vmem:[%s12527_s4 + $0x388] sm:$0xff] }
 0x36d   :  { %v1386_v38 = vpop.f32.mrb[174].mxu1  ;;  %8379 = vmatpush3.bf16.msra.mxu0 %v8376_v44 }
 0x36e   :  { %v2172_v8 = vadd.f32 %v10899_v11, %v1386_v38  ;;  %v1388_v27 = vpop.f32.mrb[175].mxu1  ;;  %1650 = vmatmul.mubr.f32.gmra.mrb[24].mxu1 %v873_v28  ;;  %8381 = vmatprep.subr.bf16.mxu0 %v8380_v7  ;;  %v880_v11 = vld [vmem:[%s12525_s3 + $0xd58] sm:$0xff]  ;;  %v8388_v28 = vpack.c.bf16 %v5579_v16, %v5578_v43 }
 0x36f   :  { %1654 = vmatprep.mubr.f32.mxu1 %v877_v14  ;;  %v883_v14 = vld [vmem:[%s12525_s3 + $0xd70] sm:$0xff] }
 0x370   :  { %7310 = vmatmul.mubr.f32.gmra.mrb[198].mxu0 %v2172_v8 }
 0x371   :  { %v1391_v44 = vpop.f32.mrb[176].mxu1  ;;  %8383 = vmatpush3.bf16.msra.mxu0 %v8380_v7 }
 0x372   :  { %v2177_v46 = vadd.f32 %v10943_v21, %v1391_v44  ;;  %v1393_v58 = vpop.f32.mrb[177].mxu1  ;;  %1655 = vmatmul.mubr.f32.gmra.mrb[26].mxu1 %v876_v51  ;;  %8385 = vmatprep.subr.bf16.mxu0 %v8384_v24  ;;  %v882_v21 = vld [vmem:[%s12525_s3 + $0xd68] sm:$0xff] }
 0x373   :  { %1659 = vmatprep.mubr.f32.mxu1 %v880_v11 }
 0x374   :  { %7312 = vmatprep.mubr.f32.mxu0 %v2177_v46 }
 0x375   :  { %v1396_v38 = vpop.f32.mrb[178].mxu1  ;;  %8387 = vmatpush3.bf16.msra.mxu0 %v8384_v24 }
 0x376   :  { %v2182_v7 = vadd.f32 %v10929_v12, %v1396_v38  ;;  %v1398_v8 = vpop.f32.mrb[179].mxu1  ;;  %1660 = vmatmul.mubr.f32.gmra.mrb[28].mxu1 %v879_v37  ;;  %8389 = vmatprep.subr.bf16.mxu0 %v8388_v28 }
 0x377   :  { %1664 = vmatprep.mubr.f32.mxu1 %v883_v14 }
 0x378   :  { %7313 = vmatmul.mubr.f32.gmra.mrb[200].mxu0 %v2182_v7 }
 0x379   :  { %v1401_v27 = vpop.f32.mrb[180].mxu1 }
 0x37a   :  { %v2187_v51 = vadd.f32 %v10973_v62, %v1401_v27  ;;  %v1403_v43 = vpop.f32.mrb[181].mxu1  ;;  %1665 = vmatmul.mubr.f32.gmra.mrb[30].mxu1 %v882_v21 }
 0x37b   :  { %v5581_v43 = vld [vmem:[%s12527_s4 + $0x398] sm:$0xff] }
 0x37c   :  { %7315 = vmatprep.mubr.f32.mxu0 %v2187_v51 }
 0x37d   :  { %v1406_v16 = vpop.f32.mrb[182].mxu1 }
 0x37e   :  { %v2192_v24 = vadd.f32 %v10959_v31, %v1406_v16  ;;  %v1408_v11 = vpop.f32.mrb[183].mxu1 }
 0x37f   :  { %v5582_v11 = vld [vmem:[%s12527_s4 + $0x3a0] sm:$0xff] }
 0x380   :  { %7316 = vmatmul.mubr.f32.gmra.mrb[202].mxu0 %v2192_v24 }
 0x381   :  { %v1411_v12 = vpop.f32.mrb[184].mxu1 }
 0x382   :  { %v2197_v44 = vadd.f32 %v10994_v61, %v1411_v12  ;;  %v1413_v46 = vpop.f32.mrb[185].mxu1  ;;  %v5621_v12 = vld [vmem:[%s12528_s6 + $0xd0] sm:$0xff] }
 0x384   :  { %7318 = vmatprep.mubr.f32.mxu0 %v2197_v44  ;;  %v5622_v44 = vld [vmem:[%s12528_s6 + $0xd8] sm:$0xff] }
 0x385   :  { %v1416_v58 = vpop.f32.mrb[186].mxu1  ;;  %v8468_v46 = vpack.c.bf16 %v5622_v44, %v5621_v12 }
 0x386   :  { %v2202_v37 = vadd.f32 %v10986_v10, %v1416_v58  ;;  %v1418_v14 = vpop.f32.mrb[187].mxu1  ;;  %v5580_v10 = vld [vmem:[%s12527_s4 + $0x390] sm:$0xff] }
 0x387   :  { %8469 = vmatpush3.bf16.msra.mxu1 %v8468_v46  ;;  %v5593_v46 = vld [vmem:[%s12527_s4 + $0x3f8] sm:$0xff] }
 0x388   :  { %7319 = vmatmul.mubr.f32.gmra.mrb[204].mxu0 %v2202_v37  ;;  %8470 = vmatprep.subr.bf16.mxu1 %v12538_v19 }
 0x389   :  { %v1421_v38 = vpop.f32.mrb[188].mxu1 }
 0x38a   :  { %v2207_v62 = vadd.f32 %v11009_v15, %v1421_v38  ;;  %v1423_v7 = vpop.f32.mrb[189].mxu1  ;;  %v5584_v38 = vld [vmem:[%s12527_s4 + $0x3b0] sm:$0xff] }
 0x38c   :  { %7321 = vmatprep.mubr.f32.mxu0 %v2207_v62  ;;  %v5585_v62 = vld [vmem:[%s12527_s4 + $0x3b8] sm:$0xff] }
 0x38d   :  { %v1426_v8 = vpop.f32.mrb[190].mxu1 }
 0x38e   :  { %v2212_v31 = vadd.f32 %v11004_v29, %v1426_v8  ;;  %v1428_v21 = vpop.f32.mrb[191].mxu1  ;;  %v8392_v29 = vpack.c.bf16 %v5581_v43, %v5580_v10  ;;  %v8400_v8 = vpack.c.bf16 %v5585_v62, %v5584_v38  ;;  %v5589_v43 = vld [vmem:[%s12527_s4 + $0x3d8] sm:$0xff]  ;;  %v5595_v62 = vld [vmem:[%s12527_s4 + $0x408] sm:$0xff] }
 0x38f   :  { %v5587_v21 = vld [vmem:[%s12527_s4 + $0x3c8] sm:$0xff] }
 0x390   :  { %7322 = vmatmul.mubr.f32.gmra.mrb[206].mxu0 %v2212_v31  ;;  %v5586_v31 = vld [vmem:[%s12527_s4 + $0x3c0] sm:$0xff] }
 0x391   :  { %v1431_v27 = vpop.f32.mrb[192].mxu1  ;;  %v8404_v10 = vpack.c.bf16 %v5587_v21, %v5586_v31 }
 0x392   :  { %v2217_v61 = vadd.f32 %v11026_v34, %v1431_v27  ;;  %v1433_v51 = vpop.f32.mrb[193].mxu1  ;;  %v5583_v34 = vld [vmem:[%s12527_s4 + $0x3a8] sm:$0xff] }
 0x393   :  { %v8396_v14 = vpack.c.bf16 %v5583_v34, %v5582_v11  ;;  %v5591_v11 = vld [vmem:[%s12527_s4 + $0x3e8] sm:$0xff] }
 0x394   :  { %7356 = vmatprep.mubr.f32.mxu0 %v2217_v61 }
 0x395   :  { %v1436_v15 = vpop.f32.mrb[194].mxu1 }
 0x396   :  { %v2222_v16 = vadd.f32 %v11021_v39, %v1436_v15  ;;  %v1438_v24 = vpop.f32.mrb[195].mxu1 }
 0x398   :  { %7357 = vmatmul.mubr.f32.vlgmr.msra.gmra.mrb[192].mxu0 %v2222_v16 }
 0x399   :  { %v1441_v39 = vpop.f32.mrb[196].mxu1  ;;  %8391 = vmatpush3.bf16.msra.mxu0 %v8388_v28 }
 0x39a   :  { %v2227_v58 = vadd.f32 %v11038_v41, %v1441_v39  ;;  %v1443_v37 = vpop.f32.mrb[197].mxu1  ;;  %8393 = vmatprep.subr.bf16.mxu0 %v8392_v29 }
 0x39c   :  { %7359 = vmatprep.mubr.f32.mxu0 %v2227_v58 }
 0x39d   :  { %v1446_v7 = vpop.f32.mrb[198].mxu1  ;;  %8395 = vmatpush3.bf16.msra.mxu0 %v8392_v29 }
 0x39e   :  { %v2232_v28 = vadd.f32 %v11033_v0, %v1446_v7  ;;  %v1448_v41 = vpop.f32.mrb[199].mxu1  ;;  %8397 = vmatprep.subr.bf16.mxu0 %v8396_v14  ;;  %v5588_v0 = vld [vmem:[%s12527_s4 + $0x3d0] sm:$0xff] }
 0x39f   :  { %v8408_v29 = vpack.c.bf16 %v5589_v43, %v5588_v0 }
 0x3a0   :  { %7360 = vmatmul.mubr.f32.gmra.mrb[194].mxu0 %v2232_v28 }
 0x3a1   :  { %v1451_v27 = vpop.f32.mrb[200].mxu1  ;;  %8399 = vmatpush3.bf16.msra.mxu0 %v8396_v14 }
 0x3a2   :  { %v2237_v61 = vadd.f32 %v11055_v52, %v1451_v27  ;;  %v1453_v51 = vpop.f32.mrb[201].mxu1  ;;  %8401 = vmatprep.subr.bf16.mxu0 %v8400_v8  ;;  %v5590_v52 = vld [vmem:[%s12527_s4 + $0x3e0] sm:$0xff] }
 0x3a3   :  { %v8412_v39 = vpack.c.bf16 %v5591_v11, %v5590_v52 }
 0x3a4   :  { %7362 = vmatprep.mubr.f32.mxu0 %v2237_v61 }
 0x3a5   :  { %v1456_v15 = vpop.f32.mrb[202].mxu1  ;;  %8403 = vmatpush3.bf16.msra.mxu0 %v8400_v8 }
 0x3a6   :  { %v2242_v16 = vadd.f32 %v11044_v49, %v1456_v15  ;;  %v1458_v24 = vpop.f32.mrb[203].mxu1  ;;  %8405 = vmatprep.subr.bf16.mxu0 %v8404_v10  ;;  %v5592_v49 = vld [vmem:[%s12527_s4 + $0x3f0] sm:$0xff] }
 0x3a7   :  { %v8416_v38 = vpack.c.bf16 %v5593_v46, %v5592_v49 }
 0x3a8   :  { %7363 = vmatmul.mubr.f32.gmra.mrb[196].mxu0 %v2242_v16 }
 0x3a9   :  { %v1461_v34 = vpop.f32.mrb[204].mxu1  ;;  %8407 = vmatpush3.bf16.msra.mxu0 %v8404_v10 }
 0x3aa   :  { %v2247_v12 = vadd.f32 %v11072_v36, %v1461_v34  ;;  %v1463_v44 = vpop.f32.mrb[205].mxu1  ;;  %8409 = vmatprep.subr.bf16.mxu0 %v8408_v29  ;;  %v5594_v36 = vld [vmem:[%s12527_s4 + $0x400] sm:$0xff] }
 0x3ab   :  { %v8420_v8 = vpack.c.bf16 %v5595_v62, %v5594_v36  ;;  %v5625_v44 = vld [vmem:[%s12528_s6 + $0xf0] sm:$0xff] }
 0x3ac   :  { %7365 = vmatprep.mubr.f32.mxu0 %v2247_v12 }
 0x3ad   :  { %v1466_v58 = vpop.f32.mrb[206].mxu1  ;;  %8411 = vmatpush3.bf16.msra.mxu0 %v8408_v29 }
 0x3ae   :  { %v2252_v37 = vadd.f32 %v11061_v2, %v1466_v58  ;;  %v1468_v14 = vpop.f32.mrb[207].mxu1  ;;  %8413 = vmatprep.subr.bf16.mxu0 %v8412_v39  ;;  %v5596_v58 = vld [vmem:[%s12527_s4 + $0x410] sm:$0xff] }
 0x3b0   :  { %7366 = vmatmul.mubr.f32.gmra.mrb[198].mxu0 %v2252_v37  ;;  %v5597_v37 = vld [vmem:[%s12527_s4 + $0x418] sm:$0xff] }
 0x3b1   :  { %v1471_v7 = vpop.f32.mrb[208].mxu1  ;;  %8415 = vmatpush3.bf16.msra.mxu0 %v8412_v39 }
 0x3b2   :  { %v2257_v28 = vadd.f32 %v11090_v42, %v1471_v7  ;;  %v1473_v41 = vpop.f32.mrb[209].mxu1  ;;  %8417 = vmatprep.subr.bf16.mxu0 %v8416_v38  ;;  %v8424_v7 = vpack.c.bf16 %v5597_v37, %v5596_v58 }
 0x3b4   :  { %7368 = vmatprep.mubr.f32.mxu0 %v2257_v28  ;;  %v5599_v28 = vld [vmem:[%s12527_s4 + $0x428] sm:$0xff] }
 0x3b5   :  { %v1476_v2 = vpop.f32.mrb[210].mxu1  ;;  %8419 = vmatpush3.bf16.msra.mxu0 %v8416_v38 }
 0x3b6   :  { %v2262_v31 = vadd.f32 %v11079_v23, %v1476_v2  ;;  %v1478_v21 = vpop.f32.mrb[211].mxu1  ;;  %8421 = vmatprep.subr.bf16.mxu0 %v8420_v8 }
 0x3b7   :  { %v5600_v21 = vld [vmem:[%s12527_s4 + $0x430] sm:$0xff] }
 0x3b8   :  { %7369 = vmatmul.mubr.f32.gmra.mrb[200].mxu0 %v2262_v31 }
 0x3b9   :  { %v1481_v27 = vpop.f32.mrb[212].mxu1 }
 0x3ba   :  { %v2267_v61 = vadd.f32 %v11107_v5, %v1481_v27  ;;  %v1483_v51 = vpop.f32.mrb[213].mxu1  ;;  %v5601_v27 = vld [vmem:[%s12527_s4 + $0x438] sm:$0xff] }
 0x3bc   :  { %7371 = vmatprep.mubr.f32.mxu0 %v2267_v61 }
 0x3bd   :  { %v1486_v10 = vpop.f32.mrb[214].mxu1 }
 0x3be   :  { %v2272_v0 = vadd.f32 %v11096_v17, %v1486_v10  ;;  %v1488_v42 = vpop.f32.mrb[215].mxu1 }
 0x3c0   :  { %7372 = vmatmul.mubr.f32.gmra.mrb[202].mxu0 %v2272_v0  ;;  %v5603_v0 = vld [vmem:[%s12527_s4 + $0x448] sm:$0xff] }
 0x3c1   :  { %v1491_v43 = vpop.f32.mrb[216].mxu1 }
 0x3c2   :  { %v2277_v15 = vadd.f32 %v11124_v53, %v1491_v43  ;;  %v1493_v16 = vpop.f32.mrb[217].mxu1  ;;  %v5623_v53 = vld [vmem:[%s12528_s6 + $0xe0] sm:$0xff] }
 0x3c4   :  { %7374 = vmatprep.mubr.f32.mxu0 %v2277_v15 }
 0x3c5   :  { %v1496_v24 = vpop.f32.mrb[218].mxu1 }
 0x3c6   :  { %v2282_v23 = vadd.f32 %v11113_v1, %v1496_v24  ;;  %v1498_v29 = vpop.f32.mrb[219].mxu1  ;;  %v5624_v1 = vld [vmem:[%s12528_s6 + $0xe8] sm:$0xff]  ;;  %v5605_v24 = vld [vmem:[%s12527_s4 + $0x458] sm:$0xff] }
 0x3c7   :  { %v8471_v39 = vpack.c.bf16 %v5624_v1, %v5623_v53  ;;  %v5609_v1 = vld [vmem:[%s12527_s4 + $0x478] sm:$0xff] }
 0x3c8   :  { %7375 = vmatmul.mubr.f32.gmra.mrb[204].mxu0 %v2282_v23 }
 0x3c9   :  { %v1501_v52 = vpop.f32.mrb[220].mxu1  ;;  %8472 = vmatpush3.bf16.msra.mxu1 %v8471_v39 }
 0x3ca   :  { %v2287_v5 = vadd.f32 %v11141_v40, %v1501_v52  ;;  %v1503_v11 = vpop.f32.mrb[221].mxu1  ;;  %8473 = vmatprep.subr.bf16.mxu1 %v12538_v19 }
 0x3cb   :  { %v5607_v11 = vld [vmem:[%s12527_s4 + $0x468] sm:$0xff] }
 0x3cc   :  { %7377 = vmatprep.mubr.f32.mxu0 %v2287_v5 }
 0x3cd   :  { %v1506_v34 = vpop.f32.mrb[222].mxu1 }
 0x3ce   :  { %v2292_v17 = vadd.f32 %v11130_v57, %v1506_v34  ;;  %v1508_v12 = vpop.f32.mrb[223].mxu1  ;;  %v5626_v57 = vld [vmem:[%s12528_s6 + $0xf8] sm:$0xff] }
 0x3cf   :  { %v8474_v14 = vpack.c.bf16 %v5626_v57, %v5625_v44 }
 0x3d0   :  { %7378 = vmatmul.mubr.f32.gmra.mrb[206].mxu0 %v2292_v17 }
 0x3d1   :  { %v1511_v40 = vpop.f32.mrb[224].mxu1  ;;  %8475 = vmatpush3.bf16.msra.mxu1 %v8474_v14 }
 0x3d2   :  { %v2297_v49 = vadd.f32 %v11158_v63, %v1511_v40  ;;  %v1513_v46 = vpop.f32.mrb[225].mxu1  ;;  %v5598_v63 = vld [vmem:[%s12527_s4 + $0x420] sm:$0xff]  ;;  %8476 = vmatprep.subr.bf16.mxu1 %v12538_v19 }
 0x3d4   :  { %7412 = vmatprep.mubr.f32.mxu0 %v2297_v49 }
 0x3d5   :  { %v1516_v38 = vpop.f32.mrb[226].mxu1 }
 0x3d6   :  { %v2302_v36 = vadd.f32 %v11147_v13, %v1516_v38  ;;  %v1518_v62 = vpop.f32.mrb[227].mxu1  ;;  %v8428_v13 = vpack.c.bf16 %v5599_v28, %v5598_v63 }
 0x3d8   :  { %7413 = vmatmul.mubr.f32.vlgmr.msra.gmra.mrb[192].mxu0 %v2302_v36 }
 0x3d9   :  { %v1521_v41 = vpop.f32.mrb[228].mxu1  ;;  %8423 = vmatpush3.bf16.msra.mxu0 %v8420_v8  ;;  %v8432_v8 = vpack.c.bf16 %v5601_v27, %v5600_v21 }
 0x3da   :  { %v2307_v2 = vadd.f32 %v11175_v48, %v1521_v41  ;;  %v1523_v31 = vpop.f32.mrb[229].mxu1  ;;  %8425 = vmatprep.subr.bf16.mxu0 %v8424_v7  ;;  %v5602_v48 = vld [vmem:[%s12527_s4 + $0x440] sm:$0xff] }
 0x3db   :  { %v8436_v16 = vpack.c.bf16 %v5603_v0, %v5602_v48 }
 0x3dc   :  { %7415 = vmatprep.mubr.f32.mxu0 %v2307_v2 }
 0x3dd   :  { %v1526_v61 = vpop.f32.mrb[230].mxu1  ;;  %8427 = vmatpush3.bf16.msra.mxu0 %v8424_v7 }
 0x3de   :  { %v2312_v51 = vadd.f32 %v11164_v59, %v1526_v61  ;;  %v1528_v10 = vpop.f32.mrb[231].mxu1  ;;  %8429 = vmatprep.subr.bf16.mxu0 %v8428_v13  ;;  %v5604_v59 = vld [vmem:[%s12527_s4 + $0x450] sm:$0xff] }
 0x3df   :  { %v8440_v5 = vpack.c.bf16 %v5605_v24, %v5604_v59 }
 0x3e0   :  { %7416 = vmatmul.mubr.f32.gmra.mrb[194].mxu0 %v2312_v51 }
 0x3e1   :  { %v1531_v42 = vpop.f32.mrb[232].mxu1  ;;  %8431 = vmatpush3.bf16.msra.mxu0 %v8428_v13 }
 0x3e2   :  { %v2317_v43 = vadd.f32 %v11188_v47, %v1531_v42  ;;  %v1533_v15 = vpop.f32.mrb[233].mxu1  ;;  %8433 = vmatprep.subr.bf16.mxu0 %v8432_v8  ;;  %v5606_v47 = vld [vmem:[%s12527_s4 + $0x460] sm:$0xff]  ;;  %v5629_v42 = vld [vmem:[%s12528_s6 + $0x110] sm:$0xff] }
 0x3e3   :  { %v8444_v53 = vpack.c.bf16 %v5607_v11, %v5606_v47 }
 0x3e4   :  { %7418 = vmatprep.mubr.f32.mxu0 %v2317_v43 }
 0x3e5   :  { %v1536_v23 = vpop.f32.mrb[234].mxu1  ;;  %8435 = vmatpush3.bf16.msra.mxu0 %v8432_v8  ;;  %v5628_v8 = vld [vmem:[%s12528_s6 + $0x108] sm:$0xff] }
 0x3e6   :  { %v2322_v29 = vadd.f32 %v11183_v9, %v1536_v23  ;;  %v1538_v52 = vpop.f32.mrb[235].mxu1  ;;  %8437 = vmatprep.subr.bf16.mxu0 %v8436_v16  ;;  %v5608_v9 = vld [vmem:[%s12527_s4 + $0x470] sm:$0xff]  ;;  %v5632_v23 = vld [vmem:[%s12528_s6 + $0x128] sm:$0xff] }
 0x3e7   :  { %v8448_v57 = vpack.c.bf16 %v5609_v1, %v5608_v9  ;;  %v12545_v9 = vld [vmem:[#allocation5_spill] sm:$0xff] }
 0x3e8   :  { %7419 = vmatmul.mubr.f32.gmra.mrb[196].mxu0 %v2322_v29 }
 0x3e9   :  { %v1541_v34 = vpop.f32.mrb[236].mxu1  ;;  %8439 = vmatpush3.bf16.msra.mxu0 %v8436_v16  ;;  %v12543_v16 = vld [vmem:[#allocation3_spill] sm:$0xff] }
 0x3ea   :  { %v2327_v17 = vadd.f32 %v11200_v22, %v1541_v34  ;;  %v1543_v12 = vpop.f32.mrb[237].mxu1  ;;  %8441 = vmatprep.subr.bf16.mxu0 %v8440_v5  ;;  %v5633_v34 = vld [vmem:[%s12528_s6 + $0x130] sm:$0xff] }
 0x3ec   :  { %7421 = vmatprep.mubr.f32.mxu0 %v2327_v17  ;;  %v5634_v17 = vld [vmem:[%s12528_s6 + $0x138] sm:$0xff] }
 0x3ed   :  { %v1546_v44 = vpop.f32.mrb[238].mxu1  ;;  %8443 = vmatpush3.bf16.msra.mxu0 %v8440_v5  ;;  %v12544_v5 = vld [vmem:[#allocation2_spill] sm:$0xff] }
 0x3ee   :  { %v2332_v40 = vadd.f32 %v11195_v35, %v1546_v44  ;;  %v1548_v39 = vpop.f32.mrb[239].mxu1  ;;  %8445 = vmatprep.subr.bf16.mxu0 %v8444_v53 }
 0x3ef   :  { %v5636_v39 = vld [vmem:[%s12528_s6 + $0x148] sm:$0xff] }
 0x3f0   :  { %7422 = vmatmul.mubr.f32.gmra.mrb[198].mxu0 %v2332_v40  ;;  %v5635_v40 = vld [vmem:[%s12528_s6 + $0x140] sm:$0xff] }
 0x3f1   :  { %v1551_v22 = vpop.f32.mrb[240].mxu1  ;;  %8447 = vmatpush3.bf16.msra.mxu0 %v8444_v53  ;;  %v8510_v53 = vpack.c.bf16 %v5634_v17, %v5633_v34 }
 0x3f2   :  { %v2337_v49 = vadd.f32 %v11211_v18, %v1551_v22  ;;  %v1553_v46 = vpop.f32.mrb[241].mxu1  ;;  %8449 = vmatprep.subr.bf16.mxu0 %v8448_v57  ;;  %v8513_v22 = vpack.c.bf16 %v5636_v39, %v5635_v40  ;;  %v4068_v40 = vld [vmem:[%s12528_s6 + $0x28] sm:$0xff] }
 0x3f4   :  { %7424 = vmatprep.mubr.f32.mxu0 %v2337_v49  ;;  %v12546_v49 = vld [vmem:[#allocation4_spill] sm:$0xff] }
 0x3f5   :  { %v1556_v58 = vpop.f32.mrb[242].mxu1  ;;  %8451 = vmatpush3.bf16.msra.mxu0 %v8448_v57 }
 0x3f6   :  { %v2342_v37 = vadd.f32 %v11206_v32, %v1556_v58  ;;  %v1558_v14 = vpop.f32.mrb[243].mxu1  ;;  %8500 = vmatprep.subr.bf16.mxu0 %v12538_v19 }
 0x3f8   :  { %7425 = vmatmul.mubr.f32.gmra.mrb[200].mxu0 %v2342_v37 }
 0x3f9   :  { %v1561_v35 = vpop.f32.mrb[244].mxu1 }
 0x3fa   :  { %v2347_v38 = vadd.f32 %v11222_v3, %v1561_v35  ;;  %v1563_v36 = vpop.f32.mrb[245].mxu1 }
 0x3fc   :  { %7427 = vmatprep.mubr.f32.mxu0 %v2347_v38 }
 0x3fd   :  { %v1566_v62 = vpop.f32.mrb[246].mxu1 }
 0x3fe   :  { %v2352_v7 = vadd.f32 %v11217_v26, %v1566_v62  ;;  %v1568_v18 = vpop.f32.mrb[247].mxu1 }
 0x400   :  { %7428 = vmatmul.mubr.f32.gmra.mrb[202].mxu0 %v2352_v7 }
 0x401   :  { %v1571_v63 = vpop.f32.mrb[248].mxu1 }
 0x402   :  { %v2357_v28 = vadd.f32 %v11233_v25, %v1571_v63  ;;  %v1573_v41 = vpop.f32.mrb[249].mxu1 }
 0x403   :  { %v12547_v41 = vld [vmem:[#allocation6_spill] sm:$0xff] }
 0x404   :  { %7430 = vmatprep.mubr.f32.mxu0 %v2357_v28 }
 0x405   :  { %v1576_v32 = vpop.f32.mrb[250].mxu1 }
 0x406   :  { %v2362_v2 = vadd.f32 %v11228_v45, %v1576_v32  ;;  %v1578_v31 = vpop.f32.mrb[251].mxu1  ;;  %v5627_v45 = vld [vmem:[%s12528_s6 + $0x100] sm:$0xff] }
 0x407   :  { %v8501_v48 = vpack.c.bf16 %v5628_v8, %v5627_v45 }
 0x408   :  { %7431 = vmatmul.mubr.f32.gmra.mrb[204].mxu0 %v2362_v2 }
 0x409   :  { %v1581_v13 = vpop.f32.mrb[252].mxu1 }
 0x40a   :  { %v2367_v3 = vadd.f32 %v11244_v60, %v1581_v13  ;;  %v1583_v21 = vpop.f32.mrb[253].mxu1 }
 0x40b   :  { %v12548_v21 = vld [vmem:[#allocation7_spill] sm:$0xff] }
 0x40c   :  { %7433 = vmatprep.mubr.f32.mxu0 %v2367_v3 }
 0x40d   :  { %v1586_v27 = vpop.f32.mrb[254].mxu1 }
 0x40e   :  { %v2372_v26 = vadd.f32 %v11239_v4, %v1586_v27  ;;  %v1588_v61 = vpop.f32.mrb[255].mxu1 }
 0x410   :  { %7434 = vmatmul.mubr.f32.gmra.mrb[206].mxu0 %v2372_v26 }
 0x411   :  { %v1591_v51 = vpop.f32.mrb[0].mxu1 }
 0x412   :  { %v2377_v25 = vadd.f32 %v11255_v55, %v1591_v51  ;;  %v1593_v10 = vpop.f32.mrb[1].mxu1  ;;  %v5630_v55 = vld [vmem:[%s12528_s6 + $0x118] sm:$0xff] }
 0x413   :  { %v8504_v15 = vpack.c.bf16 %v5630_v55, %v5629_v42  ;;  %v5638_v55 = vld [vmem:[%s12528_s6 + $0x158] sm:$0xff] }
 0x414   :  { %7468 = vmatprep.mubr.f32.mxu0 %v2377_v25  ;;  %v12549_v25 = vld [vmem:[#allocation8_spill] sm:$0xff] }
 0x415   :  { %v1596_v60 = vpop.f32.mrb[2].mxu1 }
 0x416   :  { %v2382_v0 = vadd.f32 %v11250_v50, %v1596_v60  ;;  %v1598_v4 = vpop.f32.mrb[3].mxu1  ;;  %v5631_v50 = vld [vmem:[%s12528_s6 + $0x120] sm:$0xff] }
 0x417   :  { %v8507_v52 = vpack.c.bf16 %v5632_v23, %v5631_v50  ;;  %v5642_v50 = vld [vmem:[%s12528_s6 + $0x178] sm:$0xff] }
 0x418   :  { %7469 = vmatmul.mubr.f32.vlgmr.msra.gmra.mrb[192].mxu0 %v2382_v0  ;;  %v12550_v0 = vld [vmem:[#allocation9_spill] sm:$0xff] }
 0x419   :  { %v1601_v43 = vpop.f32.mrb[4].mxu1  ;;  %8502 = vmatpush3.bf16.msra.mxu0 %v8501_v48 }
 0x41a   :  { %v2387_v59 = vadd.f32 %v12543_v16, %v1601_v43  ;;  %v1603_v24 = vpop.f32.mrb[5].mxu1  ;;  %8503 = vmatprep.subr.bf16.mxu0 %v12538_v19  ;;  %v5640_v16 = vld [vmem:[%s12528_s6 + $0x168] sm:$0xff] }
 0x41b   :  { %v5641_v24 = vld [vmem:[%s12528_s6 + $0x170] sm:$0xff] }
 0x41c   :  { %7471 = vmatprep.mubr.f32.mxu0 %v2387_v59  ;;  %v8522_v23 = vpack.c.bf16 %v5642_v50, %v5641_v24  ;;  %v5643_v50 = vld [vmem:[%s12528_s6 + $0x180] sm:$0xff] }
 0x41d   :  { %v1606_v29 = vpop.f32.mrb[6].mxu1  ;;  %8505 = vmatpush3.bf16.msra.mxu0 %v8504_v15  ;;  %v5639_v15 = vld [vmem:[%s12528_s6 + $0x160] sm:$0xff] }
 0x41e   :  { %v2392_v47 = vadd.f32 %v12544_v5, %v1606_v29  ;;  %v1608_v11 = vpop.f32.mrb[7].mxu1  ;;  %8506 = vmatprep.subr.bf16.mxu0 %v12538_v19  ;;  %v8519_v59 = vpack.c.bf16 %v5640_v16, %v5639_v15  ;;  %v11647_v29 = vld [vmem:[%s12529_s5] ss:$0 sm:$0xff]  ;;  %v4064_v5 = vld [vmem:[%s12528_s6 + $0x8] sm:$0xff]  ;;  %v5670_v15 = vld [vmem:[%s12528_s6 + $0x258] sm:$0xff] }
 0x420   :  { %7472 = vmatmul.mubr.f32.gmra.mrb[194].mxu0 %v2392_v47 }
 0x421   :  { %v1611_v12 = vpop.f32.mrb[8].mxu1  ;;  %8508 = vmatpush3.bf16.msra.mxu0 %v8507_v52  ;;  %v4063_v52 = vld [vmem:[%s12528_s6] sm:$0xff] }
 0x422   :  { %v2397_v1 = vadd.f32 %v12545_v9, %v1611_v12  ;;  %v1613_v44 = vpop.f32.mrb[9].mxu1  ;;  %8509 = vmatprep.subr.bf16.mxu0 %v12538_v19  ;;  %v8477_v17 = vpack.c.bf16 %v4064_v5, %v4063_v52  ;;  %v4066_v9 = vld [vmem:[%s12528_s6 + $0x18] sm:$0xff]  ;;  %v5671_v5 = vld [vmem:[%s12528_s6 + $0x260] sm:$0xff] }
 0x423   :  { %v4067_v44 = vld [vmem:[%s12528_s6 + $0x20] sm:$0xff] }
 0x424   :  { %7474 = vmatprep.mubr.f32.mxu0 %v2397_v1 }
 0x425   :  { %v1616_v57 = vpop.f32.mrb[10].mxu1  ;;  %8511 = vmatpush3.bf16.msra.mxu0 %v8510_v53  ;;  %v4065_v53 = vld [vmem:[%s12528_s6 + $0x10] sm:$0xff] }
 0x426   :  { %v2402_v46 = vadd.f32 %v12546_v49, %v1616_v57  ;;  %v1618_v58 = vpop.f32.mrb[11].mxu1  ;;  %8512 = vmatprep.subr.bf16.mxu0 %v12538_v19  ;;  %v8480_v1 = vpack.c.bf16 %v4066_v9, %v4065_v53  ;;  %v5659_v57 = vld [vmem:[%s12528_s6 + $0x200] sm:$0xff] }
 0x428   :  { %7475 = vmatmul.mubr.f32.gmra.mrb[196].mxu0 %v2402_v46 }
 0x429   :  { %v1621_v37 = vpop.f32.mrb[12].mxu1  ;;  %8514 = vmatpush3.bf16.msra.mxu0 %v8513_v22  ;;  %v5660_v22 = vld [vmem:[%s12528_s6 + $0x208] sm:$0xff] }
 0x42a   :  { %v2407_v14 = vadd.f32 %v11307_v33, %v1621_v37  ;;  %v1623_v35 = vpop.f32.mrb[13].mxu1  ;;  %8515 = vmatprep.subr.bf16.mxu0 %v12538_v19  ;;  %v8483_v37 = vpack.c.bf16 %v4068_v40, %v4067_v44  ;;  %v5646_v44 = vld [vmem:[%s12528_s6 + $0x198] sm:$0xff]  ;;  %v5673_v40 = vld [vmem:[%s12528_s6 + $0x270] sm:$0xff] }
 0x42b   :  { %v4069_v35 = vld [vmem:[%s12528_s6 + $0x30] sm:$0xff] }
 0x42c   :  { %7477 = vmatprep.mubr.f32.mxu0 %v2407_v14  ;;  %v8549_v14 = vpack.c.bf16 %v5660_v22, %v5659_v57 }
 0x42d   :  { %v1626_v38 = vpop.f32.mrb[14].mxu1 }
 0x42e   :  { %v2412_v36 = vadd.f32 %v11296_v30, %v1626_v38  ;;  %v1628_v62 = vpop.f32.mrb[15].mxu1  ;;  %v4070_v38 = vld [vmem:[%s12528_s6 + $0x38] sm:$0xff] }
 0x42f   :  { %v5661_v62 = vld [vmem:[%s12528_s6 + $0x210] sm:$0xff] }
 0x430   :  { %7478 = vmatmul.mubr.f32.gmra.mrb[198].mxu0 %v2412_v36 }
 0x431   :  { %v1631_v7 = vpop.f32.mrb[16].mxu1 }
 0x432   :  { %v2417_v18 = vadd.f32 %v11325_v54, %v1631_v7  ;;  %v1633_v63 = vpop.f32.mrb[17].mxu1  ;;  %v5662_v7 = vld [vmem:[%s12528_s6 + $0x218] sm:$0xff] }
 0x433   :  { %v8552_v63 = vpack.c.bf16 %v5662_v7, %v5661_v62 }
 0x434   :  { %7480 = vmatprep.mubr.f32.mxu0 %v2417_v18  ;;  %v8486_v18 = vpack.c.bf16 %v4070_v38, %v4069_v35  ;;  %v5691_v35 = vld [vmem:[%s12528_s6 + $0x300] sm:$0xff]  ;;  %v5692_v38 = vld [vmem:[%s12528_s6 + $0x308] sm:$0xff] }
 0x435   :  { %v1636_v28 = vpop.f32.mrb[18].mxu1 }
 0x436   :  { %v2422_v32 = vadd.f32 %v12547_v41, %v1636_v28  ;;  %v1638_v2 = vpop.f32.mrb[19].mxu1  ;;  %v4071_v28 = vld [vmem:[%s12528_s6 + $0x40] sm:$0xff]  ;;  %v4072_v41 = vld [vmem:[%s12528_s6 + $0x48] sm:$0xff] }
 0x437   :  { %v5663_v2 = vld [vmem:[%s12528_s6 + $0x220] sm:$0xff] }
 0x438   :  { %7481 = vmatmul.mubr.f32.gmra.mrb[200].mxu0 %v2422_v32 }
 0x439   :  { %v1641_v33 = vpop.f32.mrb[20].mxu1 }
 0x43a   :  { %v2427_v31 = vadd.f32 %v11342_v20, %v1641_v33  ;;  %v1643_v13 = vpop.f32.mrb[21].mxu1  ;;  %v5664_v33 = vld [vmem:[%s12528_s6 + $0x228] sm:$0xff] }
 0x43c   :  { %7483 = vmatprep.mubr.f32.mxu0 %v2427_v31 }
 0x43d   :  { %v1646_v3 = vpop.f32.mrb[22].mxu1 }
 0x43e   :  { %v2432_v30 = vadd.f32 %v12548_v21, %v1646_v3  ;;  %v1648_v27 = vpop.f32.mrb[23].mxu1  ;;  %v8489_v3 = vpack.c.bf16 %v4072_v41, %v4071_v28  ;;  %v8555_v21 = vpack.c.bf16 %v5664_v33, %v5663_v2  ;;  %v5649_v28 = vld [vmem:[%s12528_s6 + $0x1b0] sm:$0xff]  ;;  %v5650_v41 = vld [vmem:[%s12528_s6 + $0x1b8] sm:$0xff] }
 0x43f   :  { %v4074_v27 = vld [vmem:[%s12528_s6 + $0x58] sm:$0xff]  ;;  %v5693_v2 = vld [vmem:[%s12528_s6 + $0x310] sm:$0xff] }
 0x440   :  { %7484 = vmatmul.mubr.f32.gmra.mrb[202].mxu0 %v2432_v30  ;;  %v4073_v30 = vld [vmem:[%s12528_s6 + $0x50] sm:$0xff]  ;;  %v5694_v33 = vld [vmem:[%s12528_s6 + $0x318] sm:$0xff] }
 0x441   :  { %v1651_v26 = vpop.f32.mrb[24].mxu1 }
 0x442   :  { %v2437_v54 = vadd.f32 %v11359_v56, %v1651_v26  ;;  %v1653_v61 = vpop.f32.mrb[25].mxu1  ;;  %v5637_v56 = vld [vmem:[%s12528_s6 + $0x150] sm:$0xff] }
 0x443   :  { %v8516_v43 = vpack.c.bf16 %v5638_v55, %v5637_v56  ;;  %v5665_v26 = vld [vmem:[%s12528_s6 + $0x230] sm:$0xff]  ;;  %v8492_v61 = vpack.c.bf16 %v4074_v27, %v4073_v30  ;;  %v4078_v55 = vld [vmem:[%s12528_s6 + $0x78] sm:$0xff]  ;;  %v5652_v30 = vld [vmem:[%s12528_s6 + $0x1c8] sm:$0xff] }
 0x444   :  { %7486 = vmatprep.mubr.f32.mxu0 %v2437_v54  ;;  %v5666_v54 = vld [vmem:[%s12528_s6 + $0x238] sm:$0xff]  ;;  %v4077_v56 = vld [vmem:[%s12528_s6 + $0x70] sm:$0xff] }
 0x445   :  { %v1656_v51 = vpop.f32.mrb[26].mxu1  ;;  %8517 = vmatpush3.bf16.msra.mxu0 %v8516_v43  ;;  %v5669_v43 = vld [vmem:[%s12528_s6 + $0x250] sm:$0xff]  ;;  %v8498_v16 = vpack.c.bf16 %v4078_v55, %v4077_v56  ;;  %v5655_v55 = vld [vmem:[%s12528_s6 + $0x1e0] sm:$0xff] }
 0x446   :  { %v2442_v10 = vadd.f32 %v12549_v25, %v1656_v51  ;;  %v1658_v45 = vpop.f32.mrb[27].mxu1  ;;  %8518 = vmatprep.subr.bf16.mxu0 %v12538_v19  ;;  %v8558_v51 = vpack.c.bf16 %v5666_v54, %v5665_v26  ;;  %v4075_v25 = vld [vmem:[%s12528_s6 + $0x60] sm:$0xff]  ;;  %v8564_v24 = vpack.c.bf16 %v5670_v15, %v5669_v43  ;;  %v5696_v54 = vld [vmem:[%s12528_s6 + $0x328] sm:$0xff] }
 0x447   :  { %v5695_v26 = vld [vmem:[%s12528_s6 + $0x320] sm:$0xff]  ;;  %v5656_v43 = vld [vmem:[%s12528_s6 + $0x1e8] sm:$0xff] }
 0x448   :  { %7487 = vmatmul.mubr.f32.gmra.mrb[204].mxu0 %v2442_v10  ;;  %v4076_v10 = vld [vmem:[%s12528_s6 + $0x68] sm:$0xff] }
 0x449   :  { %v1661_v8 = vpop.f32.mrb[28].mxu1  ;;  %8520 = vmatpush3.bf16.msra.mxu0 %v8519_v59 }
 0x44a   :  { %v2447_v20 = vadd.f32 %v11376_v6, %v1661_v8  ;;  %v1663_v60 = vpop.f32.mrb[29].mxu1  ;;  %v8969_v6 = vmov 0.0   ;;  %8521 = vmatprep.subr.bf16.mxu0 %v12538_v19  ;;  %v5667_v8 = vld [vmem:[%s12528_s6 + $0x240] sm:$0xff] }
 0x44b   :  { %7524 = vmatprep.mubr.msk.f32.mxu1 %vm8968_vm0, %v8969_v6 }
 0x44c   :  { %7489 = vmatprep.mubr.f32.mxu0 %v2447_v20  ;;  %v5668_v20 = vld [vmem:[%s12528_s6 + $0x248] sm:$0xff] }
 0x44d   :  { %v1666_v48 = vpop.f32.mrb[30].mxu1  ;;  %8523 = vmatpush3.bf16.msra.mxu0 %v8522_v23  ;;  %v5644_v23 = vld [vmem:[%s12528_s6 + $0x188] sm:$0xff] }
 0x44e   :  { %v2452_v4 = vadd.f32 %v12550_v0, %v1666_v48  ;;  %v1668_v42 = vpop.f32.mrb[31].mxu1  ;;  %8548 = vmatprep.subr.bf16.mxu0 %v12538_v19 }
 0x44f   :  { %v8561_v42 = vpack.c.bf16 %v5668_v20, %v5667_v8  ;;  %v5653_v8 = vld [vmem:[%s12528_s6 + $0x1d0] sm:$0xff]  ;;  %v5654_v20 = vld [vmem:[%s12528_s6 + $0x1d8] sm:$0xff] }
 0x450   :  { %7490 = vmatmul.mubr.f32.gmra.mrb[206].mxu0 %v2452_v4  ;;  %v8495_v4 = vpack.c.bf16 %v4076_v10, %v4075_v25 }
 0x451   :  { %7594 = vmatprep.mubr.msk.f32.mxu0 %vm8968_vm0, %v8969_v6 }
 0x4eb   :  { %v7470_v47 = vpop.f32.mrb[192].mxu0 }
 0x4ec   :  { %v4032_v11 = vadd.f32 %v7470_v47, %v11647_v29  ;;  %v11656_v34 = vpop.f32.mrb[193].mxu0  ;;  %v5672_v47 = vld [vmem:[%s12528_s6 + $0x268] sm:$0xff] }
 0x4ed   :  { %v4031_v59 = vadd.f32 %v11647_v29, %v11656_v34  ;;  %v8567_v9 = vpack.c.bf16 %v5672_v47, %v5671_v5  ;;  %v5657_v47 = vld [vmem:[%s12528_s6 + $0x1f0] sm:$0xff] }
 0x4ee   :  { %v4048_v12 = vmax.f32 %v4032_v11, 0.0 }
 0x4ef   :  { %v4047_v53 = vmax.f32 %v4031_v59, 0.0  ;;  %v5700_v59 = vld [vmem:[%s12528_s6 + $0x348] sm:$0xff] }
 0x4f0   :  { %7525 = vmatmul.mubr.f32.vlgmr.msra.gmra.mrb[32].mxu1 %v4048_v12  ;;  %v8525_v12 = vpack.c.bf16 %v5644_v23, %v5643_v50 }
 0x4f1   :  { %8478 = vmatpush3.bf16.msra.mxu1 %v8477_v17  ;;  %7559 = vmatprep.mubr.msk.f32.mxu1 %vm8968_vm0, %v8969_v6 }
 0x4f2   :  { %8479 = vmatprep.subr.bf16.mxu1 %v12538_v19 }
 0x4f3   :  { %v7473_v39 = vpop.f32.mrb[194].mxu0 }
 0x4f4   :  { %v11680_v49 = vadd.f32 %v7473_v39, %v11647_v29  ;;  %v3939_v46 = vpop.f32.mrb[195].mxu0  ;;  %v5674_v39 = vld [vmem:[%s12528_s6 + $0x278] sm:$0xff] }
 0x4f5   :  { %v4033_v58 = vadd.f32 %v11647_v29, %v3939_v46  ;;  %8481 = vmatpush3.bf16.msra.mxu1 %v8480_v1  ;;  %v5645_v1 = vld [vmem:[%s12528_s6 + $0x190] sm:$0xff]  ;;  %v8570_v22 = vpack.c.bf16 %v5674_v39, %v5673_v40  ;;  %v5647_v46 = vld [vmem:[%s12528_s6 + $0x1a0] sm:$0xff]  ;;  %v5704_v39 = vld [vmem:[%s12528_s6 + $0x368] sm:$0xff] }
 0x4f6   :  { %8482 = vmatprep.subr.bf16.mxu1 %v12538_v19  ;;  %v8528_v57 = vpack.c.bf16 %v5646_v44, %v5645_v1  ;;  %v5675_v1 = vld [vmem:[%s12528_s6 + $0x280] sm:$0xff]  ;;  %v5676_v44 = vld [vmem:[%s12528_s6 + $0x288] sm:$0xff] }
 0x4f7   :  { %v4049_v36 = vmax.f32 %v4033_v58, 0.0  ;;  %v5648_v58 = vld [vmem:[%s12528_s6 + $0x1a8] sm:$0xff]  ;;  %v5703_v40 = vld [vmem:[%s12528_s6 + $0x360] sm:$0xff] }
 0x4f9   :  { %8484 = vmatpush3.bf16.msra.mxu1 %v8483_v37  ;;  %7595 = vmatmul.mubr.f32.vlgmr.msra.gmra.mrb[208].mxu0 %v4049_v36 }
 0x4fa   :  { %8550 = vmatpush3.bf16.msra.mxu0 %v8549_v14  ;;  %8485 = vmatprep.subr.bf16.mxu1 %v12538_v19 }
 0x4fb   :  { %v7476_v32 = vpop.f32.mrb[196].mxu0  ;;  %8551 = vmatprep.subr.bf16.mxu0 %v12538_v19  ;;  %7664 = vmatprep.mubr.msk.f32.mxu0 %vm8968_vm0, %v8969_v6 }
 0x4fc   :  { %v11713_v31 = vadd.f32 %v7476_v32, %v11647_v29  ;;  %v11715_v13 = vpop.f32.mrb[197].mxu0 }
 0x4fd   :  { %8487 = vmatpush3.bf16.msra.mxu1 %v8486_v18  ;;  %v4035_v37 = vadd.f32 %v11647_v29, %v11715_v13  ;;  %v8531_v18 = vpack.c.bf16 %v5648_v58, %v5647_v46  ;;  %v8534_v13 = vpack.c.bf16 %v5650_v41, %v5649_v28  ;;  %v8615_v46 = vpack.c.bf16 %v5704_v39, %v5703_v40  ;;  %v5677_v58 = vld [vmem:[%s12528_s6 + $0x290] sm:$0xff]  ;;  %v5724_v28 = vld [vmem:[%s12528_s6 + $0x408] sm:$0xff] }
 0x4fe   :  { %8553 = vmatpush3.bf16.msra.mxu0 %v8552_v63  ;;  %8488 = vmatprep.subr.bf16.mxu1 %v12538_v19  ;;  %v8597_v63 = vpack.c.bf16 %v5692_v38, %v5691_v35  ;;  %v4052_v39 = vmax.f32 %v11713_v31, 0.0  ;;  %v5738_v31 = vld [vmem:[%s12528_s6 + $0x478] sm:$0xff] }
 0x4ff   :  { %8554 = vmatprep.subr.bf16.mxu0 %v12538_v19  ;;  %v4051_v32 = vmax.f32 %v4035_v37, 0.0  ;;  %v5678_v37 = vld [vmem:[%s12528_s6 + $0x298] sm:$0xff] }
 0x500   :  { %v8576_v35 = vpack.c.bf16 %v5678_v37, %v5677_v58  ;;  %v5737_v58 = vld [vmem:[%s12528_s6 + $0x470] sm:$0xff] }
 0x501   :  { %8490 = vmatpush3.bf16.msra.mxu1 %v8489_v3  ;;  %v8600_v3 = vpack.c.bf16 %v5694_v33, %v5693_v2  ;;  %v5681_v2 = vld [vmem:[%s12528_s6 + $0x2b0] sm:$0xff]  ;;  %v5682_v33 = vld [vmem:[%s12528_s6 + $0x2b8] sm:$0xff] }
 0x502   :  { %8556 = vmatpush3.bf16.msra.mxu0 %v8555_v21  ;;  %8491 = vmatprep.subr.bf16.mxu1 %v12538_v19  ;;  %v5651_v21 = vld [vmem:[%s12528_s6 + $0x1c0] sm:$0xff] }
 0x503   :  { %v7479_v45 = vpop.f32.mrb[198].mxu0  ;;  %8557 = vmatprep.subr.bf16.mxu0 %v12538_v19  ;;  %v8537_v10 = vpack.c.bf16 %v5652_v30, %v5651_v21  ;;  %v5726_v21 = vld [vmem:[%s12528_s6 + $0x418] sm:$0xff]  ;;  %v8582_v30 = vpack.c.bf16 %v5682_v33, %v5681_v2  ;;  %v5757_v2 = vld [vmem:[%s12528_s6 + $0x510] sm:$0xff] }
 0x504   :  { %v11746_v60 = vadd.f32 %v7479_v45, %v11647_v29  ;;  %v3959_v48 = vpop.f32.mrb[199].mxu0  ;;  %v8603_v45 = vpack.c.bf16 %v5696_v54, %v5695_v26  ;;  %v5684_v26 = vld [vmem:[%s12528_s6 + $0x2c8] sm:$0xff]  ;;  %v5727_v54 = vld [vmem:[%s12528_s6 + $0x420] sm:$0xff]  ;;  %v5758_v33 = vld [vmem:[%s12528_s6 + $0x518] sm:$0xff] }
 0x505   :  { %v11749_v0 = vadd.f32 %v11647_v29, %v3959_v48  ;;  %8493 = vmatpush3.bf16.msra.mxu1 %v8492_v61  ;;  %v5697_v48 = vld [vmem:[%s12528_s6 + $0x330] sm:$0xff] }
 0x506   :  { %8559 = vmatpush3.bf16.msra.mxu0 %v8558_v51  ;;  %8494 = vmatprep.subr.bf16.mxu1 %v12538_v19 }
 0x507   :  { %8560 = vmatprep.subr.bf16.mxu0 %v12538_v19 }
 0x509   :  { %8496 = vmatpush3.bf16.msra.mxu1 %v8495_v4  ;;  %v5698_v4 = vld [vmem:[%s12528_s6 + $0x338] sm:$0xff] }
 0x50a   :  { %8562 = vmatpush3.bf16.msra.mxu0 %v8561_v42  ;;  %8497 = vmatprep.subr.bf16.mxu1 %v12538_v19  ;;  %v8540_v42 = vpack.c.bf16 %v5654_v20, %v5653_v8  ;;  %v8606_v56 = vpack.c.bf16 %v5698_v4, %v5697_v48  ;;  %v5685_v8 = vld [vmem:[%s12528_s6 + $0x2d0] sm:$0xff]  ;;  %v5686_v20 = vld [vmem:[%s12528_s6 + $0x2d8] sm:$0xff] }
 0x50b   :  { %v7482_v52 = vpop.f32.mrb[200].mxu0  ;;  %8563 = vmatprep.subr.bf16.mxu0 %v12538_v19  ;;  %v5729_v48 = vld [vmem:[%s12528_s6 + $0x430] sm:$0xff]  ;;  %v5730_v4 = vld [vmem:[%s12528_s6 + $0x438] sm:$0xff] }
 0x50c   :  { %v11782_v11 = vadd.f32 %v7482_v52, %v11647_v29  ;;  %v3969_v34 = vpop.f32.mrb[201].mxu0  ;;  %v8543_v52 = vpack.c.bf16 %v5656_v43, %v5655_v55  ;;  %v5687_v55 = vld [vmem:[%s12528_s6 + $0x2e0] sm:$0xff]  ;;  %v5688_v43 = vld [vmem:[%s12528_s6 + $0x2e8] sm:$0xff] }
 0x50d   :  { %v11785_v17 = vadd.f32 %v11647_v29, %v3969_v34  ;;  %8499 = vmatpush3.bf16.msra.mxu1 %v8498_v16  ;;  %v5699_v16 = vld [vmem:[%s12528_s6 + $0x340] sm:$0xff]  ;;  %v5658_v34 = vld [vmem:[%s12528_s6 + $0x1f8] sm:$0xff] }
 0x50e   :  { %8565 = vmatpush3.bf16.msra.mxu0 %v8564_v24  ;;  %8524 = vmatprep.subr.bf16.mxu1 %v12538_v19  ;;  %v8609_v5 = vpack.c.bf16 %v5700_v59, %v5699_v16  ;;  %v5732_v16 = vld [vmem:[%s12528_s6 + $0x448] sm:$0xff]  ;;  %v8591_v59 = vpack.c.bf16 %v5688_v43, %v5687_v55 }
 0x50f   :  { %8566 = vmatprep.subr.bf16.mxu0 %v12538_v19 }
 0x510   :  { %7560 = vmatmul.mubr.f32.vlgmr.msra.gmra.mrb[34].mxu1 %v4047_v53  ;;  %v8546_v53 = vpack.c.bf16 %v5658_v34, %v5657_v47  ;;  %v5733_v47 = vld [vmem:[%s12528_s6 + $0x450] sm:$0xff]  ;;  %v5734_v34 = vld [vmem:[%s12528_s6 + $0x458] sm:$0xff] }
 0x511   :  { %8526 = vmatpush3.bf16.msra.mxu1 %v8525_v12  ;;  %7629 = vmatprep.mubr.msk.f32.mxu1 %vm8968_vm0, %v8969_v6  ;;  %v5702_v12 = vld [vmem:[%s12528_s6 + $0x358] sm:$0xff] }
 0x512   :  { %8568 = vmatpush3.bf16.msra.mxu0 %v8567_v9  ;;  %8527 = vmatprep.subr.bf16.mxu1 %v12538_v19 }
 0x513   :  { %v7485_v14 = vpop.f32.mrb[202].mxu0  ;;  %8569 = vmatprep.subr.bf16.mxu0 %v12538_v19 }
 0x514   :  { %v11820_v36 = vadd.f32 %v7485_v14, %v11647_v29  ;;  %v3979_v62 = vpop.f32.mrb[203].mxu0  ;;  %v5705_v14 = vld [vmem:[%s12528_s6 + $0x370] sm:$0xff] }
 0x515   :  { %v11823_v7 = vadd.f32 %v11647_v29, %v3979_v62  ;;  %8529 = vmatpush3.bf16.msra.mxu1 %v8528_v57  ;;  %v8573_v57 = vpack.c.bf16 %v5676_v44, %v5675_v1  ;;  %v5679_v62 = vld [vmem:[%s12528_s6 + $0x2a0] sm:$0xff]  ;;  %v5736_v44 = vld [vmem:[%s12528_s6 + $0x468] sm:$0xff] }
 0x516   :  { %8571 = vmatpush3.bf16.msra.mxu0 %v8570_v22  ;;  %8530 = vmatprep.subr.bf16.mxu1 %v12538_v19  ;;  %v4050_v22 = vmax.f32 %v11680_v49, 0.0  ;;  %v5706_v49 = vld [vmem:[%s12528_s6 + $0x378] sm:$0xff]  ;;  %v5735_v1 = vld [vmem:[%s12528_s6 + $0x460] sm:$0xff] }
 0x517   :  { %8596 = vmatprep.subr.bf16.mxu0 %v12538_v19  ;;  %v8618_v38 = vpack.c.bf16 %v5706_v49, %v5705_v14  ;;  %v8666_v14 = vpack.c.bf16 %v5738_v31, %v5737_v58  ;;  %v5711_v49 = vld [vmem:[%s12528_s6 + $0x3a0] sm:$0xff]  ;;  %v5744_v58 = vld [vmem:[%s12528_s6 + $0x4a8] sm:$0xff] }
 0x518   :  { %v5787_v31 = vld [vmem:[%s12528_s6 + $0x600] sm:$0xff] }
 0x519   :  { %8532 = vmatpush3.bf16.msra.mxu1 %v8531_v18  ;;  %7665 = vmatmul.mubr.f32.vlgmr.msra.gmra.mrb[210].mxu0 %v4051_v32  ;;  %v5680_v18 = vld [vmem:[%s12528_s6 + $0x2a8] sm:$0xff] }
 0x51a   :  { %8598 = vmatpush3.bf16.msra.mxu0 %v8597_v63  ;;  %8533 = vmatprep.subr.bf16.mxu1 %v12538_v19  ;;  %v5723_v63 = vld [vmem:[%s12528_s6 + $0x400] sm:$0xff]  ;;  %v8579_v41 = vpack.c.bf16 %v5680_v18, %v5679_v62  ;;  %v5756_v62 = vld [vmem:[%s12528_s6 + $0x508] sm:$0xff] }
 0x51b   :  { %v7488_v27 = vpop.f32.mrb[204].mxu0  ;;  %8599 = vmatprep.subr.bf16.mxu0 %v12538_v19  ;;  %7734 = vmatprep.mubr.msk.f32.mxu0 %vm8968_vm0, %v8969_v6  ;;  %v8645_v32 = vpack.c.bf16 %v5724_v28, %v5723_v63  ;;  %v5713_v28 = vld [vmem:[%s12528_s6 + $0x3b0] sm:$0xff] }
 0x51c   :  { %v11856_v61 = vadd.f32 %v7488_v27, %v11647_v29  ;;  %v3989_v51 = vpop.f32.mrb[205].mxu0 }
 0x51d   :  { %v11859_v25 = vadd.f32 %v11647_v29, %v3989_v51  ;;  %8535 = vmatpush3.bf16.msra.mxu1 %v8534_v13  ;;  %v4053_v13 = vmax.f32 %v11749_v0, 0.0  ;;  %v5683_v0 = vld [vmem:[%s12528_s6 + $0x2c0] sm:$0xff]  ;;  %v5728_v51 = vld [vmem:[%s12528_s6 + $0x428] sm:$0xff] }
 0x51e   :  { %8601 = vmatpush3.bf16.msra.mxu0 %v8600_v3  ;;  %8536 = vmatprep.subr.bf16.mxu1 %v12538_v19  ;;  %v5725_v3 = vld [vmem:[%s12528_s6 + $0x410] sm:$0xff] }
 0x51f   :  { %8602 = vmatprep.subr.bf16.mxu0 %v12538_v19  ;;  %v8648_v27 = vpack.c.bf16 %v5726_v21, %v5725_v3  ;;  %v8696_v3 = vpack.c.bf16 %v5758_v33, %v5757_v2  ;;  %v5716_v21 = vld [vmem:[%s12528_s6 + $0x3c8] sm:$0xff]  ;;  %v5791_v2 = vld [vmem:[%s12528_s6 + $0x620] sm:$0xff] }
 0x520   :  { %v5792_v33 = vld [vmem:[%s12528_s6 + $0x628] sm:$0xff] }
 0x521   :  { %8538 = vmatpush3.bf16.msra.mxu1 %v8537_v10  ;;  %v8585_v10 = vpack.c.bf16 %v5684_v26, %v5683_v0 }
 0x522   :  { %8604 = vmatpush3.bf16.msra.mxu0 %v8603_v45  ;;  %8539 = vmatprep.subr.bf16.mxu1 %v12538_v19  ;;  %v8651_v45 = vpack.c.bf16 %v5728_v51, %v5727_v54  ;;  %v5717_v54 = vld [vmem:[%s12528_s6 + $0x3d0] sm:$0xff]  ;;  %v5718_v51 = vld [vmem:[%s12528_s6 + $0x3d8] sm:$0xff] }
 0x523   :  { %v7491_v15 = vpop.f32.mrb[206].mxu0  ;;  %8605 = vmatprep.subr.bf16.mxu0 %v12538_v19 }
 0x524   :  { %v11890_v24 = vadd.f32 %v7491_v15, %v11647_v29  ;;  %v3999_v50 = vpop.f32.mrb[207].mxu0  ;;  %v5731_v15 = vld [vmem:[%s12528_s6 + $0x440] sm:$0xff] }
 0x525   :  { %v11893_v23 = vadd.f32 %v11647_v29, %v3999_v50  ;;  %8541 = vmatpush3.bf16.msra.mxu1 %v8540_v42  ;;  %v5701_v29 = vld [vmem:[%s12528_s6 + $0x350] sm:$0xff]  ;;  %v8588_v42 = vpack.c.bf16 %v5686_v20, %v5685_v8  ;;  %v8657_v50 = vpack.c.bf16 %v5732_v16, %v5731_v15  ;;  %v8636_v8 = vpack.c.bf16 %v5718_v51, %v5717_v54  ;;  %v5722_v16 = vld [vmem:[%s12528_s6 + $0x3f8] sm:$0xff]  ;;  %v5751_v54 = vld [vmem:[%s12528_s6 + $0x4e0] sm:$0xff] }
 0x526   :  { %8607 = vmatpush3.bf16.msra.mxu0 %v8606_v56  ;;  %8542 = vmatprep.subr.bf16.mxu1 %v12538_v19  ;;  %v8612_v9 = vpack.c.bf16 %v5702_v12, %v5701_v29  ;;  %v8654_v56 = vpack.c.bf16 %v5730_v4, %v5729_v48  ;;  %v8660_v12 = vpack.c.bf16 %v5734_v34, %v5733_v47  ;;  %v5719_v48 = vld [vmem:[%s12528_s6 + $0x3e0] sm:$0xff]  ;;  %v5720_v4 = vld [vmem:[%s12528_s6 + $0x3e8] sm:$0xff]  ;;  %v5721_v15 = vld [vmem:[%s12528_s6 + $0x3f0] sm:$0xff] }
 0x527   :  { %8608 = vmatprep.subr.bf16.mxu0 %v12538_v19  ;;  %v8639_v55 = vpack.c.bf16 %v5720_v4, %v5719_v48  ;;  %v5739_v47 = vld [vmem:[%s12528_s6 + $0x480] sm:$0xff]  ;;  %v5740_v34 = vld [vmem:[%s12528_s6 + $0x488] sm:$0xff]  ;;  %v5753_v48 = vld [vmem:[%s12528_s6 + $0x4f0] sm:$0xff] }
 0x528   :  { %v5752_v51 = vld [vmem:[%s12528_s6 + $0x4e8] sm:$0xff]  ;;  %v5754_v4 = vld [vmem:[%s12528_s6 + $0x4f8] sm:$0xff] }
 0x529   :  { %8544 = vmatpush3.bf16.msra.mxu1 %v8543_v52  ;;  %v5689_v52 = vld [vmem:[%s12528_s6 + $0x2f0] sm:$0xff] }
 0x52a   :  { %8610 = vmatpush3.bf16.msra.mxu0 %v8609_v5  ;;  %8545 = vmatprep.subr.bf16.mxu1 %v12538_v19  ;;  %v5690_v5 = vld [vmem:[%s12528_s6 + $0x2f8] sm:$0xff] }
 0x52b   :  { %8611 = vmatprep.subr.bf16.mxu0 %v12538_v19  ;;  %v8594_v29 = vpack.c.bf16 %v5690_v5, %v5689_v52  ;;  %v8642_v52 = vpack.c.bf16 %v5722_v16, %v5721_v15  ;;  %v5771_v15 = vld [vmem:[%s12528_s6 + $0x580] sm:$0xff]  ;;  %v5772_v16 = vld [vmem:[%s12528_s6 + $0x588] sm:$0xff] }
 0x52d   :  { %8547 = vmatpush3.bf16.msra.mxu1 %v8546_v53  ;;  %v5707_v53 = vld [vmem:[%s12528_s6 + $0x380] sm:$0xff] }
 0x52e   :  { %8613 = vmatpush3.bf16.msra.mxu0 %v8612_v9  ;;  %8572 = vmatprep.subr.bf16.mxu1 %v12538_v19  ;;  %v5708_v9 = vld [vmem:[%s12528_s6 + $0x388] sm:$0xff] }
 0x52f   :  { %8614 = vmatprep.subr.bf16.mxu0 %v12538_v19  ;;  %v8621_v40 = vpack.c.bf16 %v5708_v9, %v5707_v53  ;;  %v8669_v53 = vpack.c.bf16 %v5740_v34, %v5739_v47  ;;  %v4054_v9 = vmax.f32 %v11746_v60, 0.0  ;;  %v5770_v60 = vld [vmem:[%s12528_s6 + $0x578] sm:$0xff]  ;;  %v5773_v34 = vld [vmem:[%s12528_s6 + $0x590] sm:$0xff] }
 0x530   :  { %7630 = vmatmul.mubr.f32.vlgmr.msra.gmra.mrb[36].mxu1 %v4050_v22  ;;  %v5709_v22 = vld [vmem:[%s12528_s6 + $0x390] sm:$0xff] }
 0x531   :  { %8574 = vmatpush3.bf16.msra.mxu1 %v8573_v57  ;;  %7699 = vmatprep.mubr.msk.f32.mxu1 %vm8968_vm0, %v8969_v6  ;;  %v8663_v57 = vpack.c.bf16 %v5736_v44, %v5735_v1  ;;  %v5741_v44 = vld [vmem:[%s12528_s6 + $0x490] sm:$0xff] }
 0x532   :  { %8616 = vmatpush3.bf16.msra.mxu0 %v8615_v46  ;;  %8575 = vmatprep.subr.bf16.mxu1 %v12538_v19  ;;  %v5710_v46 = vld [vmem:[%s12528_s6 + $0x398] sm:$0xff] }
 0x533   :  { %8617 = vmatprep.subr.bf16.mxu0 %v12538_v19  ;;  %v8624_v37 = vpack.c.bf16 %v5710_v46, %v5709_v22  ;;  %v5743_v46 = vld [vmem:[%s12528_s6 + $0x4a0] sm:$0xff] }
 0x535   :  { %8577 = vmatpush3.bf16.msra.mxu1 %v8576_v35  ;;  %v5712_v35 = vld [vmem:[%s12528_s6 + $0x3a8] sm:$0xff] }
 0x536   :  { %8619 = vmatpush3.bf16.msra.mxu0 %v8618_v38  ;;  %8578 = vmatprep.subr.bf16.mxu1 %v12538_v19  ;;  %v5755_v38 = vld [vmem:[%s12528_s6 + $0x500] sm:$0xff]  ;;  %v8627_v18 = vpack.c.bf16 %v5712_v35, %v5711_v49  ;;  %v5745_v35 = vld [vmem:[%s12528_s6 + $0x4b0] sm:$0xff] }
 0x537   :  { %8644 = vmatprep.subr.bf16.mxu0 %v12538_v19  ;;  %v8693_v63 = vpack.c.bf16 %v5756_v62, %v5755_v38  ;;  %v5746_v38 = vld [vmem:[%s12528_s6 + $0x4b8] sm:$0xff]  ;;  %v4057_v62 = vmax.f32 %v11823_v7, 0.0  ;;  %v5747_v7 = vld [vmem:[%s12528_s6 + $0x4c0] sm:$0xff] }
 0x539   :  { %8580 = vmatpush3.bf16.msra.mxu1 %v8579_v41  ;;  %7735 = vmatmul.mubr.f32.vlgmr.msra.gmra.mrb[212].mxu0 %v4053_v13  ;;  %v5714_v41 = vld [vmem:[%s12528_s6 + $0x3b8] sm:$0xff] }
 0x53a   :  { %8646 = vmatpush3.bf16.msra.mxu0 %v8645_v32  ;;  %8581 = vmatprep.subr.bf16.mxu1 %v12538_v19  ;;  %v4055_v32 = vmax.f32 %v11785_v17, 0.0  ;;  %v8630_v13 = vpack.c.bf16 %v5714_v41, %v5713_v28  ;;  %v5715_v17 = vld [vmem:[%s12528_s6 + $0x3c0] sm:$0xff]  ;;  %v8678_v28 = vpack.c.bf16 %v5746_v38, %v5745_v35  ;;  %v5780_v35 = vld [vmem:[%s12528_s6 + $0x5c8] sm:$0xff] }
 0x53b   :  { %8647 = vmatprep.subr.bf16.mxu0 %v12538_v19  ;;  %7804 = vmatprep.mubr.msk.f32.mxu0 %vm8968_vm0, %v8969_v6  ;;  %v8633_v0 = vpack.c.bf16 %v5716_v21, %v5715_v17  ;;  %v5749_v17 = vld [vmem:[%s12528_s6 + $0x4d0] sm:$0xff]  ;;  %v5750_v21 = vld [vmem:[%s12528_s6 + $0x4d8] sm:$0xff]  ;;  %v5823_v38 = vld [vmem:[%s12528_s6 + $0x720] sm:$0xff] }
 0x53d   :  { %8583 = vmatpush3.bf16.msra.mxu1 %v8582_v30  ;;  %v5759_v30 = vld [vmem:[%s12528_s6 + $0x520] sm:$0xff] }
 0x53e   :  { %8649 = vmatpush3.bf16.msra.mxu0 %v8648_v27  ;;  %8584 = vmatprep.subr.bf16.mxu1 %v12538_v19  ;;  %v5760_v27 = vld [vmem:[%s12528_s6 + $0x528] sm:$0xff] }
 0x53f   :  { %8650 = vmatprep.subr.bf16.mxu0 %v12538_v19  ;;  %v8699_v26 = vpack.c.bf16 %v5760_v27, %v5759_v30  ;;  %v5793_v30 = vld [vmem:[%s12528_s6 + $0x630] sm:$0xff]  ;;  %v5794_v27 = vld [vmem:[%s12528_s6 + $0x638] sm:$0xff] }
 0x541   :  { %8586 = vmatpush3.bf16.msra.mxu1 %v8585_v10  ;;  %v5761_v10 = vld [vmem:[%s12528_s6 + $0x530] sm:$0xff] }
 0x542   :  { %8652 = vmatpush3.bf16.msra.mxu0 %v8651_v45  ;;  %8587 = vmatprep.subr.bf16.mxu1 %v12538_v19  ;;  %v5762_v45 = vld [vmem:[%s12528_s6 + $0x538] sm:$0xff] }
 0x543   :  { %8653 = vmatprep.subr.bf16.mxu0 %v12538_v19  ;;  %v8702_v20 = vpack.c.bf16 %v5762_v45, %v5761_v10  ;;  %v5795_v10 = vld [vmem:[%s12528_s6 + $0x640] sm:$0xff]  ;;  %v5796_v45 = vld [vmem:[%s12528_s6 + $0x648] sm:$0xff] }
 0x545   :  { %8589 = vmatpush3.bf16.msra.mxu1 %v8588_v42  ;;  %v5763_v42 = vld [vmem:[%s12528_s6 + $0x540] sm:$0xff] }
 0x546   :  { %8655 = vmatpush3.bf16.msra.mxu0 %v8654_v56  ;;  %8590 = vmatprep.subr.bf16.mxu1 %v12538_v19  ;;  %v5764_v56 = vld [vmem:[%s12528_s6 + $0x548] sm:$0xff] }
 0x547   :  { %8656 = vmatprep.subr.bf16.mxu0 %v12538_v19  ;;  %v8705_v43 = vpack.c.bf16 %v5764_v56, %v5763_v42  ;;  %v5797_v42 = vld [vmem:[%s12528_s6 + $0x650] sm:$0xff]  ;;  %v5798_v56 = vld [vmem:[%s12528_s6 + $0x658] sm:$0xff] }
 0x549   :  { %8592 = vmatpush3.bf16.msra.mxu1 %v8591_v59  ;;  %v5765_v59 = vld [vmem:[%s12528_s6 + $0x550] sm:$0xff] }
 0x54a   :  { %8658 = vmatpush3.bf16.msra.mxu0 %v8657_v50  ;;  %8593 = vmatprep.subr.bf16.mxu1 %v12538_v19  ;;  %v5766_v50 = vld [vmem:[%s12528_s6 + $0x558] sm:$0xff] }
 0x54b   :  { %8659 = vmatprep.subr.bf16.mxu0 %v12538_v19  ;;  %v8708_v5 = vpack.c.bf16 %v5766_v50, %v5765_v59  ;;  %v5799_v59 = vld [vmem:[%s12528_s6 + $0x660] sm:$0xff]  ;;  %v5800_v50 = vld [vmem:[%s12528_s6 + $0x668] sm:$0xff] }
 0x54c   :  { %v8759_v47 = vpack.c.bf16 %v5800_v50, %v5799_v59 }
 0x54d   :  { %8595 = vmatpush3.bf16.msra.mxu1 %v8594_v29  ;;  %v5767_v29 = vld [vmem:[%s12528_s6 + $0x560] sm:$0xff] }
 0x54e   :  { %8661 = vmatpush3.bf16.msra.mxu0 %v8660_v12  ;;  %8620 = vmatprep.subr.bf16.mxu1 %v12538_v19  ;;  %v5768_v12 = vld [vmem:[%s12528_s6 + $0x568] sm:$0xff] }
 0x54f   :  { %8662 = vmatprep.subr.bf16.mxu0 %v12538_v19  ;;  %v8711_v1 = vpack.c.bf16 %v5768_v12, %v5767_v29  ;;  %v5774_v29 = vld [vmem:[%s12528_s6 + $0x598] sm:$0xff]  ;;  %v5801_v12 = vld [vmem:[%s12528_s6 + $0x670] sm:$0xff] }
 0x550   :  { %7700 = vmatmul.mubr.f32.vlgmr.msra.gmra.mrb[38].mxu1 %v4052_v39  ;;  %v5769_v39 = vld [vmem:[%s12528_s6 + $0x570] sm:$0xff] }
 0x551   :  { %8622 = vmatpush3.bf16.msra.mxu1 %v8621_v40  ;;  %7769 = vmatprep.mubr.msk.f32.mxu1 %vm8968_vm0, %v8969_v6  ;;  %v5742_v40 = vld [vmem:[%s12528_s6 + $0x498] sm:$0xff]  ;;  %v8714_v22 = vpack.c.bf16 %v5770_v60, %v5769_v39  ;;  %v5820_v39 = vld [vmem:[%s12528_s6 + $0x708] sm:$0xff] }
 0x552   :  { %8664 = vmatpush3.bf16.msra.mxu0 %v8663_v57  ;;  %8623 = vmatprep.subr.bf16.mxu1 %v12538_v19  ;;  %v8672_v57 = vpack.c.bf16 %v5742_v40, %v5741_v44  ;;  %v5776_v44 = vld [vmem:[%s12528_s6 + $0x5a8] sm:$0xff]  ;;  %v5819_v40 = vld [vmem:[%s12528_s6 + $0x700] sm:$0xff] }
 0x553   :  { %8665 = vmatprep.subr.bf16.mxu0 %v12538_v19 }
 0x555   :  { %8625 = vmatpush3.bf16.msra.mxu1 %v8624_v37  ;;  %v5788_v37 = vld [vmem:[%s12528_s6 + $0x608] sm:$0xff] }
 0x556   :  { %8667 = vmatpush3.bf16.msra.mxu0 %v8666_v14  ;;  %8626 = vmatprep.subr.bf16.mxu1 %v12538_v19  ;;  %v8675_v14 = vpack.c.bf16 %v5744_v58, %v5743_v46  ;;  %v8741_v49 = vpack.c.bf16 %v5788_v37, %v5787_v31  ;;  %v5778_v46 = vld [vmem:[%s12528_s6 + $0x5b8] sm:$0xff]  ;;  %v4059_v58 = vmax.f32 %v11859_v25, 0.0  ;;  %v5821_v31 = vld [vmem:[%s12528_s6 + $0x710] sm:$0xff]  ;;  %v5779_v25 = vld [vmem:[%s12528_s6 + $0x5c0] sm:$0xff] }
 0x557   :  { %8692 = vmatprep.subr.bf16.mxu0 %v12538_v19  ;;  %v5822_v37 = vld [vmem:[%s12528_s6 + $0x718] sm:$0xff] }
 0x559   :  { %8628 = vmatpush3.bf16.msra.mxu1 %v8627_v18  ;;  %7805 = vmatmul.mubr.f32.vlgmr.msra.gmra.mrb[214].mxu0 %v4055_v32  ;;  %v5789_v18 = vld [vmem:[%s12528_s6 + $0x610] sm:$0xff]  ;;  %v5748_v32 = vld [vmem:[%s12528_s6 + $0x4c8] sm:$0xff] }
 0x55a   :  { %8694 = vmatpush3.bf16.msra.mxu0 %v8693_v63  ;;  %8629 = vmatprep.subr.bf16.mxu1 %v12538_v19  ;;  %v5790_v63 = vld [vmem:[%s12528_s6 + $0x618] sm:$0xff] }
 0x55b   :  { %8695 = vmatprep.subr.bf16.mxu0 %v12538_v19  ;;  %7874 = vmatprep.mubr.msk.f32.mxu0 %vm8968_vm0, %v8969_v6  ;;  %v8744_v41 = vpack.c.bf16 %v5790_v63, %v5789_v18  ;;  %v8729_v18 = vpack.c.bf16 %v5780_v35, %v5779_v25 }
 0x55d   :  { %8631 = vmatpush3.bf16.msra.mxu1 %v8630_v13  ;;  %v8681_v13 = vpack.c.bf16 %v5748_v32, %v5747_v7  ;;  %v5825_v7 = vld [vmem:[%s12528_s6 + $0x730] sm:$0xff]  ;;  %v5826_v32 = vld [vmem:[%s12528_s6 + $0x738] sm:$0xff] }
 0x55e   :  { %8697 = vmatpush3.bf16.msra.mxu0 %v8696_v3  ;;  %8632 = vmatprep.subr.bf16.mxu1 %v12538_v19  ;;  %v8747_v3 = vpack.c.bf16 %v5792_v33, %v5791_v2  ;;  %v8798_v33 = vpack.c.bf16 %v5826_v32, %v5825_v7  ;;  %v5841_v32 = vld [vmem:[%s12528_s6 + $0x7b0] sm:$0xff] }
 0x55f   :  { %8698 = vmatprep.subr.bf16.mxu0 %v12538_v19 }
 0x561   :  { %8634 = vmatpush3.bf16.msra.mxu1 %v8633_v0  ;;  %v8684_v0 = vpack.c.bf16 %v5750_v21, %v5749_v17  ;;  %v5827_v17 = vld [vmem:[%s12528_s6 + $0x740] sm:$0xff]  ;;  %v5828_v21 = vld [vmem:[%s12528_s6 + $0x748] sm:$0xff] }
 0x562   :  { %8700 = vmatpush3.bf16.msra.mxu0 %v8699_v26  ;;  %8635 = vmatprep.subr.bf16.mxu1 %v12538_v19  ;;  %v8750_v26 = vpack.c.bf16 %v5794_v27, %v5793_v30  ;;  %v8801_v27 = vpack.c.bf16 %v5828_v21, %v5827_v17  ;;  %v5845_v17 = vld [vmem:[%s12528_s6 + $0x7d0] sm:$0xff]  ;;  %v5846_v21 = vld [vmem:[%s12528_s6 + $0x7d8] sm:$0xff] }
 0x563   :  { %8701 = vmatprep.subr.bf16.mxu0 %v12538_v19 }
 0x565   :  { %8637 = vmatpush3.bf16.msra.mxu1 %v8636_v8  ;;  %v8687_v8 = vpack.c.bf16 %v5752_v51, %v5751_v54  ;;  %v5829_v54 = vld [vmem:[%s12528_s6 + $0x750] sm:$0xff]  ;;  %v5830_v51 = vld [vmem:[%s12528_s6 + $0x758] sm:$0xff] }
 0x566   :  { %8703 = vmatpush3.bf16.msra.mxu0 %v8702_v20  ;;  %8638 = vmatprep.subr.bf16.mxu1 %v12538_v19  ;;  %v8753_v20 = vpack.c.bf16 %v5796_v45, %v5795_v10  ;;  %v8804_v45 = vpack.c.bf16 %v5830_v51, %v5829_v54 }
 0x567   :  { %8704 = vmatprep.subr.bf16.mxu0 %v12538_v19 }
 0x569   :  { %8640 = vmatpush3.bf16.msra.mxu1 %v8639_v55  ;;  %v8690_v55 = vpack.c.bf16 %v5754_v4, %v5753_v48  ;;  %v5831_v48 = vld [vmem:[%s12528_s6 + $0x760] sm:$0xff]  ;;  %v5832_v4 = vld [vmem:[%s12528_s6 + $0x768] sm:$0xff] }
 0x56a   :  { %8706 = vmatpush3.bf16.msra.mxu0 %v8705_v43  ;;  %8641 = vmatprep.subr.bf16.mxu1 %v12538_v19  ;;  %v8756_v43 = vpack.c.bf16 %v5798_v56, %v5797_v42  ;;  %v4058_v56 = vmax.f32 %v11820_v36, 0.0  ;;  %v5834_v36 = vld [vmem:[%s12528_s6 + $0x778] sm:$0xff] }
 0x56b   :  { %8707 = vmatprep.subr.bf16.mxu0 %v12538_v19 }
 0x56d   :  { %8643 = vmatpush3.bf16.msra.mxu1 %v8642_v52  ;;  %v8717_v52 = vpack.c.bf16 %v5772_v16, %v5771_v15  ;;  %v5806_v15 = vld [vmem:[%s12528_s6 + $0x698] sm:$0xff]  ;;  %v5833_v16 = vld [vmem:[%s12528_s6 + $0x770] sm:$0xff] }
 0x56e   :  { %8709 = vmatpush3.bf16.msra.mxu0 %v8708_v5  ;;  %8668 = vmatprep.subr.bf16.mxu1 %v12538_v19  ;;  %v4056_v5 = vmax.f32 %v11782_v11, 0.0  ;;  %v5802_v11 = vld [vmem:[%s12528_s6 + $0x678] sm:$0xff]  ;;  %v8810_v50 = vpack.c.bf16 %v5834_v36, %v5833_v16 }
 0x56f   :  { %8710 = vmatprep.subr.bf16.mxu0 %v12538_v19 }
 0x570   :  { %7770 = vmatmul.mubr.f32.vlgmr.msra.gmra.mrb[40].mxu1 %v4054_v9  ;;  %v8762_v9 = vpack.c.bf16 %v5802_v11, %v5801_v12  ;;  %v4061_v12 = vmax.f32 %v11893_v23, 0.0  ;;  %v5813_v23 = vld [vmem:[%s12528_s6 + $0x6d0] sm:$0xff] }
 0x571   :  { %8670 = vmatpush3.bf16.msra.mxu1 %v8669_v53  ;;  %7839 = vmatprep.mubr.msk.f32.mxu1 %vm8968_vm0, %v8969_v6  ;;  %v8720_v53 = vpack.c.bf16 %v5774_v29, %v5773_v34  ;;  %v5809_v34 = vld [vmem:[%s12528_s6 + $0x6b0] sm:$0xff]  ;;  %v5810_v29 = vld [vmem:[%s12528_s6 + $0x6b8] sm:$0xff] }
 0x572   :  { %8712 = vmatpush3.bf16.msra.mxu0 %v8711_v1  ;;  %8671 = vmatprep.subr.bf16.mxu1 %v12538_v19  ;;  %v5775_v1 = vld [vmem:[%s12528_s6 + $0x5a0] sm:$0xff]  ;;  %v8774_v11 = vpack.c.bf16 %v5810_v29, %v5809_v34 }
 0x573   :  { %8713 = vmatprep.subr.bf16.mxu0 %v12538_v19  ;;  %v8723_v60 = vpack.c.bf16 %v5776_v44, %v5775_v1  ;;  %v5814_v44 = vld [vmem:[%s12528_s6 + $0x6d8] sm:$0xff] }
 0x575   :  { %8673 = vmatpush3.bf16.msra.mxu1 %v8672_v57  ;;  %v8789_v57 = vpack.c.bf16 %v5820_v39, %v5819_v40  ;;  %v8780_v40 = vpack.c.bf16 %v5814_v44, %v5813_v23  ;;  %v5815_v39 = vld [vmem:[%s12528_s6 + $0x6e0] sm:$0xff] }
 0x576   :  { %8715 = vmatpush3.bf16.msra.mxu0 %v8714_v22  ;;  %8674 = vmatprep.subr.bf16.mxu1 %v12538_v19  ;;  %v5777_v22 = vld [vmem:[%s12528_s6 + $0x5b0] sm:$0xff] }
 0x577   :  { %8740 = vmatprep.subr.bf16.mxu0 %v12538_v19 }
 0x579   :  { %8676 = vmatpush3.bf16.msra.mxu1 %v8675_v14  ;;  %7875 = vmatmul.mubr.f32.vlgmr.msra.gmra.mrb[216].mxu0 %v4057_v62  ;;  %v8726_v14 = vpack.c.bf16 %v5778_v46, %v5777_v22  ;;  %v5824_v62 = vld [vmem:[%s12528_s6 + $0x728] sm:$0xff] }
 0x57a   :  { %8742 = vmatpush3.bf16.msra.mxu0 %v8741_v49  ;;  %8677 = vmatprep.subr.bf16.mxu1 %v12538_v19  ;;  %v8792_v49 = vpack.c.bf16 %v5822_v37, %v5821_v31  ;;  %v8795_v63 = vpack.c.bf16 %v5824_v62, %v5823_v38  ;;  %v5818_v31 = vld [vmem:[%s12528_s6 + $0x6f8] sm:$0xff]  ;;  %v4060_v62 = vmax.f32 %v11856_v61, 0.0  ;;  %v5839_v61 = vld [vmem:[%s12528_s6 + $0x7a0] sm:$0xff] }
 0x57b   :  { %8743 = vmatprep.subr.bf16.mxu0 %v12538_v19  ;;  %7944 = vmatprep.mubr.msk.f32.mxu0 %vm8968_vm0, %v8969_v6 }
 0x57d   :  { %8679 = vmatpush3.bf16.msra.mxu1 %v8678_v28  ;;  %v5781_v28 = vld [vmem:[%s12528_s6 + $0x5d0] sm:$0xff] }
 0x57e   :  { %8745 = vmatpush3.bf16.msra.mxu0 %v8744_v41  ;;  %8680 = vmatprep.subr.bf16.mxu1 %v12538_v19  ;;  %v5782_v41 = vld [vmem:[%s12528_s6 + $0x5d8] sm:$0xff] }
 0x57f   :  { %8746 = vmatprep.subr.bf16.mxu0 %v12538_v19  ;;  %v8732_v2 = vpack.c.bf16 %v5782_v41, %v5781_v28  ;;  %v5840_v41 = vld [vmem:[%s12528_s6 + $0x7a8] sm:$0xff] }
 0x580   :  { %v8819_v7 = vpack.c.bf16 %v5840_v41, %v5839_v61 }
 0x581   :  { %8682 = vmatpush3.bf16.msra.mxu1 %v8681_v13  ;;  %v5783_v13 = vld [vmem:[%s12528_s6 + $0x5e0] sm:$0xff] }
 0x582   :  { %8748 = vmatpush3.bf16.msra.mxu0 %v8747_v3  ;;  %8683 = vmatprep.subr.bf16.mxu1 %v12538_v19  ;;  %v5784_v3 = vld [vmem:[%s12528_s6 + $0x5e8] sm:$0xff] }
 0x583   :  { %8749 = vmatprep.subr.bf16.mxu0 %v12538_v19  ;;  %v8735_v30 = vpack.c.bf16 %v5784_v3, %v5783_v13  ;;  %v5844_v13 = vld [vmem:[%s12528_s6 + $0x7c8] sm:$0xff] }
 0x585   :  { %8685 = vmatpush3.bf16.msra.mxu1 %v8684_v0  ;;  %v5785_v0 = vld [vmem:[%s12528_s6 + $0x5f0] sm:$0xff] }
 0x586   :  { %8751 = vmatpush3.bf16.msra.mxu0 %v8750_v26  ;;  %8686 = vmatprep.subr.bf16.mxu1 %v12538_v19  ;;  %v5786_v26 = vld [vmem:[%s12528_s6 + $0x5f8] sm:$0xff] }
 0x587   :  { %8752 = vmatprep.subr.bf16.mxu0 %v12538_v19  ;;  %v8738_v10 = vpack.c.bf16 %v5786_v26, %v5785_v0  ;;  %v5848_v0 = vld [vmem:[%s12528_s6 + $0x7e8] sm:$0xff] }
 0x589   :  { %8688 = vmatpush3.bf16.msra.mxu1 %v8687_v8  ;;  %v5803_v8 = vld [vmem:[%s12528_s6 + $0x680] sm:$0xff] }
 0x58a   :  { %8754 = vmatpush3.bf16.msra.mxu0 %v8753_v20  ;;  %8689 = vmatprep.subr.bf16.mxu1 %v12538_v19  ;;  %v5804_v20 = vld [vmem:[%s12528_s6 + $0x688] sm:$0xff] }
 0x58b   :  { %8755 = vmatprep.subr.bf16.mxu0 %v12538_v19  ;;  %v8765_v42 = vpack.c.bf16 %v5804_v20, %v5803_v8  ;;  %v5850_v8 = vld [vmem:[%s12528_s6 + $0x7f8] sm:$0xff] }
 0x58d   :  { %8691 = vmatpush3.bf16.msra.mxu1 %v8690_v55  ;;  %v8807_v55 = vpack.c.bf16 %v5832_v4, %v5831_v48 }
 0x58e   :  { %8757 = vmatpush3.bf16.msra.mxu0 %v8756_v43  ;;  %8716 = vmatprep.subr.bf16.mxu1 %v12538_v19  ;;  %v5805_v43 = vld [vmem:[%s12528_s6 + $0x690] sm:$0xff] }
 0x58f   :  { %8758 = vmatprep.subr.bf16.mxu0 %v12538_v19  ;;  %v8768_v59 = vpack.c.bf16 %v5806_v15, %v5805_v43 }
 0x590   :  { %7840 = vmatmul.mubr.f32.vlgmr.msra.gmra.mrb[42].mxu1 %v4056_v5  ;;  %v5808_v5 = vld [vmem:[%s12528_s6 + $0x6a8] sm:$0xff] }
 0x591   :  { %8718 = vmatpush3.bf16.msra.mxu1 %v8717_v52  ;;  %7909 = vmatprep.mubr.msk.f32.mxu1 %vm8968_vm0, %v8969_v6  ;;  %v5807_v52 = vld [vmem:[%s12528_s6 + $0x6a0] sm:$0xff] }
 0x592   :  { %8760 = vmatpush3.bf16.msra.mxu0 %v8759_v47  ;;  %8719 = vmatprep.subr.bf16.mxu1 %v12538_v19  ;;  %v8771_v47 = vpack.c.bf16 %v5808_v5, %v5807_v52 }
 0x593   :  { %8761 = vmatprep.subr.bf16.mxu0 %v12538_v19 }
 0x595   :  { %8721 = vmatpush3.bf16.msra.mxu1 %v8720_v53  ;;  %v5811_v53 = vld [vmem:[%s12528_s6 + $0x6c0] sm:$0xff] }
 0x596   :  { %8763 = vmatpush3.bf16.msra.mxu0 %v8762_v9  ;;  %8722 = vmatprep.subr.bf16.mxu1 %v12538_v19  ;;  %v5812_v9 = vld [vmem:[%s12528_s6 + $0x6c8] sm:$0xff] }
 0x597   :  { %8788 = vmatprep.subr.bf16.mxu0 %v12538_v19  ;;  %v8777_v1 = vpack.c.bf16 %v5812_v9, %v5811_v53 }
 0x599   :  { %8724 = vmatpush3.bf16.msra.mxu1 %v8723_v60  ;;  %7945 = vmatmul.mubr.f32.vlgmr.msra.gmra.mrb[218].mxu0 %v4059_v58  ;;  %v5816_v60 = vld [vmem:[%s12528_s6 + $0x6e8] sm:$0xff]  ;;  %v5817_v58 = vld [vmem:[%s12528_s6 + $0x6f0] sm:$0xff] }
 0x59a   :  { %8790 = vmatpush3.bf16.msra.mxu0 %v8789_v57  ;;  %8725 = vmatprep.subr.bf16.mxu1 %v12538_v19  ;;  %v8783_v46 = vpack.c.bf16 %v5816_v60, %v5815_v39  ;;  %v8786_v37 = vpack.c.bf16 %v5818_v31, %v5817_v58 }
 0x59b   :  { %8791 = vmatprep.subr.bf16.mxu0 %v12538_v19  ;;  %8014 = vmatprep.mubr.msk.f32.mxu0 %vm8968_vm0, %v8969_v6 }
 0x59d   :  { %8727 = vmatpush3.bf16.msra.mxu1 %v8726_v14  ;;  %v5835_v14 = vld [vmem:[%s12528_s6 + $0x780] sm:$0xff] }
 0x59e   :  { %8793 = vmatpush3.bf16.msra.mxu0 %v8792_v49  ;;  %8728 = vmatprep.subr.bf16.mxu1 %v12538_v19  ;;  %v5836_v49 = vld [vmem:[%s12528_s6 + $0x788] sm:$0xff] }
 0x59f   :  { %8794 = vmatprep.subr.bf16.mxu0 %v12538_v19  ;;  %v8813_v38 = vpack.c.bf16 %v5836_v49, %v5835_v14 }
 0x5a1   :  { %8730 = vmatpush3.bf16.msra.mxu1 %v8729_v18  ;;  %v5837_v18 = vld [vmem:[%s12528_s6 + $0x790] sm:$0xff] }
 0x5a2   :  { %8796 = vmatpush3.bf16.msra.mxu0 %v8795_v63  ;;  %8731 = vmatprep.subr.bf16.mxu1 %v12538_v19  ;;  %v5838_v63 = vld [vmem:[%s12528_s6 + $0x798] sm:$0xff] }
 0x5a3   :  { %8797 = vmatprep.subr.bf16.mxu0 %v12538_v19  ;;  %v8816_v28 = vpack.c.bf16 %v5838_v63, %v5837_v18 }
 0x5a5   :  { %8733 = vmatpush3.bf16.msra.mxu1 %v8732_v2 }
 0x5a6   :  { %8799 = vmatpush3.bf16.msra.mxu0 %v8798_v33  ;;  %8734 = vmatprep.subr.bf16.mxu1 %v12538_v19  ;;  %v5843_v33 = vld [vmem:[%s12528_s6 + $0x7c0] sm:$0xff] }
 0x5a7   :  { %8800 = vmatprep.subr.bf16.mxu0 %v12538_v19  ;;  %v8825_v3 = vpack.c.bf16 %v5844_v13, %v5843_v33 }
 0x5a9   :  { %8736 = vmatpush3.bf16.msra.mxu1 %v8735_v30  ;;  %v8828_v30 = vpack.c.bf16 %v5846_v21, %v5845_v17 }
 0x5aa   :  { %8802 = vmatpush3.bf16.msra.mxu0 %v8801_v27  ;;  %8737 = vmatprep.subr.bf16.mxu1 %v12538_v19  ;;  %v5847_v27 = vld [vmem:[%s12528_s6 + $0x7e0] sm:$0xff] }
 0x5ab   :  { %8803 = vmatprep.subr.bf16.mxu0 %v12538_v19 }
 0x5ad   :  { %8739 = vmatpush3.bf16.msra.mxu1 %v8738_v10  ;;  %v8831_v10 = vpack.c.bf16 %v5848_v0, %v5847_v27 }
 0x5ae   :  { %8805 = vmatpush3.bf16.msra.mxu0 %v8804_v45  ;;  %8764 = vmatprep.subr.bf16.mxu1 %v12538_v19  ;;  %v5849_v45 = vld [vmem:[%s12528_s6 + $0x7f0] sm:$0xff] }
 0x5af   :  { %8806 = vmatprep.subr.bf16.mxu0 %v12538_v19  ;;  %v8834_v48 = vpack.c.bf16 %v5850_v8, %v5849_v45 }
 0x5b0   :  { %7910 = vmatmul.mubr.f32.vlgmr.msra.gmra.mrb[44].mxu1 %v4058_v56  ;;  %v4062_v56 = vmax.f32 %v11890_v24, 0.0 }
 0x5b1   :  { %8766 = vmatpush3.bf16.msra.mxu1 %v8765_v42  ;;  %7979 = vmatprep.mubr.msk.f32.mxu1 %vm8968_vm0, %v8969_v6 }
 0x5b2   :  { %8808 = vmatpush3.bf16.msra.mxu0 %v8807_v55  ;;  %8767 = vmatprep.subr.bf16.mxu1 %v12538_v19 }
 0x5b3   :  { %8809 = vmatprep.subr.bf16.mxu0 %v12538_v19 }
 0x5b5   :  { %8769 = vmatpush3.bf16.msra.mxu1 %v8768_v59 }
 0x5b6   :  { %8811 = vmatpush3.bf16.msra.mxu0 %v8810_v50  ;;  %8770 = vmatprep.subr.bf16.mxu1 %v12538_v19 }
 0x5b9   :  { %8772 = vmatpush3.bf16.msra.mxu1 %v8771_v47  ;;  %8015 = vmatmul.mubr.f32.vlgmr.msra.gmra.mrb[220].mxu0 %v4061_v12 }
 0x5ba   :  { %8773 = vmatprep.subr.bf16.mxu1 %v12538_v19 }
 0x5bd   :  { %8775 = vmatpush3.bf16.msra.mxu1 %v8774_v11 }
 0x5be   :  { %8776 = vmatprep.subr.bf16.mxu1 %v12538_v19 }
 0x5c1   :  { %8778 = vmatpush3.bf16.msra.mxu1 %v8777_v1 }
 0x5c2   :  { %8779 = vmatprep.subr.bf16.mxu1 %v12538_v19 }
 0x5c3   :  { %v4162_v57 = vpop.f32.mrb[32].mxu1 }
 0x5c4   :  { %v7526_v22 = vpop.f32.mrb[33].mxu1 }
 0x5c5   :  { %8781 = vmatpush3.bf16.msra.mxu1 %v8780_v40 }
 0x5c6   :  { %8782 = vmatprep.subr.bf16.mxu1 %v12538_v19 }
 0x5c9   :  { %8784 = vmatpush3.bf16.msra.mxu1 %v8783_v46 }
 0x5ca   :  { %8785 = vmatprep.subr.bf16.mxu1 %v12538_v19 }
 0x5cc   :  { %v4319_v25 = vpop.f32.mrb[208].mxu0 }
 0x5cd   :  { %8787 = vmatpush3.bf16.msra.mxu1 %v8786_v37  ;;  %v7596_v35 = vpop.f32.mrb[209].mxu0 }
 0x5ce   :  { %8812 = vmatprep.subr.bf16.mxu1 %v12538_v19 }
 0x5d0   :  { %7980 = vmatmul.mubr.f32.vlgmr.msra.gmra.mrb[46].mxu1 %v4060_v62  ;;  %v5851_v62 = vld [vmem:[%s12530_s7] ss:$0 sm:$0xff] }
 0x5d1   :  { %8814 = vmatpush3.bf16.msra.mxu1 %v8813_v38  ;;  %8049 = vmatprep.mubr.msk.f32.mxu1 %vm8968_vm0, %v8969_v6  ;;  %v5842_v6 = vld [vmem:[%s12528_s6 + $0x7b8] sm:$0xff] }
 0x5d2   :  { %8815 = vmatprep.subr.bf16.mxu1 %v12538_v19  ;;  %v8822_v2 = vpack.c.bf16 %v5842_v6, %v5841_v32 }
 0x5d5   :  { %8817 = vmatpush3.bf16.msra.mxu1 %v8816_v28 }
 0x5d6   :  { %8818 = vmatprep.subr.bf16.mxu1 %v12538_v19 }
 0x5d9   :  { %8820 = vmatpush3.bf16.msra.mxu1 %v8819_v7 }
 0x5da   :  { %8821 = vmatprep.subr.bf16.mxu1 %v12538_v19 }
 0x5dd   :  { %8823 = vmatpush3.bf16.msra.mxu1 %v8822_v2 }
 0x5de   :  { %8824 = vmatprep.subr.bf16.mxu1 %v12538_v19 }
 0x5e1   :  { %8826 = vmatpush3.bf16.msra.mxu1 %v8825_v3 }
 0x5e2   :  { %8827 = vmatprep.subr.bf16.mxu1 %v12538_v19 }
 0x5e3   :  { %v4232_v26 = vpop.f32.mrb[34].mxu1 }
 0x5e4   :  { %v4233_v54 = vadd.f32 %v4232_v26, %v4162_v57  ;;  %v7561_v51 = vpop.f32.mrb[35].mxu1 }
 0x5e5   :  { %8829 = vmatpush3.bf16.msra.mxu1 %v8828_v30 }
 0x5e6   :  { %8830 = vmatprep.subr.bf16.mxu1 %v12538_v19  ;;  %v4323_v20 = vadd.f32 %v4319_v25, %v4233_v54 }
 0x5e9   :  { %8832 = vmatpush3.bf16.msra.mxu1 %v8831_v10 }
 0x5ea   :  { %8833 = vmatprep.subr.bf16.mxu1 %v12538_v19 }
 0x5ec   :  { %v4495_v4 = vpop.f32.mrb[210].mxu0 }
 0x5ed   :  { %v7666_v42 = vpop.f32.mrb[211].mxu0  ;;  %8835 = vmatpush3.bf16.msra.mxu1 %v8834_v48 }
 0x5f0   :  { %8050 = vmatmul.mubr.f32.vlgmr.msra.gmra.mrb[48].mxu1 %v4062_v56 }
 0x603   :  { %v4407_v55 = vpop.f32.mrb[36].mxu1 }
 0x604   :  { %v4411_v43 = vadd.f32 %v4407_v55, %v4323_v20  ;;  %v7631_v15 = vpop.f32.mrb[37].mxu1 }
 0x606   :  { %v4499_v16 = vadd.f32 %v4495_v4, %v4411_v43 }
 0x60c   :  { %v4671_v36 = vpop.f32.mrb[212].mxu0 }
 0x60d   :  { %v7736_v59 = vpop.f32.mrb[213].mxu0 }
 0x623   :  { %v4583_v50 = vpop.f32.mrb[38].mxu1 }
 0x624   :  { %v4587_v52 = vadd.f32 %v4583_v50, %v4499_v16  ;;  %v7701_v5 = vpop.f32.mrb[39].mxu1 }
 0x626   :  { %v4675_v47 = vadd.f32 %v4671_v36, %v4587_v52 }
 0x62c   :  { %v4847_v34 = vpop.f32.mrb[214].mxu0 }
 0x62d   :  { %v7806_v29 = vpop.f32.mrb[215].mxu0 }
 0x643   :  { %v4759_v12 = vpop.f32.mrb[40].mxu1 }
 0x644   :  { %v4763_v19 = vadd.f32 %v4759_v12, %v4675_v47  ;;  %v7771_v11 = vpop.f32.mrb[41].mxu1 }
 0x646   :  { %v4851_v53 = vadd.f32 %v4847_v34, %v4763_v19 }
 0x64c   :  { %v5023_v9 = vpop.f32.mrb[216].mxu0 }
 0x64d   :  { %v7876_v1 = vpop.f32.mrb[217].mxu0 }
 0x663   :  { %v4935_v24 = vpop.f32.mrb[42].mxu1 }
 0x664   :  { %v4939_v23 = vadd.f32 %v4935_v24, %v4851_v53  ;;  %v7841_v44 = vpop.f32.mrb[43].mxu1 }
 0x666   :  { %v5027_v40 = vadd.f32 %v5023_v9, %v4939_v23 }
 0x66c   :  { %v5199_v39 = vpop.f32.mrb[218].mxu0 }
 0x66d   :  { %v7946_v60 = vpop.f32.mrb[219].mxu0 }
 0x683   :  { %v5111_v57 = vpop.f32.mrb[44].mxu1 }
 0x684   :  { %v5115_v22 = vadd.f32 %v5111_v57, %v5027_v40  ;;  %v7911_v46 = vpop.f32.mrb[45].mxu1 }
 0x686   :  { %v5203_v58 = vadd.f32 %v5199_v39, %v5115_v22 }
 0x68c   :  { %v5375_v31 = vpop.f32.mrb[220].mxu0 }
 0x68d   :  { %v8016_v37 = vpop.f32.mrb[221].mxu0 }
 0x6a3   :  { %v5287_v14 = vpop.f32.mrb[46].mxu1 }
 0x6a4   :  { %v5291_v49 = vadd.f32 %v5287_v14, %v5203_v58  ;;  %v7981_v25 = vpop.f32.mrb[47].mxu1 }
 0x6a6   :  { %v5379_v35 = vadd.f32 %v5375_v31, %v5291_v49 }
 0x6c3   :  { %v5463_v38 = vpop.f32.mrb[48].mxu1 }
 0x6c4   :  { %v5467_v18 = vadd.f32 %v5463_v38, %v5379_v35  ;;  %v8051_v63 = vpop.f32.mrb[49].mxu1 }
 0x6c6   :  { %v5475_v28 = vadd.f32 %v5851_v62, %v5467_v18 }
 0x6c8   :  { %5476 = vst [vmem:[%s12531_s8] sm:$0xff] %v5475_v28 }

</bundles_post_ra>
